<compile_context>
chip_gen: v7x
topology: tpu7x:2x2x1
jax: 0.10.0
libtpu: 0.0.40
codegen_flags: <defaults>
</compile_context>

<pallas_src>
import jax
import jax.numpy as jnp
from jax.experimental import pallas as pl
from jax.experimental.pallas import tpu as pltpu


def _seq_sum(x):
    """Sum over (anchor, lane) axes of a (1, A, K) array -> (1, 1, 1)."""
    return jnp.sum(jnp.sum(x, axis=2, keepdims=True), axis=1, keepdims=True)


def _seq_max(x):
    return jnp.max(jnp.max(x, axis=2, keepdims=True), axis=1, keepdims=True)


def _multibox_loss_kernel(loc_p_ref, loc_t_ref, conf_ref, tgt_ref, stats_ref):
    # Block shapes (one batch row per grid step):
    #   loc_p_ref, loc_t_ref : (1, A, 4) f32
    #   conf_ref             : (1, A, C) f32 logits
    #   tgt_ref              : (1, A, 1) i32 labels
    #   stats_ref            : (1, 1, 8) f32 packed per-batch partial results
    _, A, C = conf_ref.shape

    tgt = tgt_ref[...]                                   # (1, A, 1) int32
    pos_anchor = tgt > 0                                 # (1, A, 1)
    num_pos = _seq_sum(pos_anchor.astype(jnp.float32))   # (1, 1, 1)

    # ---- SmoothL1 (beta=1), summed over positive anchors --------------------
    d = loc_p_ref[...] - loc_t_ref[...]                  # (1, A, 4)
    ad = jnp.abs(d)
    sl1 = jnp.where(ad < 1.0, 0.5 * d * d, ad - 0.5)
    sl1 = jnp.where(pos_anchor, sl1, 0.0)
    loc_sum = _seq_sum(sl1)                              # (1, 1, 1)

    # ---- BCE-with-logits, elementwise over (anchor, class) ------------------
    x = conf_ref[...]                                    # (1, A, C)
    cls = jax.lax.broadcasted_iota(jnp.int32, (1, A, C), 2)
    pos_elem = tgt == (cls + 1)                          # one-hot positives (1, A, C)
    t = pos_elem.astype(jnp.float32)
    bce = jnp.maximum(x, 0.0) - x * t + jnp.log(1.0 + jnp.exp(-jnp.abs(x)))

    # ---- hard negative mining: radix-select the k-th largest zeroed loss ----
    l_z = jnp.where(pos_elem, 0.0, bce)                  # >= 0 everywhere
    l_bits = pltpu.bitcast(l_z, jnp.int32)               # order-preserving (x >= 0)

    k = jnp.minimum(3.0 * num_pos, jnp.float32(A - 1))   # num_neg, (1, 1, 1)

    cand = jnp.zeros((1, 1, 1), jnp.int32)
    for bit in range(30, -1, -1):                        # sign bit is always 0
        trial = jnp.bitwise_or(cand, jnp.int32(1 << bit))
        cnt = _seq_sum((l_bits >= trial).astype(jnp.float32))
        cand = jnp.where(cnt >= k, trial, cand)
    # cand == bit pattern of the k-th largest l_z (k >= 1); INT32_MAX when k == 0.

    gt = l_bits > cand
    n_gt = _seq_sum(gt.astype(jnp.float32))
    sum_gt = _seq_sum(jnp.where(gt, l_z, 0.0))
    needed = jnp.maximum(k - n_gt, 0.0)                  # elements tied at threshold
    thresh_val = _seq_max(jnp.where(l_bits <= cand, l_z, -jnp.inf))
    tie_sum = jnp.where(needed > 0.5, needed * thresh_val, 0.0)

    pos_sum = _seq_sum(jnp.where(pos_elem, bce, 0.0))
    conf_sum = pos_sum + sum_gt + tie_sum                # sum of bce over (pos | neg)
    conf_cnt = num_pos + n_gt + needed                   # count of (pos | neg)
    # TODO(synk): if the mining threshold degenerates to exactly 0 (more than
    # 3*num_pos negatives with BCE == 0.0), conf_cnt may overcount vs the stable
    # sort tie-break of the PyTorch reference; unreachable for finite logits.

    # ---- _statistic diagnostics (fused; conf_preds already resident) --------
    conf_max = jnp.max(x, axis=2, keepdims=True)                          # (1, A, 1)
    tgt_conf = jnp.max(jnp.where(pos_elem, x, -jnp.inf), axis=2, keepdims=True)
    tp = (conf_max > 0.0) & (tgt_conf >= conf_max)
    tp_cnt = jnp.sum(tp.astype(jnp.float32), axis=1, keepdims=True)       # (1, 1, 1)
    pred_cnt = jnp.sum((conf_max > 0.0).astype(jnp.float32), axis=1, keepdims=True)

    # ---- pack per-batch partial results into one lane row --------------------
    lane = jax.lax.broadcasted_iota(jnp.int32, (1, 1, 8), 2)
    row = jnp.where(lane == 0, loc_sum, 0.0)
    row = row + jnp.where(lane == 1, num_pos, 0.0)
    row = row + jnp.where(lane == 2, conf_sum, 0.0)
    row = row + jnp.where(lane == 3, conf_cnt, 0.0)
    row = row + jnp.where(lane == 4, tp_cnt, 0.0)
    row = row + jnp.where(lane == 5, pred_cnt, 0.0)
    stats_ref[...] = row


@jax.jit
def multibox_loss(loc_preds, loc_targets, conf_preds, conf_targets):
    """Returns ({'loc': (1,), 'conf': (1,)}, info) mirroring MultiBoxLoss.forward."""
    B, A, C = conf_preds.shape
    tgt3 = conf_targets.astype(jnp.int32).reshape(B, A, 1)

    stats = pl.pallas_call(
        _multibox_loss_kernel,
        out_shape=jax.ShapeDtypeStruct((B, 1, 8), jnp.float32),
        grid=(B,),
        in_specs=[
            pl.BlockSpec((1, A, 4), lambda b: (b, 0, 0)),
            pl.BlockSpec((1, A, 4), lambda b: (b, 0, 0)),
            pl.BlockSpec((1, A, C), lambda b: (b, 0, 0)),
            pl.BlockSpec((1, A, 1), lambda b: (b, 0, 0)),
        ],
        out_specs=pl.BlockSpec((1, 1, 8), lambda b: (b, 0, 0)),
        compiler_params=pltpu.CompilerParams(
            dimension_semantics=("parallel",),
            vmem_limit_bytes=32 * 1024 * 1024),
    )(loc_preds, loc_targets, conf_preds, tgt3)

    stats = stats[:, 0, :]                                # (B, 8)
    loc_sum_b = stats[:, 0]
    num_pos_b = stats[:, 1]
    conf_sum_b = stats[:, 2]
    conf_cnt_b = stats[:, 3]
    tp_b = stats[:, 4]
    pred_b = stats[:, 5]

    total_pos = jnp.sum(num_pos_b)
    has_pos = total_pos > 0
    loc_loss = jnp.where(
        has_pos, jnp.sum(loc_sum_b) / jnp.maximum(4.0 * total_pos, 1.0), 0.0)
    conf_loss = jnp.where(
        has_pos, jnp.sum(conf_sum_b) / jnp.maximum(jnp.sum(conf_cnt_b), 1.0), 0.0)

    accuracy = jnp.where(has_pos, jnp.sum(tp_b) / (jnp.sum(pred_b) + 1e-4), -1.0)
    recall = jnp.where(has_pos, jnp.sum(tp_b) / jnp.maximum(total_pos, 1.0), -1.0)
    info = {"accuracy": accuracy, "recall": recall}
    # TODO(synk): info['iou'] requires the external `decoder.decode_boxes` /
    # `decoder.iou` (not defined in this module); omitted.

    loss = {"loc": loc_loss.reshape(1), "conf": conf_loss.reshape(1)}
    return loss, info


def _reference_loss(loc_preds, loc_targets, conf_preds, conf_targets):
    """Pure-JAX mirror of the PyTorch forward (sort-based mining) for validation."""
    B, A, C = conf_preds.shape
    pos = conf_targets > 0
    num_matched = jnp.sum(pos)

    d = loc_preds - loc_targets
    ad = jnp.abs(d)
    sl1 = jnp.where(ad < 1.0, 0.5 * d * d, ad - 0.5)
    sl1 = jnp.where(pos[:, :, None], sl1, 0.0)
    loc_loss = jnp.sum(sl1) / (4.0 * num_matched)

    one_hot = jax.nn.one_hot(conf_targets, C + 1, dtype=jnp.float32)[:, :, 1:]
    pos_mask = one_hot > 0
    x = conf_preds
    bce = jnp.maximum(x, 0.0) - x * one_hot + jnp.log(1.0 + jnp.exp(-jnp.abs(x)))
    lz = jnp.where(pos_mask, 0.0, bce).reshape(B, -1)
    order = jnp.argsort(-lz, axis=1)                      # descending (stable)
    rank = jnp.argsort(order, axis=1)
    num_pos = jnp.sum(pos_mask.reshape(B, -1), axis=1)
    num_neg = jnp.minimum(3 * num_pos, A - 1)[:, None]
    neg = (rank < num_neg).reshape(B, A, C)
    mask = pos_mask | neg
    conf_loss = jnp.sum(jnp.where(mask, bce, 0.0)) / jnp.sum(mask)

    conf_max = jnp.max(conf_preds, axis=2)
    idx = jnp.argmax(conf_preds, axis=2)
    tp = (conf_max > 0) & ((idx + 1) == conf_targets)
    accuracy = jnp.sum(tp) / (jnp.sum(conf_max > 0) + 1e-4)
    recall = jnp.sum(tp) / num_matched
    return loc_loss, conf_loss, accuracy, recall


if __name__ == "__main__":
    key = jax.random.PRNGKey(0)
    B, A, C = 2, 32, 4   # batch=2, 32 anchors, 4 object classes (+ background label 0)
    k1, k2, k3, k4, k5 = jax.random.split(key, 5)
    loc_preds = jax.random.normal(k1, (B, A, 4), dtype=jnp.float32)
    loc_targets = jax.random.normal(k2, (B, A, 4), dtype=jnp.float32)
    conf_preds = jax.random.normal(k3, (B, A, C), dtype=jnp.float32)
    labels = jax.random.randint(k4, (B, A), 1, C + 1, dtype=jnp.int32)
    is_pos = jax.random.uniform(k5, (B, A)) < 0.25
    conf_targets = jnp.where(is_pos, labels, 0).astype(jnp.int32)

    loss, info = multibox_loss(loc_preds, loc_targets, conf_preds, conf_targets)
    jax.block_until_ready(loss)

    ref_loc, ref_conf, ref_acc, ref_rec = _reference_loss(
        loc_preds, loc_targets, conf_preds, conf_targets)
    assert jnp.allclose(loss["loc"][0], ref_loc, rtol=1e-5, atol=1e-5), (loss["loc"], ref_loc)
    assert jnp.allclose(loss["conf"][0], ref_conf, rtol=1e-5, atol=1e-5), (loss["conf"], ref_conf)
    assert jnp.allclose(info["accuracy"], ref_acc, rtol=1e-5, atol=1e-5), (info["accuracy"], ref_acc)
    assert jnp.allclose(info["recall"], ref_rec, rtol=1e-5, atol=1e-5), (info["recall"], ref_rec)
    print("KERNEL_OK")
</pallas_src>

<mosaic_0001>
module attributes {stable_mosaic.version = 11 : i64} {
  func.func @_multibox_loss_kernel(%arg0: i32, %arg1: memref<1x32x4xf32, #tpu.memory_space<vmem>>, %arg2: memref<1x32x4xf32, #tpu.memory_space<vmem>>, %arg3: memref<1x32x4xf32, #tpu.memory_space<vmem>>, %arg4: memref<1x32x1xi32, #tpu.memory_space<vmem>>, %arg5: memref<1x1x8xf32, #tpu.memory_space<vmem>>) attributes {dimension_semantics = [#tpu.dimension_semantics<parallel>], iteration_bounds = array<i64: 2>, scalar_prefetch = 0 : i64, scratch_operands = 0 : i64, tpu.core_type = #tpu.core_type<tc>, window_params = [{transform_indices = @transform_0, window_bounds = array<i64: 1, 32, 4>}, {transform_indices = @transform_1, window_bounds = array<i64: 1, 32, 4>}, {transform_indices = @transform_2, window_bounds = array<i64: 1, 32, 4>}, {transform_indices = @transform_3, window_bounds = array<i64: 1, 32, 1>}, {transform_indices = @transform_4, window_bounds = array<i64: 1, 1, 8>}]} {
    %c0 = arith.constant 0 : index
    %c0_0 = arith.constant 0 : index
    %c0_1 = arith.constant 0 : index
    %0 = vector.load %arg4[%c0, %c0_0, %c0_1] : memref<1x32x1xi32, #tpu.memory_space<vmem>>, vector<1x32x1xi32>
    %c0_i32 = arith.constant 0 : i32
    %1 = vector.broadcast %c0_i32 : i32 to vector<1x32x1xi32>
    %2 = arith.cmpi sgt, %0, %1 : vector<1x32x1xi32>
    %3 = arith.extui %2 : vector<1x32x1xi1> to vector<1x32x1xi32>
    %4 = arith.sitofp %3 : vector<1x32x1xi32> to vector<1x32x1xf32>
    %cst = arith.constant dense<0.000000e+00> : vector<1x32xf32>
    %5 = vector.multi_reduction <add>, %4, %cst [2] : vector<1x32x1xf32> to vector<1x32xf32>
    %6 = vector.shape_cast %5 : vector<1x32xf32> to vector<1x32x1xf32>
    %cst_2 = arith.constant dense<0.000000e+00> : vector<1x1xf32>
    %7 = vector.multi_reduction <add>, %6, %cst_2 [1] : vector<1x32x1xf32> to vector<1x1xf32>
    %8 = vector.shape_cast %7 : vector<1x1xf32> to vector<1x1x1xf32>
    %c0_3 = arith.constant 0 : index
    %c0_4 = arith.constant 0 : index
    %c0_5 = arith.constant 0 : index
    %9 = vector.load %arg1[%c0_3, %c0_4, %c0_5] : memref<1x32x4xf32, #tpu.memory_space<vmem>>, vector<1x32x4xf32>
    %c0_6 = arith.constant 0 : index
    %c0_7 = arith.constant 0 : index
    %c0_8 = arith.constant 0 : index
    %10 = vector.load %arg2[%c0_6, %c0_7, %c0_8] : memref<1x32x4xf32, #tpu.memory_space<vmem>>, vector<1x32x4xf32>
    %11 = arith.subf %9, %10 : vector<1x32x4xf32>
    %12 = math.absf %11 : vector<1x32x4xf32>
    %cst_9 = arith.constant 1.000000e+00 : f32
    %13 = vector.broadcast %cst_9 : f32 to vector<1x32x4xf32>
    %14 = arith.cmpf olt, %12, %13 : vector<1x32x4xf32>
    %cst_10 = arith.constant 5.000000e-01 : f32
    %15 = vector.broadcast %cst_10 : f32 to vector<1x32x4xf32>
    %16 = arith.mulf %15, %11 : vector<1x32x4xf32>
    %17 = arith.mulf %16, %11 : vector<1x32x4xf32>
    %cst_11 = arith.constant 5.000000e-01 : f32
    %18 = vector.broadcast %cst_11 : f32 to vector<1x32x4xf32>
    %19 = arith.subf %12, %18 : vector<1x32x4xf32>
    %20 = arith.select %14, %17, %19 : vector<1x32x4xi1>, vector<1x32x4xf32>
    %cst_12 = arith.constant 0.000000e+00 : f32
    %21 = vector.shape_cast %2 : vector<1x32x1xi1> to vector<1x32x1xi1>
    %22 = vector.broadcast %21 : vector<1x32x1xi1> to vector<1x32x4xi1>
    %23 = vector.broadcast %cst_12 : f32 to vector<1x32x4xf32>
    %24 = arith.select %22, %20, %23 : vector<1x32x4xi1>, vector<1x32x4xf32>
    %cst_13 = arith.constant dense<0.000000e+00> : vector<1x32xf32>
    %25 = vector.multi_reduction <add>, %24, %cst_13 [2] : vector<1x32x4xf32> to vector<1x32xf32>
    %26 = vector.shape_cast %25 : vector<1x32xf32> to vector<1x32x1xf32>
    %cst_14 = arith.constant dense<0.000000e+00> : vector<1x1xf32>
    %27 = vector.multi_reduction <add>, %26, %cst_14 [1] : vector<1x32x1xf32> to vector<1x1xf32>
    %28 = vector.shape_cast %27 : vector<1x1xf32> to vector<1x1x1xf32>
    %c0_15 = arith.constant 0 : index
    %c0_16 = arith.constant 0 : index
    %c0_17 = arith.constant 0 : index
    %29 = vector.load %arg3[%c0_15, %c0_16, %c0_17] : memref<1x32x4xf32, #tpu.memory_space<vmem>>, vector<1x32x4xf32>
    %30 = tpu.iota {dimensions = array<i32: 2>} : vector<1x32x4xi32>
    %c1_i32 = arith.constant 1 : i32
    %31 = vector.broadcast %c1_i32 : i32 to vector<1x32x4xi32>
    %32 = arith.addi %30, %31 : vector<1x32x4xi32>
    %33 = vector.broadcast %0 : vector<1x32x1xi32> to vector<1x32x4xi32>
    %34 = arith.cmpi eq, %33, %32 : vector<1x32x4xi32>
    %35 = arith.extui %34 : vector<1x32x4xi1> to vector<1x32x4xi32>
    %36 = arith.sitofp %35 : vector<1x32x4xi32> to vector<1x32x4xf32>
    %cst_18 = arith.constant 0.000000e+00 : f32
    %37 = vector.broadcast %cst_18 : f32 to vector<1x32x4xf32>
    %38 = arith.maximumf %29, %37 : vector<1x32x4xf32>
    %39 = arith.mulf %29, %36 : vector<1x32x4xf32>
    %40 = arith.subf %38, %39 : vector<1x32x4xf32>
    %41 = math.absf %29 : vector<1x32x4xf32>
    %cst_19 = arith.constant 0.000000e+00 : f32
    %42 = vector.broadcast %cst_19 : f32 to vector<1x32x4xf32>
    %43 = arith.subf %42, %41 : vector<1x32x4xf32>
    %44 = math.exp %43 : vector<1x32x4xf32>
    %cst_20 = arith.constant 1.000000e+00 : f32
    %45 = vector.broadcast %cst_20 : f32 to vector<1x32x4xf32>
    %46 = arith.addf %45, %44 : vector<1x32x4xf32>
    %47 = math.log %46 : vector<1x32x4xf32>
    %48 = arith.addf %40, %47 : vector<1x32x4xf32>
    %cst_21 = arith.constant 0.000000e+00 : f32
    %49 = vector.broadcast %cst_21 : f32 to vector<1x32x4xf32>
    %50 = arith.select %34, %49, %48 : vector<1x32x4xi1>, vector<1x32x4xf32>
    %51 = tpu.bitcast %50 : vector<1x32x4xf32> -> vector<1x32x4xi32>
    %cst_22 = arith.constant 3.000000e+00 : f32
    %52 = vector.broadcast %cst_22 : f32 to vector<1x1x1xf32>
    %53 = arith.mulf %52, %8 : vector<1x1x1xf32>
    %cst_23 = arith.constant 3.100000e+01 : f32
    %54 = vector.broadcast %cst_23 : f32 to vector<1x1x1xf32>
    %55 = arith.minimumf %53, %54 : vector<1x1x1xf32>
    %c0_i32_24 = arith.constant 0 : i32
    %56 = vector.broadcast %c0_i32_24 : i32 to vector<1x1x1xi32>
    %c1073741824_i32 = arith.constant 1073741824 : i32
    %57 = vector.broadcast %c1073741824_i32 : i32 to vector<1x1x1xi32>
    %58 = arith.ori %56, %57 : vector<1x1x1xi32>
    %59 = vector.broadcast %58 : vector<1x1x1xi32> to vector<1x32x4xi32>
    %60 = arith.cmpi sge, %51, %59 : vector<1x32x4xi32>
    %61 = arith.extui %60 : vector<1x32x4xi1> to vector<1x32x4xi32>
    %62 = arith.sitofp %61 : vector<1x32x4xi32> to vector<1x32x4xf32>
    %cst_25 = arith.constant dense<0.000000e+00> : vector<1x32xf32>
    %63 = vector.multi_reduction <add>, %62, %cst_25 [2] : vector<1x32x4xf32> to vector<1x32xf32>
    %64 = vector.shape_cast %63 : vector<1x32xf32> to vector<1x32x1xf32>
    %cst_26 = arith.constant dense<0.000000e+00> : vector<1x1xf32>
    %65 = vector.multi_reduction <add>, %64, %cst_26 [1] : vector<1x32x1xf32> to vector<1x1xf32>
    %66 = vector.shape_cast %65 : vector<1x1xf32> to vector<1x1x1xf32>
    %67 = arith.cmpf oge, %66, %55 : vector<1x1x1xf32>
    %68 = arith.select %67, %58, %56 : vector<1x1x1xi1>, vector<1x1x1xi32>
    %c536870912_i32 = arith.constant 536870912 : i32
    %69 = vector.broadcast %c536870912_i32 : i32 to vector<1x1x1xi32>
    %70 = arith.ori %68, %69 : vector<1x1x1xi32>
    %71 = vector.broadcast %70 : vector<1x1x1xi32> to vector<1x32x4xi32>
    %72 = arith.cmpi sge, %51, %71 : vector<1x32x4xi32>
    %73 = arith.extui %72 : vector<1x32x4xi1> to vector<1x32x4xi32>
    %74 = arith.sitofp %73 : vector<1x32x4xi32> to vector<1x32x4xf32>
    %cst_27 = arith.constant dense<0.000000e+00> : vector<1x32xf32>
    %75 = vector.multi_reduction <add>, %74, %cst_27 [2] : vector<1x32x4xf32> to vector<1x32xf32>
    %76 = vector.shape_cast %75 : vector<1x32xf32> to vector<1x32x1xf32>
    %cst_28 = arith.constant dense<0.000000e+00> : vector<1x1xf32>
    %77 = vector.multi_reduction <add>, %76, %cst_28 [1] : vector<1x32x1xf32> to vector<1x1xf32>
    %78 = vector.shape_cast %77 : vector<1x1xf32> to vector<1x1x1xf32>
    %79 = arith.cmpf oge, %78, %55 : vector<1x1x1xf32>
    %80 = arith.select %79, %70, %68 : vector<1x1x1xi1>, vector<1x1x1xi32>
    %c268435456_i32 = arith.constant 268435456 : i32
    %81 = vector.broadcast %c268435456_i32 : i32 to vector<1x1x1xi32>
    %82 = arith.ori %80, %81 : vector<1x1x1xi32>
    %83 = vector.broadcast %82 : vector<1x1x1xi32> to vector<1x32x4xi32>
    %84 = arith.cmpi sge, %51, %83 : vector<1x32x4xi32>
    %85 = arith.extui %84 : vector<1x32x4xi1> to vector<1x32x4xi32>
    %86 = arith.sitofp %85 : vector<1x32x4xi32> to vector<1x32x4xf32>
    %cst_29 = arith.constant dense<0.000000e+00> : vector<1x32xf32>
    %87 = vector.multi_reduction <add>, %86, %cst_29 [2] : vector<1x32x4xf32> to vector<1x32xf32>
    %88 = vector.shape_cast %87 : vector<1x32xf32> to vector<1x32x1xf32>
    %cst_30 = arith.constant dense<0.000000e+00> : vector<1x1xf32>
    %89 = vector.multi_reduction <add>, %88, %cst_30 [1] : vector<1x32x1xf32> to vector<1x1xf32>
    %90 = vector.shape_cast %89 : vector<1x1xf32> to vector<1x1x1xf32>
    %91 = arith.cmpf oge, %90, %55 : vector<1x1x1xf32>
    %92 = arith.select %91, %82, %80 : vector<1x1x1xi1>, vector<1x1x1xi32>
    %c134217728_i32 = arith.constant 134217728 : i32
    %93 = vector.broadcast %c134217728_i32 : i32 to vector<1x1x1xi32>
    %94 = arith.ori %92, %93 : vector<1x1x1xi32>
    %95 = vector.broadcast %94 : vector<1x1x1xi32> to vector<1x32x4xi32>
    %96 = arith.cmpi sge, %51, %95 : vector<1x32x4xi32>
    %97 = arith.extui %96 : vector<1x32x4xi1> to vector<1x32x4xi32>
    %98 = arith.sitofp %97 : vector<1x32x4xi32> to vector<1x32x4xf32>
    %cst_31 = arith.constant dense<0.000000e+00> : vector<1x32xf32>
    %99 = vector.multi_reduction <add>, %98, %cst_31 [2] : vector<1x32x4xf32> to vector<1x32xf32>
    %100 = vector.shape_cast %99 : vector<1x32xf32> to vector<1x32x1xf32>
    %cst_32 = arith.constant dense<0.000000e+00> : vector<1x1xf32>
    %101 = vector.multi_reduction <add>, %100, %cst_32 [1] : vector<1x32x1xf32> to vector<1x1xf32>
    %102 = vector.shape_cast %101 : vector<1x1xf32> to vector<1x1x1xf32>
    %103 = arith.cmpf oge, %102, %55 : vector<1x1x1xf32>
    %104 = arith.select %103, %94, %92 : vector<1x1x1xi1>, vector<1x1x1xi32>
    %c67108864_i32 = arith.constant 67108864 : i32
    %105 = vector.broadcast %c67108864_i32 : i32 to vector<1x1x1xi32>
    %106 = arith.ori %104, %105 : vector<1x1x1xi32>
    %107 = vector.broadcast %106 : vector<1x1x1xi32> to vector<1x32x4xi32>
    %108 = arith.cmpi sge, %51, %107 : vector<1x32x4xi32>
    %109 = arith.extui %108 : vector<1x32x4xi1> to vector<1x32x4xi32>
    %110 = arith.sitofp %109 : vector<1x32x4xi32> to vector<1x32x4xf32>
    %cst_33 = arith.constant dense<0.000000e+00> : vector<1x32xf32>
    %111 = vector.multi_reduction <add>, %110, %cst_33 [2] : vector<1x32x4xf32> to vector<1x32xf32>
    %112 = vector.shape_cast %111 : vector<1x32xf32> to vector<1x32x1xf32>
    %cst_34 = arith.constant dense<0.000000e+00> : vector<1x1xf32>
    %113 = vector.multi_reduction <add>, %112, %cst_34 [1] : vector<1x32x1xf32> to vector<1x1xf32>
    %114 = vector.shape_cast %113 : vector<1x1xf32> to vector<1x1x1xf32>
    %115 = arith.cmpf oge, %114, %55 : vector<1x1x1xf32>
    %116 = arith.select %115, %106, %104 : vector<1x1x1xi1>, vector<1x1x1xi32>
    %c33554432_i32 = arith.constant 33554432 : i32
    %117 = vector.broadcast %c33554432_i32 : i32 to vector<1x1x1xi32>
    %118 = arith.ori %116, %117 : vector<1x1x1xi32>
    %119 = vector.broadcast %118 : vector<1x1x1xi32> to vector<1x32x4xi32>
    %120 = arith.cmpi sge, %51, %119 : vector<1x32x4xi32>
    %121 = arith.extui %120 : vector<1x32x4xi1> to vector<1x32x4xi32>
    %122 = arith.sitofp %121 : vector<1x32x4xi32> to vector<1x32x4xf32>
    %cst_35 = arith.constant dense<0.000000e+00> : vector<1x32xf32>
    %123 = vector.multi_reduction <add>, %122, %cst_35 [2] : vector<1x32x4xf32> to vector<1x32xf32>
    %124 = vector.shape_cast %123 : vector<1x32xf32> to vector<1x32x1xf32>
    %cst_36 = arith.constant dense<0.000000e+00> : vector<1x1xf32>
    %125 = vector.multi_reduction <add>, %124, %cst_36 [1] : vector<1x32x1xf32> to vector<1x1xf32>
    %126 = vector.shape_cast %125 : vector<1x1xf32> to vector<1x1x1xf32>
    %127 = arith.cmpf oge, %126, %55 : vector<1x1x1xf32>
    %128 = arith.select %127, %118, %116 : vector<1x1x1xi1>, vector<1x1x1xi32>
    %c16777216_i32 = arith.constant 16777216 : i32
    %129 = vector.broadcast %c16777216_i32 : i32 to vector<1x1x1xi32>
    %130 = arith.ori %128, %129 : vector<1x1x1xi32>
    %131 = vector.broadcast %130 : vector<1x1x1xi32> to vector<1x32x4xi32>
    %132 = arith.cmpi sge, %51, %131 : vector<1x32x4xi32>
    %133 = arith.extui %132 : vector<1x32x4xi1> to vector<1x32x4xi32>
    %134 = arith.sitofp %133 : vector<1x32x4xi32> to vector<1x32x4xf32>
    %cst_37 = arith.constant dense<0.000000e+00> : vector<1x32xf32>
    %135 = vector.multi_reduction <add>, %134, %cst_37 [2] : vector<1x32x4xf32> to vector<1x32xf32>
    %136 = vector.shape_cast %135 : vector<1x32xf32> to vector<1x32x1xf32>
    %cst_38 = arith.constant dense<0.000000e+00> : vector<1x1xf32>
    %137 = vector.multi_reduction <add>, %136, %cst_38 [1] : vector<1x32x1xf32> to vector<1x1xf32>
    %138 = vector.shape_cast %137 : vector<1x1xf32> to vector<1x1x1xf32>
    %139 = arith.cmpf oge, %138, %55 : vector<1x1x1xf32>
    %140 = arith.select %139, %130, %128 : vector<1x1x1xi1>, vector<1x1x1xi32>
    %c8388608_i32 = arith.constant 8388608 : i32
    %141 = vector.broadcast %c8388608_i32 : i32 to vector<1x1x1xi32>
    %142 = arith.ori %140, %141 : vector<1x1x1xi32>
    %143 = vector.broadcast %142 : vector<1x1x1xi32> to vector<1x32x4xi32>
    %144 = arith.cmpi sge, %51, %143 : vector<1x32x4xi32>
    %145 = arith.extui %144 : vector<1x32x4xi1> to vector<1x32x4xi32>
    %146 = arith.sitofp %145 : vector<1x32x4xi32> to vector<1x32x4xf32>
    %cst_39 = arith.constant dense<0.000000e+00> : vector<1x32xf32>
    %147 = vector.multi_reduction <add>, %146, %cst_39 [2] : vector<1x32x4xf32> to vector<1x32xf32>
    %148 = vector.shape_cast %147 : vector<1x32xf32> to vector<1x32x1xf32>
    %cst_40 = arith.constant dense<0.000000e+00> : vector<1x1xf32>
    %149 = vector.multi_reduction <add>, %148, %cst_40 [1] : vector<1x32x1xf32> to vector<1x1xf32>
    %150 = vector.shape_cast %149 : vector<1x1xf32> to vector<1x1x1xf32>
    %151 = arith.cmpf oge, %150, %55 : vector<1x1x1xf32>
    %152 = arith.select %151, %142, %140 : vector<1x1x1xi1>, vector<1x1x1xi32>
    %c4194304_i32 = arith.constant 4194304 : i32
    %153 = vector.broadcast %c4194304_i32 : i32 to vector<1x1x1xi32>
    %154 = arith.ori %152, %153 : vector<1x1x1xi32>
    %155 = vector.broadcast %154 : vector<1x1x1xi32> to vector<1x32x4xi32>
    %156 = arith.cmpi sge, %51, %155 : vector<1x32x4xi32>
    %157 = arith.extui %156 : vector<1x32x4xi1> to vector<1x32x4xi32>
    %158 = arith.sitofp %157 : vector<1x32x4xi32> to vector<1x32x4xf32>
    %cst_41 = arith.constant dense<0.000000e+00> : vector<1x32xf32>
    %159 = vector.multi_reduction <add>, %158, %cst_41 [2] : vector<1x32x4xf32> to vector<1x32xf32>
    %160 = vector.shape_cast %159 : vector<1x32xf32> to vector<1x32x1xf32>
    %cst_42 = arith.constant dense<0.000000e+00> : vector<1x1xf32>
    %161 = vector.multi_reduction <add>, %160, %cst_42 [1] : vector<1x32x1xf32> to vector<1x1xf32>
    %162 = vector.shape_cast %161 : vector<1x1xf32> to vector<1x1x1xf32>
    %163 = arith.cmpf oge, %162, %55 : vector<1x1x1xf32>
    %164 = arith.select %163, %154, %152 : vector<1x1x1xi1>, vector<1x1x1xi32>
    %c2097152_i32 = arith.constant 2097152 : i32
    %165 = vector.broadcast %c2097152_i32 : i32 to vector<1x1x1xi32>
    %166 = arith.ori %164, %165 : vector<1x1x1xi32>
    %167 = vector.broadcast %166 : vector<1x1x1xi32> to vector<1x32x4xi32>
    %168 = arith.cmpi sge, %51, %167 : vector<1x32x4xi32>
    %169 = arith.extui %168 : vector<1x32x4xi1> to vector<1x32x4xi32>
    %170 = arith.sitofp %169 : vector<1x32x4xi32> to vector<1x32x4xf32>
    %cst_43 = arith.constant dense<0.000000e+00> : vector<1x32xf32>
    %171 = vector.multi_reduction <add>, %170, %cst_43 [2] : vector<1x32x4xf32> to vector<1x32xf32>
    %172 = vector.shape_cast %171 : vector<1x32xf32> to vector<1x32x1xf32>
    %cst_44 = arith.constant dense<0.000000e+00> : vector<1x1xf32>
    %173 = vector.multi_reduction <add>, %172, %cst_44 [1] : vector<1x32x1xf32> to vector<1x1xf32>
    %174 = vector.shape_cast %173 : vector<1x1xf32> to vector<1x1x1xf32>
    %175 = arith.cmpf oge, %174, %55 : vector<1x1x1xf32>
    %176 = arith.select %175, %166, %164 : vector<1x1x1xi1>, vector<1x1x1xi32>
    %c1048576_i32 = arith.constant 1048576 : i32
    %177 = vector.broadcast %c1048576_i32 : i32 to vector<1x1x1xi32>
    %178 = arith.ori %176, %177 : vector<1x1x1xi32>
    %179 = vector.broadcast %178 : vector<1x1x1xi32> to vector<1x32x4xi32>
    %180 = arith.cmpi sge, %51, %179 : vector<1x32x4xi32>
    %181 = arith.extui %180 : vector<1x32x4xi1> to vector<1x32x4xi32>
    %182 = arith.sitofp %181 : vector<1x32x4xi32> to vector<1x32x4xf32>
    %cst_45 = arith.constant dense<0.000000e+00> : vector<1x32xf32>
    %183 = vector.multi_reduction <add>, %182, %cst_45 [2] : vector<1x32x4xf32> to vector<1x32xf32>
    %184 = vector.shape_cast %183 : vector<1x32xf32> to vector<1x32x1xf32>
    %cst_46 = arith.constant dense<0.000000e+00> : vector<1x1xf32>
    %185 = vector.multi_reduction <add>, %184, %cst_46 [1] : vector<1x32x1xf32> to vector<1x1xf32>
    %186 = vector.shape_cast %185 : vector<1x1xf32> to vector<1x1x1xf32>
    %187 = arith.cmpf oge, %186, %55 : vector<1x1x1xf32>
    %188 = arith.select %187, %178, %176 : vector<1x1x1xi1>, vector<1x1x1xi32>
    %c524288_i32 = arith.constant 524288 : i32
    %189 = vector.broadcast %c524288_i32 : i32 to vector<1x1x1xi32>
    %190 = arith.ori %188, %189 : vector<1x1x1xi32>
    %191 = vector.broadcast %190 : vector<1x1x1xi32> to vector<1x32x4xi32>
    %192 = arith.cmpi sge, %51, %191 : vector<1x32x4xi32>
    %193 = arith.extui %192 : vector<1x32x4xi1> to vector<1x32x4xi32>
    %194 = arith.sitofp %193 : vector<1x32x4xi32> to vector<1x32x4xf32>
    %cst_47 = arith.constant dense<0.000000e+00> : vector<1x32xf32>
    %195 = vector.multi_reduction <add>, %194, %cst_47 [2] : vector<1x32x4xf32> to vector<1x32xf32>
    %196 = vector.shape_cast %195 : vector<1x32xf32> to vector<1x32x1xf32>
    %cst_48 = arith.constant dense<0.000000e+00> : vector<1x1xf32>
    %197 = vector.multi_reduction <add>, %196, %cst_48 [1] : vector<1x32x1xf32> to vector<1x1xf32>
    %198 = vector.shape_cast %197 : vector<1x1xf32> to vector<1x1x1xf32>
    %199 = arith.cmpf oge, %198, %55 : vector<1x1x1xf32>
    %200 = arith.select %199, %190, %188 : vector<1x1x1xi1>, vector<1x1x1xi32>
    %c262144_i32 = arith.constant 262144 : i32
    %201 = vector.broadcast %c262144_i32 : i32 to vector<1x1x1xi32>
    %202 = arith.ori %200, %201 : vector<1x1x1xi32>
    %203 = vector.broadcast %202 : vector<1x1x1xi32> to vector<1x32x4xi32>
    %204 = arith.cmpi sge, %51, %203 : vector<1x32x4xi32>
    %205 = arith.extui %204 : vector<1x32x4xi1> to vector<1x32x4xi32>
    %206 = arith.sitofp %205 : vector<1x32x4xi32> to vector<1x32x4xf32>
    %cst_49 = arith.constant dense<0.000000e+00> : vector<1x32xf32>
    %207 = vector.multi_reduction <add>, %206, %cst_49 [2] : vector<1x32x4xf32> to vector<1x32xf32>
    %208 = vector.shape_cast %207 : vector<1x32xf32> to vector<1x32x1xf32>
    %cst_50 = arith.constant dense<0.000000e+00> : vector<1x1xf32>
    %209 = vector.multi_reduction <add>, %208, %cst_50 [1] : vector<1x32x1xf32> to vector<1x1xf32>
    %210 = vector.shape_cast %209 : vector<1x1xf32> to vector<1x1x1xf32>
    %211 = arith.cmpf oge, %210, %55 : vector<1x1x1xf32>
    %212 = arith.select %211, %202, %200 : vector<1x1x1xi1>, vector<1x1x1xi32>
    %c131072_i32 = arith.constant 131072 : i32
    %213 = vector.broadcast %c131072_i32 : i32 to vector<1x1x1xi32>
    %214 = arith.ori %212, %213 : vector<1x1x1xi32>
    %215 = vector.broadcast %214 : vector<1x1x1xi32> to vector<1x32x4xi32>
    %216 = arith.cmpi sge, %51, %215 : vector<1x32x4xi32>
    %217 = arith.extui %216 : vector<1x32x4xi1> to vector<1x32x4xi32>
    %218 = arith.sitofp %217 : vector<1x32x4xi32> to vector<1x32x4xf32>
    %cst_51 = arith.constant dense<0.000000e+00> : vector<1x32xf32>
    %219 = vector.multi_reduction <add>, %218, %cst_51 [2] : vector<1x32x4xf32> to vector<1x32xf32>
    %220 = vector.shape_cast %219 : vector<1x32xf32> to vector<1x32x1xf32>
    %cst_52 = arith.constant dense<0.000000e+00> : vector<1x1xf32>
    %221 = vector.multi_reduction <add>, %220, %cst_52 [1] : vector<1x32x1xf32> to vector<1x1xf32>
    %222 = vector.shape_cast %221 : vector<1x1xf32> to vector<1x1x1xf32>
    %223 = arith.cmpf oge, %222, %55 : vector<1x1x1xf32>
    %224 = arith.select %223, %214, %212 : vector<1x1x1xi1>, vector<1x1x1xi32>
    %c65536_i32 = arith.constant 65536 : i32
    %225 = vector.broadcast %c65536_i32 : i32 to vector<1x1x1xi32>
    %226 = arith.ori %224, %225 : vector<1x1x1xi32>
    %227 = vector.broadcast %226 : vector<1x1x1xi32> to vector<1x32x4xi32>
    %228 = arith.cmpi sge, %51, %227 : vector<1x32x4xi32>
    %229 = arith.extui %228 : vector<1x32x4xi1> to vector<1x32x4xi32>
    %230 = arith.sitofp %229 : vector<1x32x4xi32> to vector<1x32x4xf32>
    %cst_53 = arith.constant dense<0.000000e+00> : vector<1x32xf32>
    %231 = vector.multi_reduction <add>, %230, %cst_53 [2] : vector<1x32x4xf32> to vector<1x32xf32>
    %232 = vector.shape_cast %231 : vector<1x32xf32> to vector<1x32x1xf32>
    %cst_54 = arith.constant dense<0.000000e+00> : vector<1x1xf32>
    %233 = vector.multi_reduction <add>, %232, %cst_54 [1] : vector<1x32x1xf32> to vector<1x1xf32>
    %234 = vector.shape_cast %233 : vector<1x1xf32> to vector<1x1x1xf32>
    %235 = arith.cmpf oge, %234, %55 : vector<1x1x1xf32>
    %236 = arith.select %235, %226, %224 : vector<1x1x1xi1>, vector<1x1x1xi32>
    %c32768_i32 = arith.constant 32768 : i32
    %237 = vector.broadcast %c32768_i32 : i32 to vector<1x1x1xi32>
    %238 = arith.ori %236, %237 : vector<1x1x1xi32>
    %239 = vector.broadcast %238 : vector<1x1x1xi32> to vector<1x32x4xi32>
    %240 = arith.cmpi sge, %51, %239 : vector<1x32x4xi32>
    %241 = arith.extui %240 : vector<1x32x4xi1> to vector<1x32x4xi32>
    %242 = arith.sitofp %241 : vector<1x32x4xi32> to vector<1x32x4xf32>
    %cst_55 = arith.constant dense<0.000000e+00> : vector<1x32xf32>
    %243 = vector.multi_reduction <add>, %242, %cst_55 [2] : vector<1x32x4xf32> to vector<1x32xf32>
    %244 = vector.shape_cast %243 : vector<1x32xf32> to vector<1x32x1xf32>
    %cst_56 = arith.constant dense<0.000000e+00> : vector<1x1xf32>
    %245 = vector.multi_reduction <add>, %244, %cst_56 [1] : vector<1x32x1xf32> to vector<1x1xf32>
    %246 = vector.shape_cast %245 : vector<1x1xf32> to vector<1x1x1xf32>
    %247 = arith.cmpf oge, %246, %55 : vector<1x1x1xf32>
    %248 = arith.select %247, %238, %236 : vector<1x1x1xi1>, vector<1x1x1xi32>
    %c16384_i32 = arith.constant 16384 : i32
    %249 = vector.broadcast %c16384_i32 : i32 to vector<1x1x1xi32>
    %250 = arith.ori %248, %249 : vector<1x1x1xi32>
    %251 = vector.broadcast %250 : vector<1x1x1xi32> to vector<1x32x4xi32>
    %252 = arith.cmpi sge, %51, %251 : vector<1x32x4xi32>
    %253 = arith.extui %252 : vector<1x32x4xi1> to vector<1x32x4xi32>
    %254 = arith.sitofp %253 : vector<1x32x4xi32> to vector<1x32x4xf32>
    %cst_57 = arith.constant dense<0.000000e+00> : vector<1x32xf32>
    %255 = vector.multi_reduction <add>, %254, %cst_57 [2] : vector<1x32x4xf32> to vector<1x32xf32>
    %256 = vector.shape_cast %255 : vector<1x32xf32> to vector<1x32x1xf32>
    %cst_58 = arith.constant dense<0.000000e+00> : vector<1x1xf32>
    %257 = vector.multi_reduction <add>, %256, %cst_58 [1] : vector<1x32x1xf32> to vector<1x1xf32>
    %258 = vector.shape_cast %257 : vector<1x1xf32> to vector<1x1x1xf32>
    %259 = arith.cmpf oge, %258, %55 : vector<1x1x1xf32>
    %260 = arith.select %259, %250, %248 : vector<1x1x1xi1>, vector<1x1x1xi32>
    %c8192_i32 = arith.constant 8192 : i32
    %261 = vector.broadcast %c8192_i32 : i32 to vector<1x1x1xi32>
    %262 = arith.ori %260, %261 : vector<1x1x1xi32>
    %263 = vector.broadcast %262 : vector<1x1x1xi32> to vector<1x32x4xi32>
    %264 = arith.cmpi sge, %51, %263 : vector<1x32x4xi32>
    %265 = arith.extui %264 : vector<1x32x4xi1> to vector<1x32x4xi32>
    %266 = arith.sitofp %265 : vector<1x32x4xi32> to vector<1x32x4xf32>
    %cst_59 = arith.constant dense<0.000000e+00> : vector<1x32xf32>
    %267 = vector.multi_reduction <add>, %266, %cst_59 [2] : vector<1x32x4xf32> to vector<1x32xf32>
    %268 = vector.shape_cast %267 : vector<1x32xf32> to vector<1x32x1xf32>
    %cst_60 = arith.constant dense<0.000000e+00> : vector<1x1xf32>
    %269 = vector.multi_reduction <add>, %268, %cst_60 [1] : vector<1x32x1xf32> to vector<1x1xf32>
    %270 = vector.shape_cast %269 : vector<1x1xf32> to vector<1x1x1xf32>
    %271 = arith.cmpf oge, %270, %55 : vector<1x1x1xf32>
    %272 = arith.select %271, %262, %260 : vector<1x1x1xi1>, vector<1x1x1xi32>
    %c4096_i32 = arith.constant 4096 : i32
    %273 = vector.broadcast %c4096_i32 : i32 to vector<1x1x1xi32>
    %274 = arith.ori %272, %273 : vector<1x1x1xi32>
    %275 = vector.broadcast %274 : vector<1x1x1xi32> to vector<1x32x4xi32>
    %276 = arith.cmpi sge, %51, %275 : vector<1x32x4xi32>
    %277 = arith.extui %276 : vector<1x32x4xi1> to vector<1x32x4xi32>
    %278 = arith.sitofp %277 : vector<1x32x4xi32> to vector<1x32x4xf32>
    %cst_61 = arith.constant dense<0.000000e+00> : vector<1x32xf32>
    %279 = vector.multi_reduction <add>, %278, %cst_61 [2] : vector<1x32x4xf32> to vector<1x32xf32>
    %280 = vector.shape_cast %279 : vector<1x32xf32> to vector<1x32x1xf32>
    %cst_62 = arith.constant dense<0.000000e+00> : vector<1x1xf32>
    %281 = vector.multi_reduction <add>, %280, %cst_62 [1] : vector<1x32x1xf32> to vector<1x1xf32>
    %282 = vector.shape_cast %281 : vector<1x1xf32> to vector<1x1x1xf32>
    %283 = arith.cmpf oge, %282, %55 : vector<1x1x1xf32>
    %284 = arith.select %283, %274, %272 : vector<1x1x1xi1>, vector<1x1x1xi32>
    %c2048_i32 = arith.constant 2048 : i32
    %285 = vector.broadcast %c2048_i32 : i32 to vector<1x1x1xi32>
    %286 = arith.ori %284, %285 : vector<1x1x1xi32>
    %287 = vector.broadcast %286 : vector<1x1x1xi32> to vector<1x32x4xi32>
    %288 = arith.cmpi sge, %51, %287 : vector<1x32x4xi32>
    %289 = arith.extui %288 : vector<1x32x4xi1> to vector<1x32x4xi32>
    %290 = arith.sitofp %289 : vector<1x32x4xi32> to vector<1x32x4xf32>
    %cst_63 = arith.constant dense<0.000000e+00> : vector<1x32xf32>
    %291 = vector.multi_reduction <add>, %290, %cst_63 [2] : vector<1x32x4xf32> to vector<1x32xf32>
    %292 = vector.shape_cast %291 : vector<1x32xf32> to vector<1x32x1xf32>
    %cst_64 = arith.constant dense<0.000000e+00> : vector<1x1xf32>
    %293 = vector.multi_reduction <add>, %292, %cst_64 [1] : vector<1x32x1xf32> to vector<1x1xf32>
    %294 = vector.shape_cast %293 : vector<1x1xf32> to vector<1x1x1xf32>
    %295 = arith.cmpf oge, %294, %55 : vector<1x1x1xf32>
    %296 = arith.select %295, %286, %284 : vector<1x1x1xi1>, vector<1x1x1xi32>
    %c1024_i32 = arith.constant 1024 : i32
    %297 = vector.broadcast %c1024_i32 : i32 to vector<1x1x1xi32>
    %298 = arith.ori %296, %297 : vector<1x1x1xi32>
    %299 = vector.broadcast %298 : vector<1x1x1xi32> to vector<1x32x4xi32>
    %300 = arith.cmpi sge, %51, %299 : vector<1x32x4xi32>
    %301 = arith.extui %300 : vector<1x32x4xi1> to vector<1x32x4xi32>
    %302 = arith.sitofp %301 : vector<1x32x4xi32> to vector<1x32x4xf32>
    %cst_65 = arith.constant dense<0.000000e+00> : vector<1x32xf32>
    %303 = vector.multi_reduction <add>, %302, %cst_65 [2] : vector<1x32x4xf32> to vector<1x32xf32>
    %304 = vector.shape_cast %303 : vector<1x32xf32> to vector<1x32x1xf32>
    %cst_66 = arith.constant dense<0.000000e+00> : vector<1x1xf32>
    %305 = vector.multi_reduction <add>, %304, %cst_66 [1] : vector<1x32x1xf32> to vector<1x1xf32>
    %306 = vector.shape_cast %305 : vector<1x1xf32> to vector<1x1x1xf32>
    %307 = arith.cmpf oge, %306, %55 : vector<1x1x1xf32>
    %308 = arith.select %307, %298, %296 : vector<1x1x1xi1>, vector<1x1x1xi32>
    %c512_i32 = arith.constant 512 : i32
    %309 = vector.broadcast %c512_i32 : i32 to vector<1x1x1xi32>
    %310 = arith.ori %308, %309 : vector<1x1x1xi32>
    %311 = vector.broadcast %310 : vector<1x1x1xi32> to vector<1x32x4xi32>
    %312 = arith.cmpi sge, %51, %311 : vector<1x32x4xi32>
    %313 = arith.extui %312 : vector<1x32x4xi1> to vector<1x32x4xi32>
    %314 = arith.sitofp %313 : vector<1x32x4xi32> to vector<1x32x4xf32>
    %cst_67 = arith.constant dense<0.000000e+00> : vector<1x32xf32>
    %315 = vector.multi_reduction <add>, %314, %cst_67 [2] : vector<1x32x4xf32> to vector<1x32xf32>
    %316 = vector.shape_cast %315 : vector<1x32xf32> to vector<1x32x1xf32>
    %cst_68 = arith.constant dense<0.000000e+00> : vector<1x1xf32>
    %317 = vector.multi_reduction <add>, %316, %cst_68 [1] : vector<1x32x1xf32> to vector<1x1xf32>
    %318 = vector.shape_cast %317 : vector<1x1xf32> to vector<1x1x1xf32>
    %319 = arith.cmpf oge, %318, %55 : vector<1x1x1xf32>
    %320 = arith.select %319, %310, %308 : vector<1x1x1xi1>, vector<1x1x1xi32>
    %c256_i32 = arith.constant 256 : i32
    %321 = vector.broadcast %c256_i32 : i32 to vector<1x1x1xi32>
    %322 = arith.ori %320, %321 : vector<1x1x1xi32>
    %323 = vector.broadcast %322 : vector<1x1x1xi32> to vector<1x32x4xi32>
    %324 = arith.cmpi sge, %51, %323 : vector<1x32x4xi32>
    %325 = arith.extui %324 : vector<1x32x4xi1> to vector<1x32x4xi32>
    %326 = arith.sitofp %325 : vector<1x32x4xi32> to vector<1x32x4xf32>
    %cst_69 = arith.constant dense<0.000000e+00> : vector<1x32xf32>
    %327 = vector.multi_reduction <add>, %326, %cst_69 [2] : vector<1x32x4xf32> to vector<1x32xf32>
    %328 = vector.shape_cast %327 : vector<1x32xf32> to vector<1x32x1xf32>
    %cst_70 = arith.constant dense<0.000000e+00> : vector<1x1xf32>
    %329 = vector.multi_reduction <add>, %328, %cst_70 [1] : vector<1x32x1xf32> to vector<1x1xf32>
    %330 = vector.shape_cast %329 : vector<1x1xf32> to vector<1x1x1xf32>
    %331 = arith.cmpf oge, %330, %55 : vector<1x1x1xf32>
    %332 = arith.select %331, %322, %320 : vector<1x1x1xi1>, vector<1x1x1xi32>
    %c128_i32 = arith.constant 128 : i32
    %333 = vector.broadcast %c128_i32 : i32 to vector<1x1x1xi32>
    %334 = arith.ori %332, %333 : vector<1x1x1xi32>
    %335 = vector.broadcast %334 : vector<1x1x1xi32> to vector<1x32x4xi32>
    %336 = arith.cmpi sge, %51, %335 : vector<1x32x4xi32>
    %337 = arith.extui %336 : vector<1x32x4xi1> to vector<1x32x4xi32>
    %338 = arith.sitofp %337 : vector<1x32x4xi32> to vector<1x32x4xf32>
    %cst_71 = arith.constant dense<0.000000e+00> : vector<1x32xf32>
    %339 = vector.multi_reduction <add>, %338, %cst_71 [2] : vector<1x32x4xf32> to vector<1x32xf32>
    %340 = vector.shape_cast %339 : vector<1x32xf32> to vector<1x32x1xf32>
    %cst_72 = arith.constant dense<0.000000e+00> : vector<1x1xf32>
    %341 = vector.multi_reduction <add>, %340, %cst_72 [1] : vector<1x32x1xf32> to vector<1x1xf32>
    %342 = vector.shape_cast %341 : vector<1x1xf32> to vector<1x1x1xf32>
    %343 = arith.cmpf oge, %342, %55 : vector<1x1x1xf32>
    %344 = arith.select %343, %334, %332 : vector<1x1x1xi1>, vector<1x1x1xi32>
    %c64_i32 = arith.constant 64 : i32
    %345 = vector.broadcast %c64_i32 : i32 to vector<1x1x1xi32>
    %346 = arith.ori %344, %345 : vector<1x1x1xi32>
    %347 = vector.broadcast %346 : vector<1x1x1xi32> to vector<1x32x4xi32>
    %348 = arith.cmpi sge, %51, %347 : vector<1x32x4xi32>
    %349 = arith.extui %348 : vector<1x32x4xi1> to vector<1x32x4xi32>
    %350 = arith.sitofp %349 : vector<1x32x4xi32> to vector<1x32x4xf32>
    %cst_73 = arith.constant dense<0.000000e+00> : vector<1x32xf32>
    %351 = vector.multi_reduction <add>, %350, %cst_73 [2] : vector<1x32x4xf32> to vector<1x32xf32>
    %352 = vector.shape_cast %351 : vector<1x32xf32> to vector<1x32x1xf32>
    %cst_74 = arith.constant dense<0.000000e+00> : vector<1x1xf32>
    %353 = vector.multi_reduction <add>, %352, %cst_74 [1] : vector<1x32x1xf32> to vector<1x1xf32>
    %354 = vector.shape_cast %353 : vector<1x1xf32> to vector<1x1x1xf32>
    %355 = arith.cmpf oge, %354, %55 : vector<1x1x1xf32>
    %356 = arith.select %355, %346, %344 : vector<1x1x1xi1>, vector<1x1x1xi32>
    %c32_i32 = arith.constant 32 : i32
    %357 = vector.broadcast %c32_i32 : i32 to vector<1x1x1xi32>
    %358 = arith.ori %356, %357 : vector<1x1x1xi32>
    %359 = vector.broadcast %358 : vector<1x1x1xi32> to vector<1x32x4xi32>
    %360 = arith.cmpi sge, %51, %359 : vector<1x32x4xi32>
    %361 = arith.extui %360 : vector<1x32x4xi1> to vector<1x32x4xi32>
    %362 = arith.sitofp %361 : vector<1x32x4xi32> to vector<1x32x4xf32>
    %cst_75 = arith.constant dense<0.000000e+00> : vector<1x32xf32>
    %363 = vector.multi_reduction <add>, %362, %cst_75 [2] : vector<1x32x4xf32> to vector<1x32xf32>
    %364 = vector.shape_cast %363 : vector<1x32xf32> to vector<1x32x1xf32>
    %cst_76 = arith.constant dense<0.000000e+00> : vector<1x1xf32>
    %365 = vector.multi_reduction <add>, %364, %cst_76 [1] : vector<1x32x1xf32> to vector<1x1xf32>
    %366 = vector.shape_cast %365 : vector<1x1xf32> to vector<1x1x1xf32>
    %367 = arith.cmpf oge, %366, %55 : vector<1x1x1xf32>
    %368 = arith.select %367, %358, %356 : vector<1x1x1xi1>, vector<1x1x1xi32>
    %c16_i32 = arith.constant 16 : i32
    %369 = vector.broadcast %c16_i32 : i32 to vector<1x1x1xi32>
    %370 = arith.ori %368, %369 : vector<1x1x1xi32>
    %371 = vector.broadcast %370 : vector<1x1x1xi32> to vector<1x32x4xi32>
    %372 = arith.cmpi sge, %51, %371 : vector<1x32x4xi32>
    %373 = arith.extui %372 : vector<1x32x4xi1> to vector<1x32x4xi32>
    %374 = arith.sitofp %373 : vector<1x32x4xi32> to vector<1x32x4xf32>
    %cst_77 = arith.constant dense<0.000000e+00> : vector<1x32xf32>
    %375 = vector.multi_reduction <add>, %374, %cst_77 [2] : vector<1x32x4xf32> to vector<1x32xf32>
    %376 = vector.shape_cast %375 : vector<1x32xf32> to vector<1x32x1xf32>
    %cst_78 = arith.constant dense<0.000000e+00> : vector<1x1xf32>
    %377 = vector.multi_reduction <add>, %376, %cst_78 [1] : vector<1x32x1xf32> to vector<1x1xf32>
    %378 = vector.shape_cast %377 : vector<1x1xf32> to vector<1x1x1xf32>
    %379 = arith.cmpf oge, %378, %55 : vector<1x1x1xf32>
    %380 = arith.select %379, %370, %368 : vector<1x1x1xi1>, vector<1x1x1xi32>
    %c8_i32 = arith.constant 8 : i32
    %381 = vector.broadcast %c8_i32 : i32 to vector<1x1x1xi32>
    %382 = arith.ori %380, %381 : vector<1x1x1xi32>
    %383 = vector.broadcast %382 : vector<1x1x1xi32> to vector<1x32x4xi32>
    %384 = arith.cmpi sge, %51, %383 : vector<1x32x4xi32>
    %385 = arith.extui %384 : vector<1x32x4xi1> to vector<1x32x4xi32>
    %386 = arith.sitofp %385 : vector<1x32x4xi32> to vector<1x32x4xf32>
    %cst_79 = arith.constant dense<0.000000e+00> : vector<1x32xf32>
    %387 = vector.multi_reduction <add>, %386, %cst_79 [2] : vector<1x32x4xf32> to vector<1x32xf32>
    %388 = vector.shape_cast %387 : vector<1x32xf32> to vector<1x32x1xf32>
    %cst_80 = arith.constant dense<0.000000e+00> : vector<1x1xf32>
    %389 = vector.multi_reduction <add>, %388, %cst_80 [1] : vector<1x32x1xf32> to vector<1x1xf32>
    %390 = vector.shape_cast %389 : vector<1x1xf32> to vector<1x1x1xf32>
    %391 = arith.cmpf oge, %390, %55 : vector<1x1x1xf32>
    %392 = arith.select %391, %382, %380 : vector<1x1x1xi1>, vector<1x1x1xi32>
    %c4_i32 = arith.constant 4 : i32
    %393 = vector.broadcast %c4_i32 : i32 to vector<1x1x1xi32>
    %394 = arith.ori %392, %393 : vector<1x1x1xi32>
    %395 = vector.broadcast %394 : vector<1x1x1xi32> to vector<1x32x4xi32>
    %396 = arith.cmpi sge, %51, %395 : vector<1x32x4xi32>
    %397 = arith.extui %396 : vector<1x32x4xi1> to vector<1x32x4xi32>
    %398 = arith.sitofp %397 : vector<1x32x4xi32> to vector<1x32x4xf32>
    %cst_81 = arith.constant dense<0.000000e+00> : vector<1x32xf32>
    %399 = vector.multi_reduction <add>, %398, %cst_81 [2] : vector<1x32x4xf32> to vector<1x32xf32>
    %400 = vector.shape_cast %399 : vector<1x32xf32> to vector<1x32x1xf32>
    %cst_82 = arith.constant dense<0.000000e+00> : vector<1x1xf32>
    %401 = vector.multi_reduction <add>, %400, %cst_82 [1] : vector<1x32x1xf32> to vector<1x1xf32>
    %402 = vector.shape_cast %401 : vector<1x1xf32> to vector<1x1x1xf32>
    %403 = arith.cmpf oge, %402, %55 : vector<1x1x1xf32>
    %404 = arith.select %403, %394, %392 : vector<1x1x1xi1>, vector<1x1x1xi32>
    %c2_i32 = arith.constant 2 : i32
    %405 = vector.broadcast %c2_i32 : i32 to vector<1x1x1xi32>
    %406 = arith.ori %404, %405 : vector<1x1x1xi32>
    %407 = vector.broadcast %406 : vector<1x1x1xi32> to vector<1x32x4xi32>
    %408 = arith.cmpi sge, %51, %407 : vector<1x32x4xi32>
    %409 = arith.extui %408 : vector<1x32x4xi1> to vector<1x32x4xi32>
    %410 = arith.sitofp %409 : vector<1x32x4xi32> to vector<1x32x4xf32>
    %cst_83 = arith.constant dense<0.000000e+00> : vector<1x32xf32>
    %411 = vector.multi_reduction <add>, %410, %cst_83 [2] : vector<1x32x4xf32> to vector<1x32xf32>
    %412 = vector.shape_cast %411 : vector<1x32xf32> to vector<1x32x1xf32>
    %cst_84 = arith.constant dense<0.000000e+00> : vector<1x1xf32>
    %413 = vector.multi_reduction <add>, %412, %cst_84 [1] : vector<1x32x1xf32> to vector<1x1xf32>
    %414 = vector.shape_cast %413 : vector<1x1xf32> to vector<1x1x1xf32>
    %415 = arith.cmpf oge, %414, %55 : vector<1x1x1xf32>
    %416 = arith.select %415, %406, %404 : vector<1x1x1xi1>, vector<1x1x1xi32>
    %c1_i32_85 = arith.constant 1 : i32
    %417 = vector.broadcast %c1_i32_85 : i32 to vector<1x1x1xi32>
    %418 = arith.ori %416, %417 : vector<1x1x1xi32>
    %419 = vector.broadcast %418 : vector<1x1x1xi32> to vector<1x32x4xi32>
    %420 = arith.cmpi sge, %51, %419 : vector<1x32x4xi32>
    %421 = arith.extui %420 : vector<1x32x4xi1> to vector<1x32x4xi32>
    %422 = arith.sitofp %421 : vector<1x32x4xi32> to vector<1x32x4xf32>
    %cst_86 = arith.constant dense<0.000000e+00> : vector<1x32xf32>
    %423 = vector.multi_reduction <add>, %422, %cst_86 [2] : vector<1x32x4xf32> to vector<1x32xf32>
    %424 = vector.shape_cast %423 : vector<1x32xf32> to vector<1x32x1xf32>
    %cst_87 = arith.constant dense<0.000000e+00> : vector<1x1xf32>
    %425 = vector.multi_reduction <add>, %424, %cst_87 [1] : vector<1x32x1xf32> to vector<1x1xf32>
    %426 = vector.shape_cast %425 : vector<1x1xf32> to vector<1x1x1xf32>
    %427 = arith.cmpf oge, %426, %55 : vector<1x1x1xf32>
    %428 = arith.select %427, %418, %416 : vector<1x1x1xi1>, vector<1x1x1xi32>
    %429 = vector.broadcast %428 : vector<1x1x1xi32> to vector<1x32x4xi32>
    %430 = arith.cmpi sgt, %51, %429 : vector<1x32x4xi32>
    %431 = arith.extui %430 : vector<1x32x4xi1> to vector<1x32x4xi32>
    %432 = arith.sitofp %431 : vector<1x32x4xi32> to vector<1x32x4xf32>
    %cst_88 = arith.constant dense<0.000000e+00> : vector<1x32xf32>
    %433 = vector.multi_reduction <add>, %432, %cst_88 [2] : vector<1x32x4xf32> to vector<1x32xf32>
    %434 = vector.shape_cast %433 : vector<1x32xf32> to vector<1x32x1xf32>
    %cst_89 = arith.constant dense<0.000000e+00> : vector<1x1xf32>
    %435 = vector.multi_reduction <add>, %434, %cst_89 [1] : vector<1x32x1xf32> to vector<1x1xf32>
    %436 = vector.shape_cast %435 : vector<1x1xf32> to vector<1x1x1xf32>
    %cst_90 = arith.constant 0.000000e+00 : f32
    %437 = vector.broadcast %cst_90 : f32 to vector<1x32x4xf32>
    %438 = arith.select %430, %50, %437 : vector<1x32x4xi1>, vector<1x32x4xf32>
    %cst_91 = arith.constant dense<0.000000e+00> : vector<1x32xf32>
    %439 = vector.multi_reduction <add>, %438, %cst_91 [2] : vector<1x32x4xf32> to vector<1x32xf32>
    %440 = vector.shape_cast %439 : vector<1x32xf32> to vector<1x32x1xf32>
    %cst_92 = arith.constant dense<0.000000e+00> : vector<1x1xf32>
    %441 = vector.multi_reduction <add>, %440, %cst_92 [1] : vector<1x32x1xf32> to vector<1x1xf32>
    %442 = vector.shape_cast %441 : vector<1x1xf32> to vector<1x1x1xf32>
    %443 = arith.subf %55, %436 : vector<1x1x1xf32>
    %cst_93 = arith.constant 0.000000e+00 : f32
    %444 = vector.broadcast %cst_93 : f32 to vector<1x1x1xf32>
    %445 = arith.maximumf %443, %444 : vector<1x1x1xf32>
    %446 = vector.broadcast %428 : vector<1x1x1xi32> to vector<1x32x4xi32>
    %447 = arith.cmpi sle, %51, %446 : vector<1x32x4xi32>
    %cst_94 = arith.constant 0xFF800000 : f32
    %448 = vector.broadcast %cst_94 : f32 to vector<1x32x4xf32>
    %449 = arith.select %447, %50, %448 : vector<1x32x4xi1>, vector<1x32x4xf32>
    %cst_95 = arith.constant dense<0xFF800000> : vector<1x32xf32>
    %450 = vector.multi_reduction <maximumf>, %449, %cst_95 [2] : vector<1x32x4xf32> to vector<1x32xf32>
    %451 = vector.shape_cast %450 : vector<1x32xf32> to vector<1x32x1xf32>
    %cst_96 = arith.constant dense<0xFF800000> : vector<1x1xf32>
    %452 = vector.multi_reduction <maximumf>, %451, %cst_96 [1] : vector<1x32x1xf32> to vector<1x1xf32>
    %453 = vector.shape_cast %452 : vector<1x1xf32> to vector<1x1x1xf32>
    %cst_97 = arith.constant 5.000000e-01 : f32
    %454 = vector.broadcast %cst_97 : f32 to vector<1x1x1xf32>
    %455 = arith.cmpf ogt, %445, %454 : vector<1x1x1xf32>
    %456 = arith.mulf %445, %453 : vector<1x1x1xf32>
    %cst_98 = arith.constant 0.000000e+00 : f32
    %457 = vector.broadcast %cst_98 : f32 to vector<1x1x1xf32>
    %458 = arith.select %455, %456, %457 : vector<1x1x1xi1>, vector<1x1x1xf32>
    %cst_99 = arith.constant 0.000000e+00 : f32
    %459 = vector.broadcast %cst_99 : f32 to vector<1x32x4xf32>
    %460 = arith.select %34, %48, %459 : vector<1x32x4xi1>, vector<1x32x4xf32>
    %cst_100 = arith.constant dense<0.000000e+00> : vector<1x32xf32>
    %461 = vector.multi_reduction <add>, %460, %cst_100 [2] : vector<1x32x4xf32> to vector<1x32xf32>
    %462 = vector.shape_cast %461 : vector<1x32xf32> to vector<1x32x1xf32>
    %cst_101 = arith.constant dense<0.000000e+00> : vector<1x1xf32>
    %463 = vector.multi_reduction <add>, %462, %cst_101 [1] : vector<1x32x1xf32> to vector<1x1xf32>
    %464 = vector.shape_cast %463 : vector<1x1xf32> to vector<1x1x1xf32>
    %465 = arith.addf %464, %442 : vector<1x1x1xf32>
    %466 = arith.addf %465, %458 : vector<1x1x1xf32>
    %467 = arith.addf %8, %436 : vector<1x1x1xf32>
    %468 = arith.addf %467, %445 : vector<1x1x1xf32>
    %cst_102 = arith.constant dense<0xFF800000> : vector<1x32xf32>
    %469 = vector.multi_reduction <maximumf>, %29, %cst_102 [2] : vector<1x32x4xf32> to vector<1x32xf32>
    %470 = vector.shape_cast %469 : vector<1x32xf32> to vector<1x32x1xf32>
    %cst_103 = arith.constant 0xFF800000 : f32
    %471 = vector.broadcast %cst_103 : f32 to vector<1x32x4xf32>
    %472 = arith.select %34, %29, %471 : vector<1x32x4xi1>, vector<1x32x4xf32>
    %cst_104 = arith.constant dense<0xFF800000> : vector<1x32xf32>
    %473 = vector.multi_reduction <maximumf>, %472, %cst_104 [2] : vector<1x32x4xf32> to vector<1x32xf32>
    %474 = vector.shape_cast %473 : vector<1x32xf32> to vector<1x32x1xf32>
    %cst_105 = arith.constant 0.000000e+00 : f32
    %475 = vector.broadcast %cst_105 : f32 to vector<1x32x1xf32>
    %476 = arith.cmpf ogt, %470, %475 : vector<1x32x1xf32>
    %477 = arith.cmpf oge, %474, %470 : vector<1x32x1xf32>
    %478 = arith.andi %476, %477 : vector<1x32x1xi1>
    %479 = arith.extui %478 : vector<1x32x1xi1> to vector<1x32x1xi32>
    %480 = arith.sitofp %479 : vector<1x32x1xi32> to vector<1x32x1xf32>
    %cst_106 = arith.constant dense<0.000000e+00> : vector<1x1xf32>
    %481 = vector.multi_reduction <add>, %480, %cst_106 [1] : vector<1x32x1xf32> to vector<1x1xf32>
    %482 = vector.shape_cast %481 : vector<1x1xf32> to vector<1x1x1xf32>
    %cst_107 = arith.constant 0.000000e+00 : f32
    %483 = vector.broadcast %cst_107 : f32 to vector<1x32x1xf32>
    %484 = arith.cmpf ogt, %470, %483 : vector<1x32x1xf32>
    %485 = arith.extui %484 : vector<1x32x1xi1> to vector<1x32x1xi32>
    %486 = arith.sitofp %485 : vector<1x32x1xi32> to vector<1x32x1xf32>
    %cst_108 = arith.constant dense<0.000000e+00> : vector<1x1xf32>
    %487 = vector.multi_reduction <add>, %486, %cst_108 [1] : vector<1x32x1xf32> to vector<1x1xf32>
    %488 = vector.shape_cast %487 : vector<1x1xf32> to vector<1x1x1xf32>
    %489 = tpu.iota {dimensions = array<i32: 2>} : vector<1x1x8xi32>
    %c0_i32_109 = arith.constant 0 : i32
    %490 = vector.broadcast %c0_i32_109 : i32 to vector<1x1x8xi32>
    %491 = arith.cmpi eq, %489, %490 : vector<1x1x8xi32>
    %cst_110 = arith.constant 0.000000e+00 : f32
    %492 = vector.shape_cast %28 : vector<1x1x1xf32> to vector<1x1x1xf32>
    %493 = vector.broadcast %492 : vector<1x1x1xf32> to vector<1x1x8xf32>
    %494 = vector.broadcast %cst_110 : f32 to vector<1x1x8xf32>
    %495 = arith.select %491, %493, %494 : vector<1x1x8xi1>, vector<1x1x8xf32>
    %c1_i32_111 = arith.constant 1 : i32
    %496 = vector.broadcast %c1_i32_111 : i32 to vector<1x1x8xi32>
    %497 = arith.cmpi eq, %489, %496 : vector<1x1x8xi32>
    %cst_112 = arith.constant 0.000000e+00 : f32
    %498 = vector.shape_cast %8 : vector<1x1x1xf32> to vector<1x1x1xf32>
    %499 = vector.broadcast %498 : vector<1x1x1xf32> to vector<1x1x8xf32>
    %500 = vector.broadcast %cst_112 : f32 to vector<1x1x8xf32>
    %501 = arith.select %497, %499, %500 : vector<1x1x8xi1>, vector<1x1x8xf32>
    %502 = arith.addf %495, %501 : vector<1x1x8xf32>
    %c2_i32_113 = arith.constant 2 : i32
    %503 = vector.broadcast %c2_i32_113 : i32 to vector<1x1x8xi32>
    %504 = arith.cmpi eq, %489, %503 : vector<1x1x8xi32>
    %cst_114 = arith.constant 0.000000e+00 : f32
    %505 = vector.shape_cast %466 : vector<1x1x1xf32> to vector<1x1x1xf32>
    %506 = vector.broadcast %505 : vector<1x1x1xf32> to vector<1x1x8xf32>
    %507 = vector.broadcast %cst_114 : f32 to vector<1x1x8xf32>
    %508 = arith.select %504, %506, %507 : vector<1x1x8xi1>, vector<1x1x8xf32>
    %509 = arith.addf %502, %508 : vector<1x1x8xf32>
    %c3_i32 = arith.constant 3 : i32
    %510 = vector.broadcast %c3_i32 : i32 to vector<1x1x8xi32>
    %511 = arith.cmpi eq, %489, %510 : vector<1x1x8xi32>
    %cst_115 = arith.constant 0.000000e+00 : f32
    %512 = vector.shape_cast %468 : vector<1x1x1xf32> to vector<1x1x1xf32>
    %513 = vector.broadcast %512 : vector<1x1x1xf32> to vector<1x1x8xf32>
    %514 = vector.broadcast %cst_115 : f32 to vector<1x1x8xf32>
    %515 = arith.select %511, %513, %514 : vector<1x1x8xi1>, vector<1x1x8xf32>
    %516 = arith.addf %509, %515 : vector<1x1x8xf32>
    %c4_i32_116 = arith.constant 4 : i32
    %517 = vector.broadcast %c4_i32_116 : i32 to vector<1x1x8xi32>
    %518 = arith.cmpi eq, %489, %517 : vector<1x1x8xi32>
    %cst_117 = arith.constant 0.000000e+00 : f32
    %519 = vector.shape_cast %482 : vector<1x1x1xf32> to vector<1x1x1xf32>
    %520 = vector.broadcast %519 : vector<1x1x1xf32> to vector<1x1x8xf32>
    %521 = vector.broadcast %cst_117 : f32 to vector<1x1x8xf32>
    %522 = arith.select %518, %520, %521 : vector<1x1x8xi1>, vector<1x1x8xf32>
    %523 = arith.addf %516, %522 : vector<1x1x8xf32>
    %c5_i32 = arith.constant 5 : i32
    %524 = vector.broadcast %c5_i32 : i32 to vector<1x1x8xi32>
    %525 = arith.cmpi eq, %489, %524 : vector<1x1x8xi32>
    %cst_118 = arith.constant 0.000000e+00 : f32
    %526 = vector.shape_cast %488 : vector<1x1x1xf32> to vector<1x1x1xf32>
    %527 = vector.broadcast %526 : vector<1x1x1xf32> to vector<1x1x8xf32>
    %528 = vector.broadcast %cst_118 : f32 to vector<1x1x8xf32>
    %529 = arith.select %525, %527, %528 : vector<1x1x8xi1>, vector<1x1x8xf32>
    %530 = arith.addf %523, %529 : vector<1x1x8xf32>
    %c0_119 = arith.constant 0 : index
    %c0_120 = arith.constant 0 : index
    %c0_121 = arith.constant 0 : index
    %531 = vector.load %arg5[%c0_119, %c0_120, %c0_121] : memref<1x1x8xf32, #tpu.memory_space<vmem>>, vector<1x1x8xf32>
    tpu.vector_store %arg5[%c0_119, %c0_120, %c0_121], %530 {strides = array<i32>} : memref<1x1x8xf32, #tpu.memory_space<vmem>>, vector<1x1x8xf32>,
    return
  }
  func.func @transform_0(%arg0: i32) -> (i32, i32, i32) {
    %c0_i32 = arith.constant 0 : i32
    %c0_i32_0 = arith.constant 0 : i32
    %c0_i32_1 = arith.constant 0 : i32
    return %arg0, %c0_i32, %c0_i32_0 : i32, i32, i32
  }
  func.func @transform_1(%arg0: i32) -> (i32, i32, i32) {
    %c0_i32 = arith.constant 0 : i32
    %c0_i32_0 = arith.constant 0 : i32
    %c0_i32_1 = arith.constant 0 : i32
    return %arg0, %c0_i32, %c0_i32_0 : i32, i32, i32
  }
  func.func @transform_2(%arg0: i32) -> (i32, i32, i32) {
    %c0_i32 = arith.constant 0 : i32
    %c0_i32_0 = arith.constant 0 : i32
    %c0_i32_1 = arith.constant 0 : i32
    return %arg0, %c0_i32, %c0_i32_0 : i32, i32, i32
  }
  func.func @transform_3(%arg0: i32) -> (i32, i32, i32) {
    %c0_i32 = arith.constant 0 : i32
    %c0_i32_0 = arith.constant 0 : i32
    %c0_i32_1 = arith.constant 0 : i32
    return %arg0, %c0_i32, %c0_i32_0 : i32, i32, i32
  }
  func.func @transform_4(%arg0: i32) -> (i32, i32, i32) {
    %c0_i32 = arith.constant 0 : i32
    %c0_i32_0 = arith.constant 0 : i32
    %c0_i32_1 = arith.constant 0 : i32
    return %arg0, %c0_i32, %c0_i32_0 : i32, i32, i32
  }
}

</mosaic_0001>

<bundles_post_ra>
// kernel: multibox_loss.1
= control target key start
LH: loop header
LB: loop body
LE: loop exit
PB: predicated region body
PF: predicated region fallthrough
CT: control target
= control target key end

     0   :  { %s2205_s15 = smov 0   ;;  %s2922_s0 = inlined_call_operand.vmem [shape: f32[2,32,4], index: 0, kind: input, shape index: {}]   ;;  %s2923_s1 = inlined_call_operand.vmem [shape: f32[2,32,4], index: 1, kind: input, shape index: {}]   ;;  %s2924_s2 = inlined_call_operand.vmem [shape: f32[2,32,4], index: 2, kind: input, shape index: {}]   ;;  %s2925_s3 = inlined_call_operand.vmem [shape: s32[2,32,1], index: 3, kind: input, shape index: {}]   ;;  %s2926_s4 = inlined_call_operand.vmem [shape: f32[2,1,8], index: 4, kind: output, shape index: {}]  }
   0x1 LB: > { %s1971_s16 = sadd.s32 4294967295, %s2176_s15   ;;  %p1975_p0 = scmp.ge.s32.totalorder %s2176_s15, 1  ;;  %s2176_s15 = sphi %s2205_s15, %s14_s15  }
   0x2   : > { %p192_p1 = scmp.lt.s32.totalorder %s2176_s15, 3 }
   0x4   : > { %p193_p2 = pnand %p1975_p0, %p192_p1 }
   0x5   : > { %p231_p3 = scmp.lt.s32.totalorder (!%p193_p2), %s1971_s16, 1  ;;  %v2178_v0 = vmov (!%p193_p2), 0   ;;  %vm274_vm0 = vcmask (!%p193_p2), 7168   ;;  %v2179_v3 = vmov (!%p193_p2), 0.0   ;;  %v370_v37 = vlaneseq (!%p193_p2) }
   0x6   : > { %196 = sbr.rel (%p193_p2) target bundleno = 9778 (0x2632), region = 36  ;;  %2149 = vset.pattern.permute.xlu1 (!%p193_p2), %v2178_v0  ;;  %2148 = vset.pattern.permute.xlu0 (!%p193_p2), %v2178_v0  ;;  %vm344_vm10 = vcmask (!%p193_p2), 31744  }
   0x7   : > { %v2269_v39 = vand.u32 (!%p193_p2), 127, %v370_v37 }
   0x9   : > { %v2272_v40 = vadd.s32 (!%p193_p2), 1, %v2269_v39 }
   0xd   : > { %s2928_s16 = smov (!%p231_p3, %s1971_s16), 1 }
   0xe   : > { %s2218_s17 = sshll.u32 %s2928_s16, 5  ;;  %s253_s6 = scalar_lea.vmem %s2926_s4, %s2928_s16 }
   0xf   : > { %s250_s20 = scalar_lea.vmem %s2925_s3, %s2218_s17  ;;  %s2257_s23 = scalar_lea.vmem %s2924_s2, %s2218_s17 }
  0x10   : > { %v2224_v1 = vld [vmem:[%s250_s20 + $0x10] sm:$0xff]  ;;  %v2226_v2 = vld [vmem:[%s250_s20] sm:$0xff]  ;;  %v2238_v6 = vld [vmem:[%s250_s20 + $0x18] sm:$0xff]  ;;  %s2804_s26 = scalar_lea.vmem %s2922_s0, %s2218_s17  ;;  %s2810_s29 = scalar_lea.vmem %s2923_s1, %s2218_s17 }
  0x11   : > { %380 = vperm.xlu1 %2149, %v2224_v1   ;;  %vm260_vm1 = vcmp.gt.s32.totalorder %v2224_v1, 0  ;;  %374 = vperm.xlu0 %2148, %v2226_v2   ;;  %vm258_vm2 = vcmp.gt.s32.totalorder %v2226_v2, 0  ;;  %v2240_v7 = vld [vmem:[%s250_s20 + $0x8] sm:$0xff]  ;;  %v368_v14 = vld [vmem:[%s2257_s23 + $0x10] sm:$0xff]  ;;  %v366_v15 = vld [vmem:[%s2257_s23] sm:$0xff]  ;;  %vm261_vm13 = vcmp.gt.s32.totalorder %v2238_v6, 0 }
  0x12   : > { %v1986_v4 = vsel %vm260_vm1, 1.0, %v2179_v3  ;;  %v1984_v5 = vsel %vm258_vm2, 1.0, %v2179_v3  ;;  %vm259_vm3 = vcmp.gt.s32.totalorder %v2240_v7, 0  ;;  %v411_v16 = vand.u32 2147483647, %v368_v14  ;;  %v2262_v17 = vld [vmem:[%s2257_s23 + $0x18] sm:$0xff] }
  0x13   : > { %v275_v8 = vsel %vm274_vm0, %v1984_v5, 0.0  ;;  %v1985_v9 = vsel %vm259_vm3, 1.0, %v2179_v3  ;;  %v278_v10 = vsel %vm274_vm0, %v1986_v4, 0.0  ;;  %v409_v18 = vand.u32 2147483647, %v366_v15  ;;  %v2265_v19 = vld [vmem:[%s2257_s23 + $0x8] sm:$0xff] }
  0x14   : > { %v276_v11 = vsel %vm274_vm0, %v1985_v9, 0.0  ;;  %v412_v20 = vand.u32 2147483647, %v2262_v17  ;;  %v415_v21 = vsub.f32 0.0, %v411_v16  ;;  %v410_v22 = vand.u32 2147483647, %v2265_v19 }
  0x15   : > { %383 = vperm.xlu1 %2149, %v2238_v6   ;;  %377 = vperm.xlu0 %2148, %v2240_v7   ;;  %v277_v12 = vadd.f32 %v276_v11, %v275_v8  ;;  %v413_v23 = vsub.f32 0.0, %v409_v18  ;;  %v399_v45 = vmax.f32 %v368_v14, 0.0  ;;  %v397_v46 = vmax.f32 %v366_v15, 0.0 }
  0x16   : > { %v416_v24 = vsub.f32 0.0, %v412_v20  ;;  %v421_v25 = vmul.f32 1.442695, %v415_v21  ;;  %v414_v26 = vsub.f32 0.0, %v410_v22  ;;  %v400_v56 = vmax.f32 %v2262_v17, 0.0 }
  0x17   : > { %v2251_v13 = vadd.f32 %v278_v10, %v277_v12  ;;  %v417_v27 = vmul.f32 1.442695, %v413_v23  ;;  %v398_v58 = vmax.f32 %v2265_v19, 0.0 }
  0x18   : > { %v423_v28 = vmul.f32 1.442695, %v416_v24  ;;  %2150 = vpow2.f32 %v421_v25  ;;  %v419_v29 = vmul.f32 1.442695, %v414_v26 }
  0x19   : > { %2152 = vpow2.f32 %v417_v27 }
  0x1a   : > { %2154 = vpow2.f32 %v423_v28 }
  0x1b   : > { %2156 = vpow2.f32 %v419_v29 }
  0x22   : > { %v2151_v30 = vpop.eup %2150 }
  0x23   : > { %v2153_v31 = vpop.eup %2152  ;;  %v427_v33 = vadd.f32 1.0, %v2151_v30 }
  0x24   : > { %v2155_v32 = vpop.eup %2154  ;;  %v425_v35 = vadd.f32 1.0, %v2153_v31 }
  0x25   : > { %v2157_v34 = vpop.eup %2156  ;;  %v428_v36 = vadd.f32 1.0, %v2155_v32  ;;  %2158 = vlog2.f32 %v427_v33  ;;  %v1987_v32 = vsel %vm261_vm13, 1.0, %v2179_v3 }
  0x26   : > { %v426_v38 = vadd.f32 1.0, %v2157_v34  ;;  %2160 = vlog2.f32 %v425_v35  ;;  %v280_v33 = vsel %vm274_vm0, %v1987_v32, 0.0 }
  0x27   : > { %2162 = vlog2.f32 %v428_v36  ;;  %v281_v34 = vadd.f32 %v280_v33, %v2251_v13 }
  0x28   : > { %2164 = vlog2.f32 %v426_v38 }
  0x29   : > { %v282_v35 = vrot.slane %v281_v34, 4 }
  0x2b   : > { %v283_v36 = vadd.f32 %v282_v35, %v281_v34 }
  0x2d   : > { %v284_v37 = vrot.slane %v283_v36, 2 }
  0x2f   : > { %v2159_v41 = vpop.eup %2158 }
  0x30   : > { %v2161_v42 = vpop.eup %2160  ;;  %v434_v52 = vmul.f32 0.6931472, %v2159_v41  ;;  %v285_v41 = vadd.f32 %v284_v37, %v283_v36 }
  0x31   : > { %v2163_v47 = vpop.eup %2162  ;;  %v430_v54 = vmul.f32 0.6931472, %v2161_v42 }
  0x32   : > { %v2165_v50 = vpop.eup %2164  ;;  %v436_v62 = vmul.f32 0.6931472, %v2163_v47  ;;  %v286_v47 = vrot.slane %v285_v41, 1 }
  0x33   : > { %v432_v4 = vmul.f32 0.6931472, %v2165_v50 }
  0x90   : > { %v2274_v43 = vpop.permute.xlu1 %380  ;;  %v2276_v44 = vpop.permute.xlu0 %374 }
  0x91   : > { %vm387_vm4 = vcmp.eq.s32.totalorder %v2274_v43, %v2272_v40  ;;  %vm385_vm5 = vcmp.eq.s32.totalorder %v2276_v44, %v2272_v40 }
  0x92   : > { %v1994_v48 = vsel %vm387_vm4, 1.0, %v2179_v3  ;;  %v1992_v49 = vsel %vm385_vm5, 1.0, %v2179_v3 }
  0x93   : > { %v403_v51 = vmul.f32 %v1994_v48, %v368_v14  ;;  %v401_v53 = vmul.f32 %v1992_v49, %v366_v15 }
  0x94   : > { %v2290_v55 = vpop.permute.xlu1 %383  ;;  %v2293_v57 = vpop.permute.xlu0 %377 }
  0x95   : > { %v407_v59 = vsub.f32 %v399_v45, %v403_v51  ;;  %v405_v60 = vsub.f32 %v397_v46, %v401_v53  ;;  %vm388_vm6 = vcmp.eq.s32.totalorder %v2290_v55, %v2272_v40  ;;  %vm386_vm7 = vcmp.eq.s32.totalorder %v2293_v57, %v2272_v40 }
  0x96   : > { %v1995_v61 = vsel %vm388_vm6, 1.0, %v2179_v3  ;;  %v1993_v63 = vsel %vm386_vm7, 1.0, %v2179_v3  ;;  %v2368_v51 = vadd.f32 %v286_v47, %v285_v41 }
  0x97   : > { %v439_v5 = vadd.f32 %v434_v52, %v407_v59  ;;  %v437_v8 = vadd.f32 %v430_v54, %v405_v60  ;;  %v404_v9 = vmul.f32 %v1995_v61, %v2262_v17  ;;  %v402_v10 = vmul.f32 %v1993_v63, %v2265_v19 }
  0x98   : > { %v449_v54 = vmul.f32 3.0, %v2368_v51 }
  0x99   : > { %v2313_v11 = vsel %vm387_vm4, 0.0, %v439_v5  ;;  %v2318_v12 = vsel %vm385_vm5, 0.0, %v437_v8  ;;  %v408_v14 = vsub.f32 %v400_v56, %v404_v9  ;;  %v406_v15 = vsub.f32 %v398_v58, %v402_v10 }
  0x9a   : > { %vm451_vm8 = vcmp.ge.s32.totalorder %v2318_v12, 1073741824  ;;  %vm453_vm9 = vcmp.ge.s32.totalorder %v2313_v11, 1073741824  ;;  %v2325_v16 = vsel %vm385_vm5, %v437_v8, 0.0  ;;  %v2330_v17 = vsel %vm387_vm4, %v439_v5, 0.0 }
  0x9b   : > { %v440_v18 = vadd.f32 %v436_v62, %v408_v14  ;;  %v438_v19 = vadd.f32 %v432_v4, %v406_v15  ;;  %v1996_v20 = vsel %vm451_vm8, 1.0, %v2179_v3  ;;  %v1998_v22 = vsel %vm453_vm9, 1.0, %v2179_v3 }
  0x9c   : > { %v463_v21 = vsel %vm344_vm10, %v1996_v20, 0.0  ;;  %v469_v29 = vsel %vm344_vm10, %v1998_v22, 0.0  ;;  %v2371_v58 = vmin.f32 %v449_v54, 31.0 }
  0x9d   : > { %v2338_v23 = vsel %vm388_vm6, 0.0, %v440_v18  ;;  %v2343_v24 = vsel %vm386_vm7, 0.0, %v438_v19  ;;  %464 = vadd.xlane.f32.xlu0 %v463_v21  ;;  %v2348_v25 = vsel %vm386_vm7, %v438_v19, 0.0  ;;  %v2353_v26 = vsel %vm388_vm6, %v440_v18, 0.0 }
  0x9e   : > { %vm452_vm11 = vcmp.ge.s32.totalorder %v2343_v24, 1073741824  ;;  %vm454_vm12 = vcmp.ge.s32.totalorder %v2338_v23, 1073741824 }
  0x9f   : > { %v1997_v27 = vsel %vm452_vm11, 1.0, %v2179_v3  ;;  %v1999_v30 = vsel %vm454_vm12, 1.0, %v2179_v3 }
  0xa0   : > { %v466_v28 = vsel %vm344_vm10, %v1997_v27, 0.0  ;;  %v472_v31 = vsel %vm344_vm10, %v1999_v30, 0.0 }
  0xa1   : > { %467 = vadd.xlane.f32.xlu1 %v466_v28  ;;  %470 = vadd.xlane.f32.xlu0 %v469_v29 }
  0xa5   : > { %473 = vadd.xlane.f32.xlu0 %v472_v31 }
 0x12a   : > { %v465_v38 = vpop.xlane.xlu0 %464 }
 0x12e   : > { %v468_v42 = vpop.xlane.xlu1 %467  ;;  %v471_v45 = vpop.xlane.xlu0 %470 }
 0x12f   : > { %v475_v46 = vadd.f32 %v468_v42, %v465_v38 }
 0x131   : > { %v476_v48 = vadd.f32 %v475_v46, %v471_v45 }
 0x132   : > { %v474_v49 = vpop.xlane.xlu0 %473 }
 0x133   : > { %v477_v50 = vadd.f32 %v476_v48, %v474_v49 }
 0x135   : > { %v478_v52 = vrot.slane %v477_v50, 4 }
 0x137   : > { %v479_v53 = vadd.f32 %v478_v52, %v477_v50 }
 0x139   : > { %v480_v56 = vrot.slane %v479_v53, 2 }
 0x13b   : > { %v481_v13 = vadd.f32 %v480_v56, %v479_v53 }
 0x13d   : > { %v482_v59 = vrot.slane %v481_v13, 1 }
 0x13f   : > { %v483_v60 = vadd.f32 %v482_v59, %v481_v13 }
 0x141   : > { %vm484_vm14 = vcmp.ge.f32.partialorder %v483_v60, %v2371_v58 }
 0x142   : > { %v485_v61 = vsel %vm484_vm14, 1073741824, %v2178_v0 }
 0x143   : > { %v486_v62 = vor.u32 536870912, %v485_v61 }
 0x145   : > { %488 = vperm.xlu1 %2149, %v486_v62  }
 0x1c4   : > { %v489_v63 = vpop.permute.xlu1 %488 }
 0x1c5   : > { %vm490_vm15 = vcmp.ge.s32.totalorder %v2318_v12, %v489_v63  ;;  %vm491_vm0 = vcmp.ge.s32.totalorder %v2343_v24, %v489_v63  ;;  %vm492_vm8 = vcmp.ge.s32.totalorder %v2313_v11, %v489_v63  ;;  %vm493_vm9 = vcmp.ge.s32.totalorder %v2338_v23, %v489_v63 }
 0x1c6   : > { %v2000_v4 = vsel %vm490_vm15, 1.0, %v2179_v3  ;;  %v2001_v8 = vsel %vm491_vm0, 1.0, %v2179_v3  ;;  %v2002_v10 = vsel %vm492_vm8, 1.0, %v2179_v3  ;;  %v2003_v15 = vsel %vm493_vm9, 1.0, %v2179_v3 }
 0x1c7   : > { %v502_v5 = vsel %vm344_vm10, %v2000_v4, 0.0  ;;  %v505_v9 = vsel %vm344_vm10, %v2001_v8, 0.0  ;;  %v508_v14 = vsel %vm344_vm10, %v2002_v10, 0.0  ;;  %v511_v18 = vsel %vm344_vm10, %v2003_v15, 0.0 }
 0x1c8   : > { %503 = vadd.xlane.f32.xlu0 %v502_v5 }
 0x1cc   : > { %506 = vadd.xlane.f32.xlu0 %v505_v9 }
 0x1d0   : > { %509 = vadd.xlane.f32.xlu0 %v508_v14 }
 0x1d4   : > { %512 = vadd.xlane.f32.xlu0 %v511_v18 }
 0x255   : > { %v504_v19 = vpop.xlane.xlu0 %503 }
 0x259   : > { %v507_v20 = vpop.xlane.xlu0 %506 }
 0x25a   : > { %v514_v22 = vadd.f32 %v507_v20, %v504_v19 }
 0x25d   : > { %v510_v21 = vpop.xlane.xlu0 %509 }
 0x25e   : > { %v515_v27 = vadd.f32 %v514_v22, %v510_v21 }
 0x261   : > { %v513_v28 = vpop.xlane.xlu0 %512 }
 0x262   : > { %v516_v29 = vadd.f32 %v515_v27, %v513_v28 }
 0x264   : > { %v517_v30 = vrot.slane %v516_v29, 4 }
 0x266   : > { %v518_v31 = vadd.f32 %v517_v30, %v516_v29 }
 0x268   : > { %v519_v32 = vrot.slane %v518_v31, 2 }
 0x26a   : > { %v520_v33 = vadd.f32 %v519_v32, %v518_v31 }
 0x26c   : > { %v521_v34 = vrot.slane %v520_v33, 1 }
 0x26e   : > { %v522_v35 = vadd.f32 %v521_v34, %v520_v33 }
 0x270   : > { %vm523_vm11 = vcmp.ge.f32.partialorder %v522_v35, %v2371_v58 }
 0x271   : > { %v524_v36 = vsel %vm523_vm11, %v486_v62, %v485_v61 }
 0x272   : > { %v525_v37 = vor.u32 268435456, %v524_v36 }
 0x274   : > { %527 = vperm.xlu1 %2149, %v525_v37  }
 0x2f3   : > { %v528_v38 = vpop.permute.xlu1 %527 }
 0x2f4   : > { %vm530_vm12 = vcmp.ge.s32.totalorder %v2343_v24, %v528_v38  ;;  %vm529_vm14 = vcmp.ge.s32.totalorder %v2318_v12, %v528_v38  ;;  %vm531_vm15 = vcmp.ge.s32.totalorder %v2313_v11, %v528_v38  ;;  %vm532_vm0 = vcmp.ge.s32.totalorder %v2338_v23, %v528_v38 }
 0x2f5   : > { %v2005_v41 = vsel %vm530_vm12, 1.0, %v2179_v3  ;;  %v2004_v42 = vsel %vm529_vm14, 1.0, %v2179_v3  ;;  %v2006_v47 = vsel %vm531_vm15, 1.0, %v2179_v3  ;;  %v2007_v49 = vsel %vm532_vm0, 1.0, %v2179_v3 }
 0x2f6   : > { %v544_v45 = vsel %vm344_vm10, %v2005_v41, 0.0  ;;  %v541_v46 = vsel %vm344_vm10, %v2004_v42, 0.0  ;;  %v547_v48 = vsel %vm344_vm10, %v2006_v47, 0.0  ;;  %v550_v50 = vsel %vm344_vm10, %v2007_v49, 0.0 }
 0x2f7   : > { %545 = vadd.xlane.f32.xlu1 %v544_v45  ;;  %542 = vadd.xlane.f32.xlu0 %v541_v46 }
 0x2fb   : > { %548 = vadd.xlane.f32.xlu0 %v547_v48 }
 0x2ff   : > { %551 = vadd.xlane.f32.xlu0 %v550_v50 }
 0x384   : > { %v543_v52 = vpop.xlane.xlu0 %542  ;;  %v546_v53 = vpop.xlane.xlu1 %545 }
 0x385   : > { %v553_v56 = vadd.f32 %v546_v53, %v543_v52 }
 0x388   : > { %v549_v54 = vpop.xlane.xlu0 %548 }
 0x389   : > { %v554_v13 = vadd.f32 %v553_v56, %v549_v54 }
 0x38c   : > { %v552_v59 = vpop.xlane.xlu0 %551 }
 0x38d   : > { %v555_v60 = vadd.f32 %v554_v13, %v552_v59 }
 0x38f   : > { %v556_v61 = vrot.slane %v555_v60, 4 }
 0x391   : > { %v557_v62 = vadd.f32 %v556_v61, %v555_v60 }
 0x393   : > { %v558_v63 = vrot.slane %v557_v62, 2 }
 0x395   : > { %v559_v4 = vadd.f32 %v558_v63, %v557_v62 }
 0x397   : > { %v560_v5 = vrot.slane %v559_v4, 1 }
 0x399   : > { %v561_v8 = vadd.f32 %v560_v5, %v559_v4 }
 0x39b   : > { %vm562_vm8 = vcmp.ge.f32.partialorder %v561_v8, %v2371_v58 }
 0x39c   : > { %v563_v9 = vsel %vm562_vm8, %v525_v37, %v524_v36 }
 0x39d   : > { %v564_v10 = vor.u32 134217728, %v563_v9 }
 0x39f   : > { %566 = vperm.xlu0 %2148, %v564_v10  }
 0x41e   : > { %v567_v14 = vpop.permute.xlu0 %566 }
 0x41f   : > { %vm569_vm9 = vcmp.ge.s32.totalorder %v2343_v24, %v567_v14  ;;  %vm568_vm11 = vcmp.ge.s32.totalorder %v2318_v12, %v567_v14  ;;  %vm570_vm12 = vcmp.ge.s32.totalorder %v2313_v11, %v567_v14  ;;  %vm571_vm14 = vcmp.ge.s32.totalorder %v2338_v23, %v567_v14 }
 0x420   : > { %v2009_v15 = vsel %vm569_vm9, 1.0, %v2179_v3  ;;  %v2008_v18 = vsel %vm568_vm11, 1.0, %v2179_v3  ;;  %v2010_v21 = vsel %vm570_vm12, 1.0, %v2179_v3  ;;  %v2011_v27 = vsel %vm571_vm14, 1.0, %v2179_v3 }
 0x421   : > { %v583_v19 = vsel %vm344_vm10, %v2009_v15, 0.0  ;;  %v580_v20 = vsel %vm344_vm10, %v2008_v18, 0.0  ;;  %v586_v22 = vsel %vm344_vm10, %v2010_v21, 0.0  ;;  %v589_v28 = vsel %vm344_vm10, %v2011_v27, 0.0 }
 0x422   : > { %584 = vadd.xlane.f32.xlu1 %v583_v19  ;;  %581 = vadd.xlane.f32.xlu0 %v580_v20 }
 0x426   : > { %587 = vadd.xlane.f32.xlu1 %v586_v22 }
 0x42a   : > { %590 = vadd.xlane.f32.xlu1 %v589_v28 }
 0x4af   : > { %v585_v29 = vpop.xlane.xlu1 %584  ;;  %v582_v30 = vpop.xlane.xlu0 %581 }
 0x4b0   : > { %v592_v32 = vadd.f32 %v585_v29, %v582_v30 }
 0x4b3   : > { %v588_v31 = vpop.xlane.xlu1 %587 }
 0x4b4   : > { %v593_v33 = vadd.f32 %v592_v32, %v588_v31 }
 0x4b7   : > { %v591_v34 = vpop.xlane.xlu1 %590 }
 0x4b8   : > { %v594_v35 = vadd.f32 %v593_v33, %v591_v34 }
 0x4ba   : > { %v595_v36 = vrot.slane %v594_v35, 4 }
 0x4bc   : > { %v596_v37 = vadd.f32 %v595_v36, %v594_v35 }
 0x4be   : > { %v597_v38 = vrot.slane %v596_v37, 2 }
 0x4c0   : > { %v598_v41 = vadd.f32 %v597_v38, %v596_v37 }
 0x4c2   : > { %v599_v42 = vrot.slane %v598_v41, 1 }
 0x4c4   : > { %v600_v45 = vadd.f32 %v599_v42, %v598_v41 }
 0x4c6   : > { %vm601_vm15 = vcmp.ge.f32.partialorder %v600_v45, %v2371_v58 }
 0x4c7   : > { %v602_v46 = vsel %vm601_vm15, %v564_v10, %v563_v9 }
 0x4c8   : > { %v603_v47 = vor.u32 67108864, %v602_v46 }
 0x4ca   : > { %605 = vperm.xlu1 %2149, %v603_v47  }
 0x549   : > { %v606_v48 = vpop.permute.xlu1 %605 }
 0x54a   : > { %vm608_vm0 = vcmp.ge.s32.totalorder %v2343_v24, %v606_v48  ;;  %vm607_vm8 = vcmp.ge.s32.totalorder %v2318_v12, %v606_v48  ;;  %vm609_vm9 = vcmp.ge.s32.totalorder %v2313_v11, %v606_v48  ;;  %vm610_vm11 = vcmp.ge.s32.totalorder %v2338_v23, %v606_v48 }
 0x54b   : > { %v2013_v49 = vsel %vm608_vm0, 1.0, %v2179_v3  ;;  %v2012_v50 = vsel %vm607_vm8, 1.0, %v2179_v3  ;;  %v2014_v54 = vsel %vm609_vm9, 1.0, %v2179_v3  ;;  %v2015_v13 = vsel %vm610_vm11, 1.0, %v2179_v3 }
 0x54c   : > { %v622_v52 = vsel %vm344_vm10, %v2013_v49, 0.0  ;;  %v619_v53 = vsel %vm344_vm10, %v2012_v50, 0.0  ;;  %v625_v56 = vsel %vm344_vm10, %v2014_v54, 0.0  ;;  %v628_v59 = vsel %vm344_vm10, %v2015_v13, 0.0 }
 0x54d   : > { %623 = vadd.xlane.f32.xlu1 %v622_v52  ;;  %620 = vadd.xlane.f32.xlu0 %v619_v53 }
 0x551   : > { %626 = vadd.xlane.f32.xlu0 %v625_v56 }
 0x555   : > { %629 = vadd.xlane.f32.xlu0 %v628_v59 }
 0x5da   : > { %v621_v60 = vpop.xlane.xlu0 %620  ;;  %v624_v61 = vpop.xlane.xlu1 %623 }
 0x5db   : > { %v631_v63 = vadd.f32 %v624_v61, %v621_v60 }
 0x5de   : > { %v627_v62 = vpop.xlane.xlu0 %626 }
 0x5df   : > { %v632_v4 = vadd.f32 %v631_v63, %v627_v62 }
 0x5e2   : > { %v630_v5 = vpop.xlane.xlu0 %629 }
 0x5e3   : > { %v633_v8 = vadd.f32 %v632_v4, %v630_v5 }
 0x5e5   : > { %v634_v9 = vrot.slane %v633_v8, 4 }
 0x5e7   : > { %v635_v10 = vadd.f32 %v634_v9, %v633_v8 }
 0x5e9   : > { %v636_v14 = vrot.slane %v635_v10, 2 }
 0x5eb   : > { %v637_v15 = vadd.f32 %v636_v14, %v635_v10 }
 0x5ed   : > { %v638_v18 = vrot.slane %v637_v15, 1 }
 0x5ef   : > { %v639_v19 = vadd.f32 %v638_v18, %v637_v15 }
 0x5f1   : > { %vm640_vm12 = vcmp.ge.f32.partialorder %v639_v19, %v2371_v58 }
 0x5f2   : > { %v641_v20 = vsel %vm640_vm12, %v603_v47, %v602_v46 }
 0x5f3   : > { %v642_v21 = vor.u32 33554432, %v641_v20 }
 0x5f5   : > { %644 = vperm.xlu0 %2148, %v642_v21  }
 0x674   : > { %v645_v22 = vpop.permute.xlu0 %644 }
 0x675   : > { %vm647_vm14 = vcmp.ge.s32.totalorder %v2343_v24, %v645_v22  ;;  %vm646_vm15 = vcmp.ge.s32.totalorder %v2318_v12, %v645_v22  ;;  %vm648_vm0 = vcmp.ge.s32.totalorder %v2313_v11, %v645_v22  ;;  %vm649_vm8 = vcmp.ge.s32.totalorder %v2338_v23, %v645_v22 }
 0x676   : > { %v2017_v27 = vsel %vm647_vm14, 1.0, %v2179_v3  ;;  %v2016_v28 = vsel %vm646_vm15, 1.0, %v2179_v3  ;;  %v2018_v31 = vsel %vm648_vm0, 1.0, %v2179_v3  ;;  %v2019_v33 = vsel %vm649_vm8, 1.0, %v2179_v3 }
 0x677   : > { %v661_v29 = vsel %vm344_vm10, %v2017_v27, 0.0  ;;  %v658_v30 = vsel %vm344_vm10, %v2016_v28, 0.0  ;;  %v664_v32 = vsel %vm344_vm10, %v2018_v31, 0.0  ;;  %v667_v34 = vsel %vm344_vm10, %v2019_v33, 0.0 }
 0x678   : > { %662 = vadd.xlane.f32.xlu1 %v661_v29  ;;  %659 = vadd.xlane.f32.xlu0 %v658_v30 }
 0x67c   : > { %665 = vadd.xlane.f32.xlu1 %v664_v32 }
 0x680   : > { %668 = vadd.xlane.f32.xlu1 %v667_v34 }
 0x705   : > { %v663_v35 = vpop.xlane.xlu1 %662  ;;  %v660_v36 = vpop.xlane.xlu0 %659 }
 0x706   : > { %v670_v38 = vadd.f32 %v663_v35, %v660_v36 }
 0x709   : > { %v666_v37 = vpop.xlane.xlu1 %665 }
 0x70a   : > { %v671_v41 = vadd.f32 %v670_v38, %v666_v37 }
 0x70d   : > { %v669_v42 = vpop.xlane.xlu1 %668 }
 0x70e   : > { %v672_v45 = vadd.f32 %v671_v41, %v669_v42 }
 0x710   : > { %v673_v46 = vrot.slane %v672_v45, 4 }
 0x712   : > { %v674_v47 = vadd.f32 %v673_v46, %v672_v45 }
 0x714   : > { %v675_v48 = vrot.slane %v674_v47, 2 }
 0x716   : > { %v676_v49 = vadd.f32 %v675_v48, %v674_v47 }
 0x718   : > { %v677_v50 = vrot.slane %v676_v49, 1 }
 0x71a   : > { %v678_v52 = vadd.f32 %v677_v50, %v676_v49 }
 0x71c   : > { %vm679_vm9 = vcmp.ge.f32.partialorder %v678_v52, %v2371_v58 }
 0x71d   : > { %v680_v53 = vsel %vm679_vm9, %v642_v21, %v641_v20 }
 0x71e   : > { %v681_v54 = vor.u32 16777216, %v680_v53 }
 0x720   : > { %683 = vperm.xlu1 %2149, %v681_v54  }
 0x79f   : > { %v684_v56 = vpop.permute.xlu1 %683 }
 0x7a0   : > { %vm686_vm11 = vcmp.ge.s32.totalorder %v2343_v24, %v684_v56  ;;  %vm685_vm12 = vcmp.ge.s32.totalorder %v2318_v12, %v684_v56  ;;  %vm687_vm14 = vcmp.ge.s32.totalorder %v2313_v11, %v684_v56  ;;  %vm688_vm15 = vcmp.ge.s32.totalorder %v2338_v23, %v684_v56 }
 0x7a1   : > { %v2021_v13 = vsel %vm686_vm11, 1.0, %v2179_v3  ;;  %v2020_v59 = vsel %vm685_vm12, 1.0, %v2179_v3  ;;  %v2022_v62 = vsel %vm687_vm14, 1.0, %v2179_v3  ;;  %v2023_v4 = vsel %vm688_vm15, 1.0, %v2179_v3 }
 0x7a2   : > { %v700_v60 = vsel %vm344_vm10, %v2021_v13, 0.0  ;;  %v697_v61 = vsel %vm344_vm10, %v2020_v59, 0.0  ;;  %v703_v63 = vsel %vm344_vm10, %v2022_v62, 0.0  ;;  %v706_v5 = vsel %vm344_vm10, %v2023_v4, 0.0 }
 0x7a3   : > { %701 = vadd.xlane.f32.xlu1 %v700_v60  ;;  %698 = vadd.xlane.f32.xlu0 %v697_v61 }
 0x7a7   : > { %704 = vadd.xlane.f32.xlu0 %v703_v63 }
 0x7ab   : > { %707 = vadd.xlane.f32.xlu0 %v706_v5 }
 0x830   : > { %v699_v8 = vpop.xlane.xlu0 %698  ;;  %v702_v9 = vpop.xlane.xlu1 %701 }
 0x831   : > { %v709_v14 = vadd.f32 %v702_v9, %v699_v8 }
 0x834   : > { %v705_v10 = vpop.xlane.xlu0 %704 }
 0x835   : > { %v710_v15 = vadd.f32 %v709_v14, %v705_v10 }
 0x838   : > { %v708_v18 = vpop.xlane.xlu0 %707 }
 0x839   : > { %v711_v19 = vadd.f32 %v710_v15, %v708_v18 }
 0x83b   : > { %v712_v20 = vrot.slane %v711_v19, 4 }
 0x83d   : > { %v713_v21 = vadd.f32 %v712_v20, %v711_v19 }
 0x83f   : > { %v714_v22 = vrot.slane %v713_v21, 2 }
 0x841   : > { %v715_v27 = vadd.f32 %v714_v22, %v713_v21 }
 0x843   : > { %v716_v28 = vrot.slane %v715_v27, 1 }
 0x845   : > { %v717_v29 = vadd.f32 %v716_v28, %v715_v27 }
 0x847   : > { %vm718_vm0 = vcmp.ge.f32.partialorder %v717_v29, %v2371_v58 }
 0x848   : > { %v719_v30 = vsel %vm718_vm0, %v681_v54, %v680_v53 }
 0x849   : > { %v720_v31 = vor.u32 8388608, %v719_v30 }
 0x84b   : > { %722 = vperm.xlu0 %2148, %v720_v31  }
 0x8ca   : > { %v723_v32 = vpop.permute.xlu0 %722 }
 0x8cb   : > { %vm725_vm8 = vcmp.ge.s32.totalorder %v2343_v24, %v723_v32  ;;  %vm724_vm9 = vcmp.ge.s32.totalorder %v2318_v12, %v723_v32  ;;  %vm726_vm11 = vcmp.ge.s32.totalorder %v2313_v11, %v723_v32  ;;  %vm727_vm12 = vcmp.ge.s32.totalorder %v2338_v23, %v723_v32 }
 0x8cc   : > { %v2025_v33 = vsel %vm725_vm8, 1.0, %v2179_v3  ;;  %v2024_v34 = vsel %vm724_vm9, 1.0, %v2179_v3  ;;  %v2026_v37 = vsel %vm726_vm11, 1.0, %v2179_v3  ;;  %v2027_v41 = vsel %vm727_vm12, 1.0, %v2179_v3 }
 0x8cd   : > { %v739_v35 = vsel %vm344_vm10, %v2025_v33, 0.0  ;;  %v736_v36 = vsel %vm344_vm10, %v2024_v34, 0.0  ;;  %v742_v38 = vsel %vm344_vm10, %v2026_v37, 0.0  ;;  %v745_v42 = vsel %vm344_vm10, %v2027_v41, 0.0 }
 0x8ce   : > { %740 = vadd.xlane.f32.xlu1 %v739_v35  ;;  %737 = vadd.xlane.f32.xlu0 %v736_v36 }
 0x8d2   : > { %743 = vadd.xlane.f32.xlu1 %v742_v38 }
 0x8d6   : > { %746 = vadd.xlane.f32.xlu1 %v745_v42 }
 0x95b   : > { %v741_v45 = vpop.xlane.xlu1 %740  ;;  %v738_v46 = vpop.xlane.xlu0 %737 }
 0x95c   : > { %v748_v48 = vadd.f32 %v741_v45, %v738_v46 }
 0x95f   : > { %v744_v47 = vpop.xlane.xlu1 %743 }
 0x960   : > { %v749_v49 = vadd.f32 %v748_v48, %v744_v47 }
 0x963   : > { %v747_v50 = vpop.xlane.xlu1 %746 }
 0x964   : > { %v750_v52 = vadd.f32 %v749_v49, %v747_v50 }
 0x966   : > { %v751_v53 = vrot.slane %v750_v52, 4 }
 0x968   : > { %v752_v54 = vadd.f32 %v751_v53, %v750_v52 }
 0x96a   : > { %v753_v56 = vrot.slane %v752_v54, 2 }
 0x96c   : > { %v754_v13 = vadd.f32 %v753_v56, %v752_v54 }
 0x96e   : > { %v755_v59 = vrot.slane %v754_v13, 1 }
 0x970   : > { %v756_v60 = vadd.f32 %v755_v59, %v754_v13 }
 0x972   : > { %vm757_vm14 = vcmp.ge.f32.partialorder %v756_v60, %v2371_v58 }
 0x973   : > { %v758_v61 = vsel %vm757_vm14, %v720_v31, %v719_v30 }
 0x974   : > { %v759_v62 = vor.u32 4194304, %v758_v61 }
 0x976   : > { %761 = vperm.xlu1 %2149, %v759_v62  }
 0x9f5   : > { %v762_v63 = vpop.permute.xlu1 %761 }
 0x9f6   : > { %vm764_vm15 = vcmp.ge.s32.totalorder %v2343_v24, %v762_v63  ;;  %vm763_vm0 = vcmp.ge.s32.totalorder %v2318_v12, %v762_v63  ;;  %vm765_vm8 = vcmp.ge.s32.totalorder %v2313_v11, %v762_v63  ;;  %vm766_vm9 = vcmp.ge.s32.totalorder %v2338_v23, %v762_v63 }
 0x9f7   : > { %v2029_v4 = vsel %vm764_vm15, 1.0, %v2179_v3  ;;  %v2028_v5 = vsel %vm763_vm0, 1.0, %v2179_v3  ;;  %v2030_v10 = vsel %vm765_vm8, 1.0, %v2179_v3  ;;  %v2031_v15 = vsel %vm766_vm9, 1.0, %v2179_v3 }
 0x9f8   : > { %v778_v8 = vsel %vm344_vm10, %v2029_v4, 0.0  ;;  %v775_v9 = vsel %vm344_vm10, %v2028_v5, 0.0  ;;  %v781_v14 = vsel %vm344_vm10, %v2030_v10, 0.0  ;;  %v784_v18 = vsel %vm344_vm10, %v2031_v15, 0.0 }
 0x9f9   : > { %779 = vadd.xlane.f32.xlu1 %v778_v8  ;;  %776 = vadd.xlane.f32.xlu0 %v775_v9 }
 0x9fd   : > { %782 = vadd.xlane.f32.xlu0 %v781_v14 }
 0xa01   : > { %785 = vadd.xlane.f32.xlu0 %v784_v18 }
 0xa86   : > { %v777_v19 = vpop.xlane.xlu0 %776  ;;  %v780_v20 = vpop.xlane.xlu1 %779 }
 0xa87   : > { %v787_v22 = vadd.f32 %v780_v20, %v777_v19 }
 0xa8a   : > { %v783_v21 = vpop.xlane.xlu0 %782 }
 0xa8b   : > { %v788_v27 = vadd.f32 %v787_v22, %v783_v21 }
 0xa8e   : > { %v786_v28 = vpop.xlane.xlu0 %785 }
 0xa8f   : > { %v789_v29 = vadd.f32 %v788_v27, %v786_v28 }
 0xa91   : > { %v790_v30 = vrot.slane %v789_v29, 4 }
 0xa93   : > { %v791_v31 = vadd.f32 %v790_v30, %v789_v29 }
 0xa95   : > { %v792_v32 = vrot.slane %v791_v31, 2 }
 0xa97   : > { %v793_v33 = vadd.f32 %v792_v32, %v791_v31 }
 0xa99   : > { %v794_v34 = vrot.slane %v793_v33, 1 }
 0xa9b   : > { %v795_v35 = vadd.f32 %v794_v34, %v793_v33 }
 0xa9d   : > { %vm796_vm11 = vcmp.ge.f32.partialorder %v795_v35, %v2371_v58 }
 0xa9e   : > { %v797_v36 = vsel %vm796_vm11, %v759_v62, %v758_v61 }
 0xa9f   : > { %v798_v37 = vor.u32 2097152, %v797_v36 }
 0xaa1   : > { %800 = vperm.xlu0 %2148, %v798_v37  }
 0xb20   : > { %v801_v38 = vpop.permute.xlu0 %800 }
 0xb21   : > { %vm803_vm12 = vcmp.ge.s32.totalorder %v2343_v24, %v801_v38  ;;  %vm802_vm14 = vcmp.ge.s32.totalorder %v2318_v12, %v801_v38  ;;  %vm804_vm15 = vcmp.ge.s32.totalorder %v2313_v11, %v801_v38  ;;  %vm805_vm0 = vcmp.ge.s32.totalorder %v2338_v23, %v801_v38 }
 0xb22   : > { %v2033_v41 = vsel %vm803_vm12, 1.0, %v2179_v3  ;;  %v2032_v42 = vsel %vm802_vm14, 1.0, %v2179_v3  ;;  %v2034_v47 = vsel %vm804_vm15, 1.0, %v2179_v3  ;;  %v2035_v49 = vsel %vm805_vm0, 1.0, %v2179_v3 }
 0xb23   : > { %v817_v45 = vsel %vm344_vm10, %v2033_v41, 0.0  ;;  %v814_v46 = vsel %vm344_vm10, %v2032_v42, 0.0  ;;  %v820_v48 = vsel %vm344_vm10, %v2034_v47, 0.0  ;;  %v823_v50 = vsel %vm344_vm10, %v2035_v49, 0.0 }
 0xb24   : > { %818 = vadd.xlane.f32.xlu1 %v817_v45  ;;  %815 = vadd.xlane.f32.xlu0 %v814_v46 }
 0xb28   : > { %821 = vadd.xlane.f32.xlu1 %v820_v48 }
 0xb2c   : > { %824 = vadd.xlane.f32.xlu1 %v823_v50 }
 0xbb1   : > { %v819_v52 = vpop.xlane.xlu1 %818  ;;  %v816_v53 = vpop.xlane.xlu0 %815 }
 0xbb2   : > { %v826_v56 = vadd.f32 %v819_v52, %v816_v53 }
 0xbb5   : > { %v822_v54 = vpop.xlane.xlu1 %821 }
 0xbb6   : > { %v827_v13 = vadd.f32 %v826_v56, %v822_v54 }
 0xbb9   : > { %v825_v59 = vpop.xlane.xlu1 %824 }
 0xbba   : > { %v828_v60 = vadd.f32 %v827_v13, %v825_v59 }
 0xbbc   : > { %v829_v61 = vrot.slane %v828_v60, 4 }
 0xbbe   : > { %v830_v62 = vadd.f32 %v829_v61, %v828_v60 }
 0xbc0   : > { %v831_v63 = vrot.slane %v830_v62, 2 }
 0xbc2   : > { %v832_v4 = vadd.f32 %v831_v63, %v830_v62 }
 0xbc4   : > { %v833_v5 = vrot.slane %v832_v4, 1 }
 0xbc6   : > { %v834_v8 = vadd.f32 %v833_v5, %v832_v4 }
 0xbc8   : > { %vm835_vm8 = vcmp.ge.f32.partialorder %v834_v8, %v2371_v58 }
 0xbc9   : > { %v836_v9 = vsel %vm835_vm8, %v798_v37, %v797_v36 }
 0xbca   : > { %v837_v10 = vor.u32 1048576, %v836_v9 }
 0xbcc   : > { %839 = vperm.xlu1 %2149, %v837_v10  }
 0xc4b   : > { %v840_v14 = vpop.permute.xlu1 %839 }
 0xc4c   : > { %vm842_vm9 = vcmp.ge.s32.totalorder %v2343_v24, %v840_v14  ;;  %vm841_vm11 = vcmp.ge.s32.totalorder %v2318_v12, %v840_v14  ;;  %vm843_vm12 = vcmp.ge.s32.totalorder %v2313_v11, %v840_v14  ;;  %vm844_vm14 = vcmp.ge.s32.totalorder %v2338_v23, %v840_v14 }
 0xc4d   : > { %v2037_v15 = vsel %vm842_vm9, 1.0, %v2179_v3  ;;  %v2036_v18 = vsel %vm841_vm11, 1.0, %v2179_v3  ;;  %v2038_v21 = vsel %vm843_vm12, 1.0, %v2179_v3  ;;  %v2039_v27 = vsel %vm844_vm14, 1.0, %v2179_v3 }
 0xc4e   : > { %v856_v19 = vsel %vm344_vm10, %v2037_v15, 0.0  ;;  %v853_v20 = vsel %vm344_vm10, %v2036_v18, 0.0  ;;  %v859_v22 = vsel %vm344_vm10, %v2038_v21, 0.0  ;;  %v862_v28 = vsel %vm344_vm10, %v2039_v27, 0.0 }
 0xc4f   : > { %857 = vadd.xlane.f32.xlu1 %v856_v19  ;;  %854 = vadd.xlane.f32.xlu0 %v853_v20 }
 0xc53   : > { %860 = vadd.xlane.f32.xlu0 %v859_v22 }
 0xc57   : > { %863 = vadd.xlane.f32.xlu0 %v862_v28 }
 0xcdc   : > { %v855_v29 = vpop.xlane.xlu0 %854  ;;  %v858_v30 = vpop.xlane.xlu1 %857 }
 0xcdd   : > { %v865_v32 = vadd.f32 %v858_v30, %v855_v29 }
 0xce0   : > { %v861_v31 = vpop.xlane.xlu0 %860 }
 0xce1   : > { %v866_v33 = vadd.f32 %v865_v32, %v861_v31 }
 0xce4   : > { %v864_v34 = vpop.xlane.xlu0 %863 }
 0xce5   : > { %v867_v35 = vadd.f32 %v866_v33, %v864_v34 }
 0xce7   : > { %v868_v36 = vrot.slane %v867_v35, 4 }
 0xce9   : > { %v869_v37 = vadd.f32 %v868_v36, %v867_v35 }
 0xceb   : > { %v870_v38 = vrot.slane %v869_v37, 2 }
 0xced   : > { %v871_v41 = vadd.f32 %v870_v38, %v869_v37 }
 0xcef   : > { %v872_v42 = vrot.slane %v871_v41, 1 }
 0xcf1   : > { %v873_v45 = vadd.f32 %v872_v42, %v871_v41 }
 0xcf3   : > { %vm874_vm15 = vcmp.ge.f32.partialorder %v873_v45, %v2371_v58 }
 0xcf4   : > { %v875_v46 = vsel %vm874_vm15, %v837_v10, %v836_v9 }
 0xcf5   : > { %v876_v47 = vor.u32 524288, %v875_v46 }
 0xcf7   : > { %878 = vperm.xlu0 %2148, %v876_v47  }
 0xd76   : > { %v879_v48 = vpop.permute.xlu0 %878 }
 0xd77   : > { %vm881_vm0 = vcmp.ge.s32.totalorder %v2343_v24, %v879_v48  ;;  %vm880_vm8 = vcmp.ge.s32.totalorder %v2318_v12, %v879_v48  ;;  %vm882_vm9 = vcmp.ge.s32.totalorder %v2313_v11, %v879_v48  ;;  %vm883_vm11 = vcmp.ge.s32.totalorder %v2338_v23, %v879_v48 }
 0xd78   : > { %v2041_v49 = vsel %vm881_vm0, 1.0, %v2179_v3  ;;  %v2040_v50 = vsel %vm880_vm8, 1.0, %v2179_v3  ;;  %v2042_v54 = vsel %vm882_vm9, 1.0, %v2179_v3  ;;  %v2043_v13 = vsel %vm883_vm11, 1.0, %v2179_v3 }
 0xd79   : > { %v895_v52 = vsel %vm344_vm10, %v2041_v49, 0.0  ;;  %v892_v53 = vsel %vm344_vm10, %v2040_v50, 0.0  ;;  %v898_v56 = vsel %vm344_vm10, %v2042_v54, 0.0  ;;  %v901_v59 = vsel %vm344_vm10, %v2043_v13, 0.0 }
 0xd7a   : > { %896 = vadd.xlane.f32.xlu1 %v895_v52  ;;  %893 = vadd.xlane.f32.xlu0 %v892_v53 }
 0xd7e   : > { %899 = vadd.xlane.f32.xlu1 %v898_v56 }
 0xd82   : > { %902 = vadd.xlane.f32.xlu1 %v901_v59 }
 0xe07   : > { %v897_v60 = vpop.xlane.xlu1 %896  ;;  %v894_v61 = vpop.xlane.xlu0 %893 }
 0xe08   : > { %v904_v63 = vadd.f32 %v897_v60, %v894_v61 }
 0xe0b   : > { %v900_v62 = vpop.xlane.xlu1 %899 }
 0xe0c   : > { %v905_v4 = vadd.f32 %v904_v63, %v900_v62 }
 0xe0f   : > { %v903_v5 = vpop.xlane.xlu1 %902 }
 0xe10   : > { %v906_v8 = vadd.f32 %v905_v4, %v903_v5 }
 0xe12   : > { %v907_v9 = vrot.slane %v906_v8, 4 }
 0xe14   : > { %v908_v10 = vadd.f32 %v907_v9, %v906_v8 }
 0xe16   : > { %v909_v14 = vrot.slane %v908_v10, 2 }
 0xe18   : > { %v910_v15 = vadd.f32 %v909_v14, %v908_v10 }
 0xe1a   : > { %v911_v18 = vrot.slane %v910_v15, 1 }
 0xe1c   : > { %v912_v19 = vadd.f32 %v911_v18, %v910_v15 }
 0xe1e   : > { %vm913_vm12 = vcmp.ge.f32.partialorder %v912_v19, %v2371_v58 }
 0xe1f   : > { %v914_v20 = vsel %vm913_vm12, %v876_v47, %v875_v46 }
 0xe20   : > { %v915_v21 = vor.u32 262144, %v914_v20 }
 0xe22   : > { %917 = vperm.xlu1 %2149, %v915_v21  }
 0xea1   : > { %v918_v22 = vpop.permute.xlu1 %917 }
 0xea2   : > { %vm920_vm14 = vcmp.ge.s32.totalorder %v2343_v24, %v918_v22  ;;  %vm919_vm15 = vcmp.ge.s32.totalorder %v2318_v12, %v918_v22  ;;  %vm921_vm0 = vcmp.ge.s32.totalorder %v2313_v11, %v918_v22  ;;  %vm922_vm8 = vcmp.ge.s32.totalorder %v2338_v23, %v918_v22 }
 0xea3   : > { %v2045_v27 = vsel %vm920_vm14, 1.0, %v2179_v3  ;;  %v2044_v28 = vsel %vm919_vm15, 1.0, %v2179_v3  ;;  %v2046_v31 = vsel %vm921_vm0, 1.0, %v2179_v3  ;;  %v2047_v33 = vsel %vm922_vm8, 1.0, %v2179_v3 }
 0xea4   : > { %v934_v29 = vsel %vm344_vm10, %v2045_v27, 0.0  ;;  %v931_v30 = vsel %vm344_vm10, %v2044_v28, 0.0  ;;  %v937_v32 = vsel %vm344_vm10, %v2046_v31, 0.0  ;;  %v940_v34 = vsel %vm344_vm10, %v2047_v33, 0.0 }
 0xea5   : > { %935 = vadd.xlane.f32.xlu1 %v934_v29  ;;  %932 = vadd.xlane.f32.xlu0 %v931_v30 }
 0xea9   : > { %938 = vadd.xlane.f32.xlu0 %v937_v32 }
 0xead   : > { %941 = vadd.xlane.f32.xlu0 %v940_v34 }
 0xf32   : > { %v933_v35 = vpop.xlane.xlu0 %932  ;;  %v936_v36 = vpop.xlane.xlu1 %935 }
 0xf33   : > { %v943_v38 = vadd.f32 %v936_v36, %v933_v35 }
 0xf36   : > { %v939_v37 = vpop.xlane.xlu0 %938 }
 0xf37   : > { %v944_v41 = vadd.f32 %v943_v38, %v939_v37 }
 0xf3a   : > { %v942_v42 = vpop.xlane.xlu0 %941 }
 0xf3b   : > { %v945_v45 = vadd.f32 %v944_v41, %v942_v42 }
 0xf3d   : > { %v946_v46 = vrot.slane %v945_v45, 4 }
 0xf3f   : > { %v947_v47 = vadd.f32 %v946_v46, %v945_v45 }
 0xf41   : > { %v948_v48 = vrot.slane %v947_v47, 2 }
 0xf43   : > { %v949_v49 = vadd.f32 %v948_v48, %v947_v47 }
 0xf45   : > { %v950_v50 = vrot.slane %v949_v49, 1 }
 0xf47   : > { %v951_v52 = vadd.f32 %v950_v50, %v949_v49 }
 0xf49   : > { %vm952_vm9 = vcmp.ge.f32.partialorder %v951_v52, %v2371_v58 }
 0xf4a   : > { %v953_v53 = vsel %vm952_vm9, %v915_v21, %v914_v20 }
 0xf4b   : > { %v954_v54 = vor.u32 131072, %v953_v53 }
 0xf4d   : > { %956 = vperm.xlu0 %2148, %v954_v54  }
 0xfcc   : > { %v957_v56 = vpop.permute.xlu0 %956 }
 0xfcd   : > { %vm959_vm11 = vcmp.ge.s32.totalorder %v2343_v24, %v957_v56  ;;  %vm958_vm12 = vcmp.ge.s32.totalorder %v2318_v12, %v957_v56  ;;  %vm960_vm14 = vcmp.ge.s32.totalorder %v2313_v11, %v957_v56  ;;  %vm961_vm15 = vcmp.ge.s32.totalorder %v2338_v23, %v957_v56 }
 0xfce   : > { %v2049_v13 = vsel %vm959_vm11, 1.0, %v2179_v3  ;;  %v2048_v59 = vsel %vm958_vm12, 1.0, %v2179_v3  ;;  %v2050_v62 = vsel %vm960_vm14, 1.0, %v2179_v3  ;;  %v2051_v4 = vsel %vm961_vm15, 1.0, %v2179_v3 }
 0xfcf   : > { %v973_v60 = vsel %vm344_vm10, %v2049_v13, 0.0  ;;  %v970_v61 = vsel %vm344_vm10, %v2048_v59, 0.0  ;;  %v976_v63 = vsel %vm344_vm10, %v2050_v62, 0.0  ;;  %v979_v5 = vsel %vm344_vm10, %v2051_v4, 0.0 }
 0xfd0   : > { %974 = vadd.xlane.f32.xlu1 %v973_v60  ;;  %971 = vadd.xlane.f32.xlu0 %v970_v61 }
 0xfd4   : > { %977 = vadd.xlane.f32.xlu1 %v976_v63 }
 0xfd8   : > { %980 = vadd.xlane.f32.xlu1 %v979_v5 }
0x105d   : > { %v975_v8 = vpop.xlane.xlu1 %974  ;;  %v972_v9 = vpop.xlane.xlu0 %971 }
0x105e   : > { %v982_v14 = vadd.f32 %v975_v8, %v972_v9 }
0x1061   : > { %v978_v10 = vpop.xlane.xlu1 %977 }
0x1062   : > { %v983_v15 = vadd.f32 %v982_v14, %v978_v10 }
0x1065   : > { %v981_v18 = vpop.xlane.xlu1 %980 }
0x1066   : > { %v984_v19 = vadd.f32 %v983_v15, %v981_v18 }
0x1068   : > { %v985_v20 = vrot.slane %v984_v19, 4 }
0x106a   : > { %v986_v21 = vadd.f32 %v985_v20, %v984_v19 }
0x106c   : > { %v987_v22 = vrot.slane %v986_v21, 2 }
0x106e   : > { %v988_v27 = vadd.f32 %v987_v22, %v986_v21 }
0x1070   : > { %v989_v28 = vrot.slane %v988_v27, 1 }
0x1072   : > { %v990_v29 = vadd.f32 %v989_v28, %v988_v27 }
0x1074   : > { %vm991_vm0 = vcmp.ge.f32.partialorder %v990_v29, %v2371_v58 }
0x1075   : > { %v992_v30 = vsel %vm991_vm0, %v954_v54, %v953_v53 }
0x1076   : > { %v993_v31 = vor.u32 65536, %v992_v30 }
0x1078   : > { %995 = vperm.xlu1 %2149, %v993_v31  }
0x10f7   : > { %v996_v32 = vpop.permute.xlu1 %995 }
0x10f8   : > { %vm998_vm8 = vcmp.ge.s32.totalorder %v2343_v24, %v996_v32  ;;  %vm997_vm9 = vcmp.ge.s32.totalorder %v2318_v12, %v996_v32  ;;  %vm999_vm11 = vcmp.ge.s32.totalorder %v2313_v11, %v996_v32  ;;  %vm1000_vm12 = vcmp.ge.s32.totalorder %v2338_v23, %v996_v32 }
0x10f9   : > { %v2053_v33 = vsel %vm998_vm8, 1.0, %v2179_v3  ;;  %v2052_v34 = vsel %vm997_vm9, 1.0, %v2179_v3  ;;  %v2054_v37 = vsel %vm999_vm11, 1.0, %v2179_v3  ;;  %v2055_v41 = vsel %vm1000_vm12, 1.0, %v2179_v3 }
0x10fa   : > { %v1012_v35 = vsel %vm344_vm10, %v2053_v33, 0.0  ;;  %v1009_v36 = vsel %vm344_vm10, %v2052_v34, 0.0  ;;  %v1015_v38 = vsel %vm344_vm10, %v2054_v37, 0.0  ;;  %v1018_v42 = vsel %vm344_vm10, %v2055_v41, 0.0 }
0x10fb   : > { %1013 = vadd.xlane.f32.xlu1 %v1012_v35  ;;  %1010 = vadd.xlane.f32.xlu0 %v1009_v36 }
0x10ff   : > { %1016 = vadd.xlane.f32.xlu0 %v1015_v38 }
0x1103   : > { %1019 = vadd.xlane.f32.xlu0 %v1018_v42 }
0x1188   : > { %v1011_v45 = vpop.xlane.xlu0 %1010  ;;  %v1014_v46 = vpop.xlane.xlu1 %1013 }
0x1189   : > { %v1021_v48 = vadd.f32 %v1014_v46, %v1011_v45 }
0x118c   : > { %v1017_v47 = vpop.xlane.xlu0 %1016 }
0x118d   : > { %v1022_v49 = vadd.f32 %v1021_v48, %v1017_v47 }
0x1190   : > { %v1020_v50 = vpop.xlane.xlu0 %1019 }
0x1191   : > { %v1023_v52 = vadd.f32 %v1022_v49, %v1020_v50 }
0x1193   : > { %v1024_v53 = vrot.slane %v1023_v52, 4 }
0x1195   : > { %v1025_v54 = vadd.f32 %v1024_v53, %v1023_v52 }
0x1197   : > { %v1026_v56 = vrot.slane %v1025_v54, 2 }
0x1199   : > { %v1027_v13 = vadd.f32 %v1026_v56, %v1025_v54 }
0x119b   : > { %v1028_v59 = vrot.slane %v1027_v13, 1 }
0x119d   : > { %v1029_v60 = vadd.f32 %v1028_v59, %v1027_v13 }
0x119f   : > { %vm1030_vm14 = vcmp.ge.f32.partialorder %v1029_v60, %v2371_v58 }
0x11a0   : > { %v1031_v61 = vsel %vm1030_vm14, %v993_v31, %v992_v30 }
0x11a1   : > { %v1032_v62 = vor.u32 32768, %v1031_v61 }
0x11a3   : > { %1034 = vperm.xlu0 %2148, %v1032_v62  }
0x1222   : > { %v1035_v63 = vpop.permute.xlu0 %1034 }
0x1223   : > { %vm1037_vm15 = vcmp.ge.s32.totalorder %v2343_v24, %v1035_v63  ;;  %vm1036_vm0 = vcmp.ge.s32.totalorder %v2318_v12, %v1035_v63  ;;  %vm1038_vm8 = vcmp.ge.s32.totalorder %v2313_v11, %v1035_v63  ;;  %vm1039_vm9 = vcmp.ge.s32.totalorder %v2338_v23, %v1035_v63 }
0x1224   : > { %v2057_v4 = vsel %vm1037_vm15, 1.0, %v2179_v3  ;;  %v2056_v5 = vsel %vm1036_vm0, 1.0, %v2179_v3  ;;  %v2058_v10 = vsel %vm1038_vm8, 1.0, %v2179_v3  ;;  %v2059_v15 = vsel %vm1039_vm9, 1.0, %v2179_v3 }
0x1225   : > { %v1051_v8 = vsel %vm344_vm10, %v2057_v4, 0.0  ;;  %v1048_v9 = vsel %vm344_vm10, %v2056_v5, 0.0  ;;  %v1054_v14 = vsel %vm344_vm10, %v2058_v10, 0.0  ;;  %v1057_v18 = vsel %vm344_vm10, %v2059_v15, 0.0 }
0x1226   : > { %1052 = vadd.xlane.f32.xlu1 %v1051_v8  ;;  %1049 = vadd.xlane.f32.xlu0 %v1048_v9 }
0x122a   : > { %1055 = vadd.xlane.f32.xlu1 %v1054_v14 }
0x122e   : > { %1058 = vadd.xlane.f32.xlu1 %v1057_v18 }
0x12b3   : > { %v1053_v19 = vpop.xlane.xlu1 %1052  ;;  %v1050_v20 = vpop.xlane.xlu0 %1049 }
0x12b4   : > { %v1060_v22 = vadd.f32 %v1053_v19, %v1050_v20 }
0x12b7   : > { %v1056_v21 = vpop.xlane.xlu1 %1055 }
0x12b8   : > { %v1061_v27 = vadd.f32 %v1060_v22, %v1056_v21 }
0x12bb   : > { %v1059_v28 = vpop.xlane.xlu1 %1058 }
0x12bc   : > { %v1062_v29 = vadd.f32 %v1061_v27, %v1059_v28 }
0x12be   : > { %v1063_v30 = vrot.slane %v1062_v29, 4 }
0x12c0   : > { %v1064_v31 = vadd.f32 %v1063_v30, %v1062_v29 }
0x12c2   : > { %v1065_v32 = vrot.slane %v1064_v31, 2 }
0x12c4   : > { %v1066_v33 = vadd.f32 %v1065_v32, %v1064_v31 }
0x12c6   : > { %v1067_v34 = vrot.slane %v1066_v33, 1 }
0x12c8   : > { %v1068_v35 = vadd.f32 %v1067_v34, %v1066_v33 }
0x12ca   : > { %vm1069_vm11 = vcmp.ge.f32.partialorder %v1068_v35, %v2371_v58 }
0x12cb   : > { %v1070_v36 = vsel %vm1069_vm11, %v1032_v62, %v1031_v61 }
0x12cc   : > { %v1071_v37 = vor.u32 16384, %v1070_v36 }
0x12ce   : > { %1073 = vperm.xlu1 %2149, %v1071_v37  }
0x134d   : > { %v1074_v38 = vpop.permute.xlu1 %1073 }
0x134e   : > { %vm1076_vm12 = vcmp.ge.s32.totalorder %v2343_v24, %v1074_v38  ;;  %vm1075_vm14 = vcmp.ge.s32.totalorder %v2318_v12, %v1074_v38  ;;  %vm1077_vm15 = vcmp.ge.s32.totalorder %v2313_v11, %v1074_v38  ;;  %vm1078_vm0 = vcmp.ge.s32.totalorder %v2338_v23, %v1074_v38 }
0x134f   : > { %v2061_v41 = vsel %vm1076_vm12, 1.0, %v2179_v3  ;;  %v2060_v42 = vsel %vm1075_vm14, 1.0, %v2179_v3  ;;  %v2062_v47 = vsel %vm1077_vm15, 1.0, %v2179_v3  ;;  %v2063_v49 = vsel %vm1078_vm0, 1.0, %v2179_v3 }
0x1350   : > { %v1090_v45 = vsel %vm344_vm10, %v2061_v41, 0.0  ;;  %v1087_v46 = vsel %vm344_vm10, %v2060_v42, 0.0  ;;  %v1093_v48 = vsel %vm344_vm10, %v2062_v47, 0.0  ;;  %v1096_v50 = vsel %vm344_vm10, %v2063_v49, 0.0 }
0x1351   : > { %1091 = vadd.xlane.f32.xlu1 %v1090_v45  ;;  %1088 = vadd.xlane.f32.xlu0 %v1087_v46 }
0x1355   : > { %1094 = vadd.xlane.f32.xlu0 %v1093_v48 }
0x1359   : > { %1097 = vadd.xlane.f32.xlu0 %v1096_v50 }
0x13de   : > { %v1089_v52 = vpop.xlane.xlu0 %1088  ;;  %v1092_v53 = vpop.xlane.xlu1 %1091 }
0x13df   : > { %v1099_v56 = vadd.f32 %v1092_v53, %v1089_v52 }
0x13e2   : > { %v1095_v54 = vpop.xlane.xlu0 %1094 }
0x13e3   : > { %v1100_v13 = vadd.f32 %v1099_v56, %v1095_v54 }
0x13e6   : > { %v1098_v59 = vpop.xlane.xlu0 %1097 }
0x13e7   : > { %v1101_v60 = vadd.f32 %v1100_v13, %v1098_v59 }
0x13e9   : > { %v1102_v61 = vrot.slane %v1101_v60, 4 }
0x13eb   : > { %v1103_v62 = vadd.f32 %v1102_v61, %v1101_v60 }
0x13ed   : > { %v1104_v63 = vrot.slane %v1103_v62, 2 }
0x13ef   : > { %v1105_v4 = vadd.f32 %v1104_v63, %v1103_v62 }
0x13f1   : > { %v1106_v5 = vrot.slane %v1105_v4, 1 }
0x13f3   : > { %v1107_v8 = vadd.f32 %v1106_v5, %v1105_v4 }
0x13f5   : > { %vm1108_vm8 = vcmp.ge.f32.partialorder %v1107_v8, %v2371_v58 }
0x13f6   : > { %v1109_v9 = vsel %vm1108_vm8, %v1071_v37, %v1070_v36 }
0x13f7   : > { %v1110_v10 = vor.u32 8192, %v1109_v9 }
0x13f9   : > { %1112 = vperm.xlu0 %2148, %v1110_v10  }
0x1478   : > { %v1113_v14 = vpop.permute.xlu0 %1112 }
0x1479   : > { %vm1115_vm9 = vcmp.ge.s32.totalorder %v2343_v24, %v1113_v14  ;;  %vm1114_vm11 = vcmp.ge.s32.totalorder %v2318_v12, %v1113_v14  ;;  %vm1116_vm12 = vcmp.ge.s32.totalorder %v2313_v11, %v1113_v14  ;;  %vm1117_vm14 = vcmp.ge.s32.totalorder %v2338_v23, %v1113_v14 }
0x147a   : > { %v2065_v15 = vsel %vm1115_vm9, 1.0, %v2179_v3  ;;  %v2064_v18 = vsel %vm1114_vm11, 1.0, %v2179_v3  ;;  %v2066_v21 = vsel %vm1116_vm12, 1.0, %v2179_v3  ;;  %v2067_v27 = vsel %vm1117_vm14, 1.0, %v2179_v3 }
0x147b   : > { %v1129_v19 = vsel %vm344_vm10, %v2065_v15, 0.0  ;;  %v1126_v20 = vsel %vm344_vm10, %v2064_v18, 0.0  ;;  %v1132_v22 = vsel %vm344_vm10, %v2066_v21, 0.0  ;;  %v1135_v28 = vsel %vm344_vm10, %v2067_v27, 0.0 }
0x147c   : > { %1130 = vadd.xlane.f32.xlu1 %v1129_v19  ;;  %1127 = vadd.xlane.f32.xlu0 %v1126_v20 }
0x1480   : > { %1133 = vadd.xlane.f32.xlu1 %v1132_v22 }
0x1484   : > { %1136 = vadd.xlane.f32.xlu1 %v1135_v28 }
0x1509   : > { %v1131_v29 = vpop.xlane.xlu1 %1130  ;;  %v1128_v30 = vpop.xlane.xlu0 %1127 }
0x150a   : > { %v1138_v32 = vadd.f32 %v1131_v29, %v1128_v30 }
0x150d   : > { %v1134_v31 = vpop.xlane.xlu1 %1133 }
0x150e   : > { %v1139_v33 = vadd.f32 %v1138_v32, %v1134_v31 }
0x1511   : > { %v1137_v34 = vpop.xlane.xlu1 %1136 }
0x1512   : > { %v1140_v35 = vadd.f32 %v1139_v33, %v1137_v34 }
0x1514   : > { %v1141_v36 = vrot.slane %v1140_v35, 4 }
0x1516   : > { %v1142_v37 = vadd.f32 %v1141_v36, %v1140_v35 }
0x1518   : > { %v1143_v38 = vrot.slane %v1142_v37, 2 }
0x151a   : > { %v1144_v41 = vadd.f32 %v1143_v38, %v1142_v37 }
0x151c   : > { %v1145_v42 = vrot.slane %v1144_v41, 1 }
0x151e   : > { %v1146_v45 = vadd.f32 %v1145_v42, %v1144_v41 }
0x1520   : > { %vm1147_vm15 = vcmp.ge.f32.partialorder %v1146_v45, %v2371_v58 }
0x1521   : > { %v1148_v46 = vsel %vm1147_vm15, %v1110_v10, %v1109_v9 }
0x1522   : > { %v1149_v47 = vor.u32 4096, %v1148_v46 }
0x1524   : > { %1151 = vperm.xlu1 %2149, %v1149_v47  }
0x15a3   : > { %v1152_v48 = vpop.permute.xlu1 %1151 }
0x15a4   : > { %vm1154_vm0 = vcmp.ge.s32.totalorder %v2343_v24, %v1152_v48  ;;  %vm1153_vm8 = vcmp.ge.s32.totalorder %v2318_v12, %v1152_v48  ;;  %vm1155_vm9 = vcmp.ge.s32.totalorder %v2313_v11, %v1152_v48  ;;  %vm1156_vm11 = vcmp.ge.s32.totalorder %v2338_v23, %v1152_v48 }
0x15a5   : > { %v2069_v49 = vsel %vm1154_vm0, 1.0, %v2179_v3  ;;  %v2068_v50 = vsel %vm1153_vm8, 1.0, %v2179_v3  ;;  %v2070_v54 = vsel %vm1155_vm9, 1.0, %v2179_v3  ;;  %v2071_v13 = vsel %vm1156_vm11, 1.0, %v2179_v3 }
0x15a6   : > { %v1168_v52 = vsel %vm344_vm10, %v2069_v49, 0.0  ;;  %v1165_v53 = vsel %vm344_vm10, %v2068_v50, 0.0  ;;  %v1171_v56 = vsel %vm344_vm10, %v2070_v54, 0.0  ;;  %v1174_v59 = vsel %vm344_vm10, %v2071_v13, 0.0 }
0x15a7   : > { %1169 = vadd.xlane.f32.xlu1 %v1168_v52  ;;  %1166 = vadd.xlane.f32.xlu0 %v1165_v53 }
0x15ab   : > { %1172 = vadd.xlane.f32.xlu0 %v1171_v56 }
0x15af   : > { %1175 = vadd.xlane.f32.xlu0 %v1174_v59 }
0x1634   : > { %v1167_v60 = vpop.xlane.xlu0 %1166  ;;  %v1170_v61 = vpop.xlane.xlu1 %1169 }
0x1635   : > { %v1177_v63 = vadd.f32 %v1170_v61, %v1167_v60 }
0x1638   : > { %v1173_v62 = vpop.xlane.xlu0 %1172 }
0x1639   : > { %v1178_v4 = vadd.f32 %v1177_v63, %v1173_v62 }
0x163c   : > { %v1176_v5 = vpop.xlane.xlu0 %1175 }
0x163d   : > { %v1179_v8 = vadd.f32 %v1178_v4, %v1176_v5 }
0x163f   : > { %v1180_v9 = vrot.slane %v1179_v8, 4 }
0x1641   : > { %v1181_v10 = vadd.f32 %v1180_v9, %v1179_v8 }
0x1643   : > { %v1182_v14 = vrot.slane %v1181_v10, 2 }
0x1645   : > { %v1183_v15 = vadd.f32 %v1182_v14, %v1181_v10 }
0x1647   : > { %v1184_v18 = vrot.slane %v1183_v15, 1 }
0x1649   : > { %v1185_v19 = vadd.f32 %v1184_v18, %v1183_v15 }
0x164b   : > { %vm1186_vm12 = vcmp.ge.f32.partialorder %v1185_v19, %v2371_v58 }
0x164c   : > { %v1187_v20 = vsel %vm1186_vm12, %v1149_v47, %v1148_v46 }
0x164d   : > { %v1188_v21 = vor.u32 2048, %v1187_v20 }
0x164f   : > { %1190 = vperm.xlu0 %2148, %v1188_v21  }
0x16ce   : > { %v1191_v22 = vpop.permute.xlu0 %1190 }
0x16cf   : > { %vm1193_vm14 = vcmp.ge.s32.totalorder %v2343_v24, %v1191_v22  ;;  %vm1192_vm15 = vcmp.ge.s32.totalorder %v2318_v12, %v1191_v22  ;;  %vm1194_vm0 = vcmp.ge.s32.totalorder %v2313_v11, %v1191_v22  ;;  %vm1195_vm8 = vcmp.ge.s32.totalorder %v2338_v23, %v1191_v22 }
0x16d0   : > { %v2073_v27 = vsel %vm1193_vm14, 1.0, %v2179_v3  ;;  %v2072_v28 = vsel %vm1192_vm15, 1.0, %v2179_v3  ;;  %v2074_v31 = vsel %vm1194_vm0, 1.0, %v2179_v3  ;;  %v2075_v33 = vsel %vm1195_vm8, 1.0, %v2179_v3 }
0x16d1   : > { %v1207_v29 = vsel %vm344_vm10, %v2073_v27, 0.0  ;;  %v1204_v30 = vsel %vm344_vm10, %v2072_v28, 0.0  ;;  %v1210_v32 = vsel %vm344_vm10, %v2074_v31, 0.0  ;;  %v1213_v34 = vsel %vm344_vm10, %v2075_v33, 0.0 }
0x16d2   : > { %1208 = vadd.xlane.f32.xlu1 %v1207_v29  ;;  %1205 = vadd.xlane.f32.xlu0 %v1204_v30 }
0x16d6   : > { %1211 = vadd.xlane.f32.xlu1 %v1210_v32 }
0x16da   : > { %1214 = vadd.xlane.f32.xlu1 %v1213_v34 }
0x175f   : > { %v1209_v35 = vpop.xlane.xlu1 %1208  ;;  %v1206_v36 = vpop.xlane.xlu0 %1205 }
0x1760   : > { %v1216_v38 = vadd.f32 %v1209_v35, %v1206_v36 }
0x1763   : > { %v1212_v37 = vpop.xlane.xlu1 %1211 }
0x1764   : > { %v1217_v41 = vadd.f32 %v1216_v38, %v1212_v37 }
0x1767   : > { %v1215_v42 = vpop.xlane.xlu1 %1214 }
0x1768   : > { %v1218_v45 = vadd.f32 %v1217_v41, %v1215_v42 }
0x176a   : > { %v1219_v46 = vrot.slane %v1218_v45, 4 }
0x176c   : > { %v1220_v47 = vadd.f32 %v1219_v46, %v1218_v45 }
0x176e   : > { %v1221_v48 = vrot.slane %v1220_v47, 2 }
0x1770   : > { %v1222_v49 = vadd.f32 %v1221_v48, %v1220_v47 }
0x1772   : > { %v1223_v50 = vrot.slane %v1222_v49, 1 }
0x1774   : > { %v1224_v52 = vadd.f32 %v1223_v50, %v1222_v49 }
0x1776   : > { %vm1225_vm9 = vcmp.ge.f32.partialorder %v1224_v52, %v2371_v58 }
0x1777   : > { %v1226_v53 = vsel %vm1225_vm9, %v1188_v21, %v1187_v20 }
0x1778   : > { %v1227_v54 = vor.u32 1024, %v1226_v53 }
0x177a   : > { %1229 = vperm.xlu1 %2149, %v1227_v54  }
0x17f9   : > { %v1230_v56 = vpop.permute.xlu1 %1229 }
0x17fa   : > { %vm1232_vm11 = vcmp.ge.s32.totalorder %v2343_v24, %v1230_v56  ;;  %vm1231_vm12 = vcmp.ge.s32.totalorder %v2318_v12, %v1230_v56  ;;  %vm1233_vm14 = vcmp.ge.s32.totalorder %v2313_v11, %v1230_v56  ;;  %vm1234_vm15 = vcmp.ge.s32.totalorder %v2338_v23, %v1230_v56 }
0x17fb   : > { %v2077_v13 = vsel %vm1232_vm11, 1.0, %v2179_v3  ;;  %v2076_v59 = vsel %vm1231_vm12, 1.0, %v2179_v3  ;;  %v2078_v62 = vsel %vm1233_vm14, 1.0, %v2179_v3  ;;  %v2079_v4 = vsel %vm1234_vm15, 1.0, %v2179_v3 }
0x17fc   : > { %v1246_v60 = vsel %vm344_vm10, %v2077_v13, 0.0  ;;  %v1243_v61 = vsel %vm344_vm10, %v2076_v59, 0.0  ;;  %v1249_v63 = vsel %vm344_vm10, %v2078_v62, 0.0  ;;  %v1252_v5 = vsel %vm344_vm10, %v2079_v4, 0.0 }
0x17fd   : > { %1247 = vadd.xlane.f32.xlu1 %v1246_v60  ;;  %1244 = vadd.xlane.f32.xlu0 %v1243_v61 }
0x1801   : > { %1250 = vadd.xlane.f32.xlu0 %v1249_v63 }
0x1805   : > { %1253 = vadd.xlane.f32.xlu0 %v1252_v5 }
0x188a   : > { %v1245_v8 = vpop.xlane.xlu0 %1244  ;;  %v1248_v9 = vpop.xlane.xlu1 %1247 }
0x188b   : > { %v1255_v14 = vadd.f32 %v1248_v9, %v1245_v8 }
0x188e   : > { %v1251_v10 = vpop.xlane.xlu0 %1250 }
0x188f   : > { %v1256_v15 = vadd.f32 %v1255_v14, %v1251_v10 }
0x1892   : > { %v1254_v18 = vpop.xlane.xlu0 %1253 }
0x1893   : > { %v1257_v19 = vadd.f32 %v1256_v15, %v1254_v18 }
0x1895   : > { %v1258_v20 = vrot.slane %v1257_v19, 4 }
0x1897   : > { %v1259_v21 = vadd.f32 %v1258_v20, %v1257_v19 }
0x1899   : > { %v1260_v22 = vrot.slane %v1259_v21, 2 }
0x189b   : > { %v1261_v27 = vadd.f32 %v1260_v22, %v1259_v21 }
0x189d   : > { %v1262_v28 = vrot.slane %v1261_v27, 1 }
0x189f   : > { %v1263_v29 = vadd.f32 %v1262_v28, %v1261_v27 }
0x18a1   : > { %vm1264_vm0 = vcmp.ge.f32.partialorder %v1263_v29, %v2371_v58 }
0x18a2   : > { %v1265_v30 = vsel %vm1264_vm0, %v1227_v54, %v1226_v53 }
0x18a3   : > { %v1266_v31 = vor.u32 512, %v1265_v30 }
0x18a5   : > { %1268 = vperm.xlu0 %2148, %v1266_v31  }
0x1924   : > { %v1269_v32 = vpop.permute.xlu0 %1268 }
0x1925   : > { %vm1271_vm8 = vcmp.ge.s32.totalorder %v2343_v24, %v1269_v32  ;;  %vm1270_vm9 = vcmp.ge.s32.totalorder %v2318_v12, %v1269_v32  ;;  %vm1272_vm11 = vcmp.ge.s32.totalorder %v2313_v11, %v1269_v32  ;;  %vm1273_vm12 = vcmp.ge.s32.totalorder %v2338_v23, %v1269_v32 }
0x1926   : > { %v2081_v33 = vsel %vm1271_vm8, 1.0, %v2179_v3  ;;  %v2080_v34 = vsel %vm1270_vm9, 1.0, %v2179_v3  ;;  %v2082_v37 = vsel %vm1272_vm11, 1.0, %v2179_v3  ;;  %v2083_v41 = vsel %vm1273_vm12, 1.0, %v2179_v3 }
0x1927   : > { %v1285_v35 = vsel %vm344_vm10, %v2081_v33, 0.0  ;;  %v1282_v36 = vsel %vm344_vm10, %v2080_v34, 0.0  ;;  %v1288_v38 = vsel %vm344_vm10, %v2082_v37, 0.0  ;;  %v1291_v42 = vsel %vm344_vm10, %v2083_v41, 0.0 }
0x1928   : > { %1286 = vadd.xlane.f32.xlu1 %v1285_v35  ;;  %1283 = vadd.xlane.f32.xlu0 %v1282_v36 }
0x192c   : > { %1289 = vadd.xlane.f32.xlu1 %v1288_v38 }
0x1930   : > { %1292 = vadd.xlane.f32.xlu1 %v1291_v42 }
0x19b5   : > { %v1287_v45 = vpop.xlane.xlu1 %1286  ;;  %v1284_v46 = vpop.xlane.xlu0 %1283 }
0x19b6   : > { %v1294_v48 = vadd.f32 %v1287_v45, %v1284_v46 }
0x19b9   : > { %v1290_v47 = vpop.xlane.xlu1 %1289 }
0x19ba   : > { %v1295_v49 = vadd.f32 %v1294_v48, %v1290_v47 }
0x19bd   : > { %v1293_v50 = vpop.xlane.xlu1 %1292 }
0x19be   : > { %v1296_v52 = vadd.f32 %v1295_v49, %v1293_v50 }
0x19c0   : > { %v1297_v53 = vrot.slane %v1296_v52, 4 }
0x19c2   : > { %v1298_v54 = vadd.f32 %v1297_v53, %v1296_v52 }
0x19c4   : > { %v1299_v56 = vrot.slane %v1298_v54, 2 }
0x19c6   : > { %v1300_v13 = vadd.f32 %v1299_v56, %v1298_v54 }
0x19c8   : > { %v1301_v59 = vrot.slane %v1300_v13, 1 }
0x19ca   : > { %v1302_v60 = vadd.f32 %v1301_v59, %v1300_v13 }
0x19cc   : > { %vm1303_vm14 = vcmp.ge.f32.partialorder %v1302_v60, %v2371_v58 }
0x19cd   : > { %v1304_v61 = vsel %vm1303_vm14, %v1266_v31, %v1265_v30 }
0x19ce   : > { %v1305_v62 = vor.u32 256, %v1304_v61 }
0x19d0   : > { %1307 = vperm.xlu1 %2149, %v1305_v62  }
0x1a4f   : > { %v1308_v63 = vpop.permute.xlu1 %1307 }
0x1a50   : > { %vm1310_vm15 = vcmp.ge.s32.totalorder %v2343_v24, %v1308_v63  ;;  %vm1309_vm0 = vcmp.ge.s32.totalorder %v2318_v12, %v1308_v63  ;;  %vm1311_vm8 = vcmp.ge.s32.totalorder %v2313_v11, %v1308_v63  ;;  %vm1312_vm9 = vcmp.ge.s32.totalorder %v2338_v23, %v1308_v63 }
0x1a51   : > { %v2085_v4 = vsel %vm1310_vm15, 1.0, %v2179_v3  ;;  %v2084_v5 = vsel %vm1309_vm0, 1.0, %v2179_v3  ;;  %v2086_v10 = vsel %vm1311_vm8, 1.0, %v2179_v3  ;;  %v2087_v15 = vsel %vm1312_vm9, 1.0, %v2179_v3 }
0x1a52   : > { %v1324_v8 = vsel %vm344_vm10, %v2085_v4, 0.0  ;;  %v1321_v9 = vsel %vm344_vm10, %v2084_v5, 0.0  ;;  %v1327_v14 = vsel %vm344_vm10, %v2086_v10, 0.0  ;;  %v1330_v18 = vsel %vm344_vm10, %v2087_v15, 0.0 }
0x1a53   : > { %1325 = vadd.xlane.f32.xlu1 %v1324_v8  ;;  %1322 = vadd.xlane.f32.xlu0 %v1321_v9 }
0x1a57   : > { %1328 = vadd.xlane.f32.xlu0 %v1327_v14 }
0x1a5b   : > { %1331 = vadd.xlane.f32.xlu0 %v1330_v18 }
0x1ae0   : > { %v1323_v19 = vpop.xlane.xlu0 %1322  ;;  %v1326_v20 = vpop.xlane.xlu1 %1325 }
0x1ae1   : > { %v1333_v22 = vadd.f32 %v1326_v20, %v1323_v19 }
0x1ae4   : > { %v1329_v21 = vpop.xlane.xlu0 %1328 }
0x1ae5   : > { %v1334_v27 = vadd.f32 %v1333_v22, %v1329_v21 }
0x1ae8   : > { %v1332_v28 = vpop.xlane.xlu0 %1331 }
0x1ae9   : > { %v1335_v29 = vadd.f32 %v1334_v27, %v1332_v28 }
0x1aeb   : > { %v1336_v30 = vrot.slane %v1335_v29, 4 }
0x1aed   : > { %v1337_v31 = vadd.f32 %v1336_v30, %v1335_v29 }
0x1aef   : > { %v1338_v32 = vrot.slane %v1337_v31, 2 }
0x1af1   : > { %v1339_v33 = vadd.f32 %v1338_v32, %v1337_v31 }
0x1af3   : > { %v1340_v34 = vrot.slane %v1339_v33, 1 }
0x1af5   : > { %v1341_v35 = vadd.f32 %v1340_v34, %v1339_v33 }
0x1af7   : > { %vm1342_vm11 = vcmp.ge.f32.partialorder %v1341_v35, %v2371_v58 }
0x1af8   : > { %v1343_v36 = vsel %vm1342_vm11, %v1305_v62, %v1304_v61 }
0x1af9   : > { %v1344_v37 = vor.u32 128, %v1343_v36 }
0x1afb   : > { %1346 = vperm.xlu0 %2148, %v1344_v37  }
0x1b7a   : > { %v1347_v38 = vpop.permute.xlu0 %1346 }
0x1b7b   : > { %vm1349_vm12 = vcmp.ge.s32.totalorder %v2343_v24, %v1347_v38  ;;  %vm1348_vm14 = vcmp.ge.s32.totalorder %v2318_v12, %v1347_v38  ;;  %vm1350_vm15 = vcmp.ge.s32.totalorder %v2313_v11, %v1347_v38  ;;  %vm1351_vm0 = vcmp.ge.s32.totalorder %v2338_v23, %v1347_v38 }
0x1b7c   : > { %v2089_v41 = vsel %vm1349_vm12, 1.0, %v2179_v3  ;;  %v2088_v42 = vsel %vm1348_vm14, 1.0, %v2179_v3  ;;  %v2090_v47 = vsel %vm1350_vm15, 1.0, %v2179_v3  ;;  %v2091_v49 = vsel %vm1351_vm0, 1.0, %v2179_v3 }
0x1b7d   : > { %v1363_v45 = vsel %vm344_vm10, %v2089_v41, 0.0  ;;  %v1360_v46 = vsel %vm344_vm10, %v2088_v42, 0.0  ;;  %v1366_v48 = vsel %vm344_vm10, %v2090_v47, 0.0  ;;  %v1369_v50 = vsel %vm344_vm10, %v2091_v49, 0.0 }
0x1b7e   : > { %1364 = vadd.xlane.f32.xlu1 %v1363_v45  ;;  %1361 = vadd.xlane.f32.xlu0 %v1360_v46 }
0x1b82   : > { %1367 = vadd.xlane.f32.xlu1 %v1366_v48 }
0x1b86   : > { %1370 = vadd.xlane.f32.xlu1 %v1369_v50 }
0x1c0b   : > { %v1365_v52 = vpop.xlane.xlu1 %1364  ;;  %v1362_v53 = vpop.xlane.xlu0 %1361 }
0x1c0c   : > { %v1372_v56 = vadd.f32 %v1365_v52, %v1362_v53 }
0x1c0f   : > { %v1368_v54 = vpop.xlane.xlu1 %1367 }
0x1c10   : > { %v1373_v13 = vadd.f32 %v1372_v56, %v1368_v54 }
0x1c13   : > { %v1371_v59 = vpop.xlane.xlu1 %1370 }
0x1c14   : > { %v1374_v60 = vadd.f32 %v1373_v13, %v1371_v59 }
0x1c16   : > { %v1375_v61 = vrot.slane %v1374_v60, 4 }
0x1c18   : > { %v1376_v62 = vadd.f32 %v1375_v61, %v1374_v60 }
0x1c1a   : > { %v1377_v63 = vrot.slane %v1376_v62, 2 }
0x1c1c   : > { %v1378_v4 = vadd.f32 %v1377_v63, %v1376_v62 }
0x1c1e   : > { %v1379_v5 = vrot.slane %v1378_v4, 1 }
0x1c20   : > { %v1380_v8 = vadd.f32 %v1379_v5, %v1378_v4 }
0x1c22   : > { %vm1381_vm8 = vcmp.ge.f32.partialorder %v1380_v8, %v2371_v58 }
0x1c23   : > { %v1382_v9 = vsel %vm1381_vm8, %v1344_v37, %v1343_v36 }
0x1c24   : > { %v1383_v10 = vor.u32 64, %v1382_v9 }
0x1c26   : > { %1385 = vperm.xlu1 %2149, %v1383_v10  }
0x1ca5   : > { %v1386_v14 = vpop.permute.xlu1 %1385 }
0x1ca6   : > { %vm1388_vm9 = vcmp.ge.s32.totalorder %v2343_v24, %v1386_v14  ;;  %vm1387_vm11 = vcmp.ge.s32.totalorder %v2318_v12, %v1386_v14  ;;  %vm1389_vm12 = vcmp.ge.s32.totalorder %v2313_v11, %v1386_v14  ;;  %vm1390_vm14 = vcmp.ge.s32.totalorder %v2338_v23, %v1386_v14 }
0x1ca7   : > { %v2093_v15 = vsel %vm1388_vm9, 1.0, %v2179_v3  ;;  %v2092_v18 = vsel %vm1387_vm11, 1.0, %v2179_v3  ;;  %v2094_v21 = vsel %vm1389_vm12, 1.0, %v2179_v3  ;;  %v2095_v27 = vsel %vm1390_vm14, 1.0, %v2179_v3 }
0x1ca8   : > { %v1402_v19 = vsel %vm344_vm10, %v2093_v15, 0.0  ;;  %v1399_v20 = vsel %vm344_vm10, %v2092_v18, 0.0  ;;  %v1405_v22 = vsel %vm344_vm10, %v2094_v21, 0.0  ;;  %v1408_v28 = vsel %vm344_vm10, %v2095_v27, 0.0 }
0x1ca9   : > { %1403 = vadd.xlane.f32.xlu1 %v1402_v19  ;;  %1400 = vadd.xlane.f32.xlu0 %v1399_v20 }
0x1cad   : > { %1406 = vadd.xlane.f32.xlu0 %v1405_v22 }
0x1cb1   : > { %1409 = vadd.xlane.f32.xlu0 %v1408_v28 }
0x1d36   : > { %v1401_v29 = vpop.xlane.xlu0 %1400  ;;  %v1404_v30 = vpop.xlane.xlu1 %1403 }
0x1d37   : > { %v1411_v32 = vadd.f32 %v1404_v30, %v1401_v29 }
0x1d3a   : > { %v1407_v31 = vpop.xlane.xlu0 %1406 }
0x1d3b   : > { %v1412_v33 = vadd.f32 %v1411_v32, %v1407_v31 }
0x1d3e   : > { %v1410_v34 = vpop.xlane.xlu0 %1409 }
0x1d3f   : > { %v1413_v35 = vadd.f32 %v1412_v33, %v1410_v34 }
0x1d41   : > { %v1414_v36 = vrot.slane %v1413_v35, 4 }
0x1d43   : > { %v1415_v37 = vadd.f32 %v1414_v36, %v1413_v35 }
0x1d45   : > { %v1416_v38 = vrot.slane %v1415_v37, 2 }
0x1d47   : > { %v1417_v41 = vadd.f32 %v1416_v38, %v1415_v37 }
0x1d49   : > { %v1418_v42 = vrot.slane %v1417_v41, 1 }
0x1d4b   : > { %v1419_v45 = vadd.f32 %v1418_v42, %v1417_v41 }
0x1d4d   : > { %vm1420_vm15 = vcmp.ge.f32.partialorder %v1419_v45, %v2371_v58 }
0x1d4e   : > { %v1421_v46 = vsel %vm1420_vm15, %v1383_v10, %v1382_v9 }
0x1d4f   : > { %v1422_v47 = vor.u32 32, %v1421_v46 }
0x1d51   : > { %1424 = vperm.xlu0 %2148, %v1422_v47  }
0x1dd0   : > { %v1425_v48 = vpop.permute.xlu0 %1424 }
0x1dd1   : > { %vm1427_vm0 = vcmp.ge.s32.totalorder %v2343_v24, %v1425_v48  ;;  %vm1426_vm8 = vcmp.ge.s32.totalorder %v2318_v12, %v1425_v48  ;;  %vm1428_vm9 = vcmp.ge.s32.totalorder %v2313_v11, %v1425_v48  ;;  %vm1429_vm11 = vcmp.ge.s32.totalorder %v2338_v23, %v1425_v48 }
0x1dd2   : > { %v2097_v49 = vsel %vm1427_vm0, 1.0, %v2179_v3  ;;  %v2096_v50 = vsel %vm1426_vm8, 1.0, %v2179_v3  ;;  %v2098_v54 = vsel %vm1428_vm9, 1.0, %v2179_v3  ;;  %v2099_v13 = vsel %vm1429_vm11, 1.0, %v2179_v3 }
0x1dd3   : > { %v1441_v52 = vsel %vm344_vm10, %v2097_v49, 0.0  ;;  %v1438_v53 = vsel %vm344_vm10, %v2096_v50, 0.0  ;;  %v1444_v56 = vsel %vm344_vm10, %v2098_v54, 0.0  ;;  %v1447_v59 = vsel %vm344_vm10, %v2099_v13, 0.0 }
0x1dd4   : > { %1442 = vadd.xlane.f32.xlu1 %v1441_v52  ;;  %1439 = vadd.xlane.f32.xlu0 %v1438_v53 }
0x1dd8   : > { %1445 = vadd.xlane.f32.xlu1 %v1444_v56 }
0x1ddc   : > { %1448 = vadd.xlane.f32.xlu1 %v1447_v59 }
0x1e61   : > { %v1443_v60 = vpop.xlane.xlu1 %1442  ;;  %v1440_v61 = vpop.xlane.xlu0 %1439 }
0x1e62   : > { %v1450_v63 = vadd.f32 %v1443_v60, %v1440_v61 }
0x1e65   : > { %v1446_v62 = vpop.xlane.xlu1 %1445 }
0x1e66   : > { %v1451_v4 = vadd.f32 %v1450_v63, %v1446_v62 }
0x1e69   : > { %v1449_v5 = vpop.xlane.xlu1 %1448 }
0x1e6a   : > { %v1452_v8 = vadd.f32 %v1451_v4, %v1449_v5 }
0x1e6c   : > { %v1453_v9 = vrot.slane %v1452_v8, 4 }
0x1e6e   : > { %v1454_v10 = vadd.f32 %v1453_v9, %v1452_v8 }
0x1e70   : > { %v1455_v14 = vrot.slane %v1454_v10, 2 }
0x1e72   : > { %v1456_v15 = vadd.f32 %v1455_v14, %v1454_v10 }
0x1e74   : > { %v1457_v18 = vrot.slane %v1456_v15, 1 }
0x1e76   : > { %v1458_v19 = vadd.f32 %v1457_v18, %v1456_v15 }
0x1e78   : > { %vm1459_vm12 = vcmp.ge.f32.partialorder %v1458_v19, %v2371_v58 }
0x1e79   : > { %v1460_v20 = vsel %vm1459_vm12, %v1422_v47, %v1421_v46 }
0x1e7a   : > { %v1461_v21 = vor.u32 16, %v1460_v20 }
0x1e7c   : > { %1463 = vperm.xlu1 %2149, %v1461_v21  }
0x1efb   : > { %v1464_v22 = vpop.permute.xlu1 %1463 }
0x1efc   : > { %vm1466_vm14 = vcmp.ge.s32.totalorder %v2343_v24, %v1464_v22  ;;  %vm1465_vm15 = vcmp.ge.s32.totalorder %v2318_v12, %v1464_v22  ;;  %vm1467_vm0 = vcmp.ge.s32.totalorder %v2313_v11, %v1464_v22  ;;  %vm1468_vm8 = vcmp.ge.s32.totalorder %v2338_v23, %v1464_v22 }
0x1efd   : > { %v2101_v27 = vsel %vm1466_vm14, 1.0, %v2179_v3  ;;  %v2100_v28 = vsel %vm1465_vm15, 1.0, %v2179_v3  ;;  %v2102_v31 = vsel %vm1467_vm0, 1.0, %v2179_v3  ;;  %v2103_v33 = vsel %vm1468_vm8, 1.0, %v2179_v3 }
0x1efe   : > { %v1480_v29 = vsel %vm344_vm10, %v2101_v27, 0.0  ;;  %v1477_v30 = vsel %vm344_vm10, %v2100_v28, 0.0  ;;  %v1483_v32 = vsel %vm344_vm10, %v2102_v31, 0.0  ;;  %v1486_v34 = vsel %vm344_vm10, %v2103_v33, 0.0 }
0x1eff   : > { %1481 = vadd.xlane.f32.xlu1 %v1480_v29  ;;  %1478 = vadd.xlane.f32.xlu0 %v1477_v30 }
0x1f03   : > { %1484 = vadd.xlane.f32.xlu0 %v1483_v32 }
0x1f07   : > { %1487 = vadd.xlane.f32.xlu0 %v1486_v34 }
0x1f8c   : > { %v1479_v35 = vpop.xlane.xlu0 %1478  ;;  %v1482_v36 = vpop.xlane.xlu1 %1481 }
0x1f8d   : > { %v1489_v38 = vadd.f32 %v1482_v36, %v1479_v35 }
0x1f90   : > { %v1485_v37 = vpop.xlane.xlu0 %1484 }
0x1f91   : > { %v1490_v41 = vadd.f32 %v1489_v38, %v1485_v37 }
0x1f94   : > { %v1488_v42 = vpop.xlane.xlu0 %1487 }
0x1f95   : > { %v1491_v45 = vadd.f32 %v1490_v41, %v1488_v42 }
0x1f97   : > { %v1492_v46 = vrot.slane %v1491_v45, 4 }
0x1f99   : > { %v1493_v47 = vadd.f32 %v1492_v46, %v1491_v45 }
0x1f9b   : > { %v1494_v48 = vrot.slane %v1493_v47, 2 }
0x1f9d   : > { %v1495_v49 = vadd.f32 %v1494_v48, %v1493_v47 }
0x1f9f   : > { %v1496_v50 = vrot.slane %v1495_v49, 1 }
0x1fa1   : > { %v1497_v52 = vadd.f32 %v1496_v50, %v1495_v49 }
0x1fa3   : > { %vm1498_vm9 = vcmp.ge.f32.partialorder %v1497_v52, %v2371_v58 }
0x1fa4   : > { %v1499_v53 = vsel %vm1498_vm9, %v1461_v21, %v1460_v20 }
0x1fa5   : > { %v1500_v54 = vor.u32 8, %v1499_v53 }
0x1fa7   : > { %1502 = vperm.xlu0 %2148, %v1500_v54  }
0x2026   : > { %v1503_v56 = vpop.permute.xlu0 %1502 }
0x2027   : > { %vm1505_vm11 = vcmp.ge.s32.totalorder %v2343_v24, %v1503_v56  ;;  %vm1504_vm12 = vcmp.ge.s32.totalorder %v2318_v12, %v1503_v56  ;;  %vm1506_vm14 = vcmp.ge.s32.totalorder %v2313_v11, %v1503_v56  ;;  %vm1507_vm15 = vcmp.ge.s32.totalorder %v2338_v23, %v1503_v56 }
0x2028   : > { %v2105_v13 = vsel %vm1505_vm11, 1.0, %v2179_v3  ;;  %v2104_v59 = vsel %vm1504_vm12, 1.0, %v2179_v3  ;;  %v2106_v62 = vsel %vm1506_vm14, 1.0, %v2179_v3  ;;  %v2107_v4 = vsel %vm1507_vm15, 1.0, %v2179_v3 }
0x2029   : > { %v1519_v60 = vsel %vm344_vm10, %v2105_v13, 0.0  ;;  %v1516_v61 = vsel %vm344_vm10, %v2104_v59, 0.0  ;;  %v1522_v63 = vsel %vm344_vm10, %v2106_v62, 0.0  ;;  %v1525_v5 = vsel %vm344_vm10, %v2107_v4, 0.0 }
0x202a   : > { %1520 = vadd.xlane.f32.xlu1 %v1519_v60  ;;  %1517 = vadd.xlane.f32.xlu0 %v1516_v61 }
0x202e   : > { %1523 = vadd.xlane.f32.xlu1 %v1522_v63 }
0x2032   : > { %1526 = vadd.xlane.f32.xlu1 %v1525_v5 }
0x20b7   : > { %v1521_v8 = vpop.xlane.xlu1 %1520  ;;  %v1518_v9 = vpop.xlane.xlu0 %1517 }
0x20b8   : > { %v1528_v14 = vadd.f32 %v1521_v8, %v1518_v9 }
0x20bb   : > { %v1524_v10 = vpop.xlane.xlu1 %1523 }
0x20bc   : > { %v1529_v15 = vadd.f32 %v1528_v14, %v1524_v10 }
0x20bf   : > { %v1527_v18 = vpop.xlane.xlu1 %1526 }
0x20c0   : > { %v1530_v19 = vadd.f32 %v1529_v15, %v1527_v18 }
0x20c2   : > { %v1531_v20 = vrot.slane %v1530_v19, 4 }
0x20c4   : > { %v1532_v21 = vadd.f32 %v1531_v20, %v1530_v19 }
0x20c6   : > { %v1533_v22 = vrot.slane %v1532_v21, 2 }
0x20c8   : > { %v1534_v27 = vadd.f32 %v1533_v22, %v1532_v21 }
0x20ca   : > { %v1535_v28 = vrot.slane %v1534_v27, 1 }
0x20cc   : > { %v1536_v29 = vadd.f32 %v1535_v28, %v1534_v27 }
0x20ce   : > { %vm1537_vm0 = vcmp.ge.f32.partialorder %v1536_v29, %v2371_v58 }
0x20cf   : > { %v1538_v30 = vsel %vm1537_vm0, %v1500_v54, %v1499_v53 }
0x20d0   : > { %v1539_v31 = vor.u32 4, %v1538_v30 }
0x20d2   : > { %1541 = vperm.xlu1 %2149, %v1539_v31  }
0x2151   : > { %v1542_v32 = vpop.permute.xlu1 %1541 }
0x2152   : > { %vm1544_vm8 = vcmp.ge.s32.totalorder %v2343_v24, %v1542_v32  ;;  %vm1543_vm9 = vcmp.ge.s32.totalorder %v2318_v12, %v1542_v32  ;;  %vm1545_vm11 = vcmp.ge.s32.totalorder %v2313_v11, %v1542_v32  ;;  %vm1546_vm12 = vcmp.ge.s32.totalorder %v2338_v23, %v1542_v32 }
0x2153   : > { %v2109_v33 = vsel %vm1544_vm8, 1.0, %v2179_v3  ;;  %v2108_v34 = vsel %vm1543_vm9, 1.0, %v2179_v3  ;;  %v2110_v37 = vsel %vm1545_vm11, 1.0, %v2179_v3  ;;  %v2111_v41 = vsel %vm1546_vm12, 1.0, %v2179_v3 }
0x2154   : > { %v1558_v35 = vsel %vm344_vm10, %v2109_v33, 0.0  ;;  %v1555_v36 = vsel %vm344_vm10, %v2108_v34, 0.0  ;;  %v1561_v38 = vsel %vm344_vm10, %v2110_v37, 0.0  ;;  %v1564_v42 = vsel %vm344_vm10, %v2111_v41, 0.0 }
0x2155   : > { %1559 = vadd.xlane.f32.xlu1 %v1558_v35  ;;  %1556 = vadd.xlane.f32.xlu0 %v1555_v36 }
0x2159   : > { %1562 = vadd.xlane.f32.xlu0 %v1561_v38 }
0x215d   : > { %1565 = vadd.xlane.f32.xlu0 %v1564_v42 }
0x21e2   : > { %v1557_v45 = vpop.xlane.xlu0 %1556  ;;  %v1560_v46 = vpop.xlane.xlu1 %1559 }
0x21e3   : > { %v1567_v48 = vadd.f32 %v1560_v46, %v1557_v45 }
0x21e6   : > { %v1563_v47 = vpop.xlane.xlu0 %1562 }
0x21e7   : > { %v1568_v49 = vadd.f32 %v1567_v48, %v1563_v47 }
0x21ea   : > { %v1566_v50 = vpop.xlane.xlu0 %1565 }
0x21eb   : > { %v1569_v52 = vadd.f32 %v1568_v49, %v1566_v50 }
0x21ed   : > { %v1570_v53 = vrot.slane %v1569_v52, 4 }
0x21ef   : > { %v1571_v54 = vadd.f32 %v1570_v53, %v1569_v52  ;;  %v1755_v52 = vsel %vm344_vm10, %v2325_v16, 0.0  ;;  %v262_v53 = vsel %vm258_vm2, 1, %v2178_v0 }
0x21f1   : > { %v1572_v56 = vrot.slane %v1571_v54, 2 }
0x21f3   : > { %v1573_v13 = vadd.f32 %v1572_v56, %v1571_v54  ;;  %v263_v54 = vsel %vm259_vm3, 1, %v2178_v0  ;;  %v1761_v56 = vsel %vm344_vm10, %v2330_v17, 0.0  ;;  %v1758_v17 = vsel %vm344_vm10, %v2348_v25, 0.0 }
0x21f5   : > { %v1574_v59 = vrot.slane %v1573_v13, 1 }
0x21f7   : > { %v1575_v60 = vadd.f32 %v1574_v59, %v1573_v13 }
0x21f9   : > { %vm1576_vm14 = vcmp.ge.f32.partialorder %v1575_v60, %v2371_v58 }
0x21fa   : > { %v1577_v61 = vsel %vm1576_vm14, %v1539_v31, %v1538_v30 }
0x21fb   : > { %v1578_v62 = vor.u32 2, %v1577_v61 }
0x21fd   : > { %1580 = vperm.xlu0 %2148, %v1578_v62  }
0x227c   : > { %v1581_v63 = vpop.permute.xlu0 %1580 }
0x227d   : > { %vm1583_vm15 = vcmp.ge.s32.totalorder %v2343_v24, %v1581_v63  ;;  %vm1582_vm0 = vcmp.ge.s32.totalorder %v2318_v12, %v1581_v63  ;;  %vm1584_vm8 = vcmp.ge.s32.totalorder %v2313_v11, %v1581_v63  ;;  %vm1585_vm9 = vcmp.ge.s32.totalorder %v2338_v23, %v1581_v63 }
0x227e   : > { %v2113_v4 = vsel %vm1583_vm15, 1.0, %v2179_v3  ;;  %v2112_v5 = vsel %vm1582_vm0, 1.0, %v2179_v3  ;;  %v2114_v10 = vsel %vm1584_vm8, 1.0, %v2179_v3  ;;  %v2115_v15 = vsel %vm1585_vm9, 1.0, %v2179_v3 }
0x227f   : > { %v1597_v8 = vsel %vm344_vm10, %v2113_v4, 0.0  ;;  %v1594_v9 = vsel %vm344_vm10, %v2112_v5, 0.0  ;;  %v1600_v14 = vsel %vm344_vm10, %v2114_v10, 0.0  ;;  %v1603_v18 = vsel %vm344_vm10, %v2115_v15, 0.0 }
0x2280   : > { %1598 = vadd.xlane.f32.xlu1 %v1597_v8  ;;  %1595 = vadd.xlane.f32.xlu0 %v1594_v9 }
0x2284   : > { %1601 = vadd.xlane.f32.xlu1 %v1600_v14  ;;  %v264_v14 = vsel %vm260_vm1, 1, %v2178_v0 }
0x2288   : > { %1604 = vadd.xlane.f32.xlu1 %v1603_v18 }
0x230d   : > { %v1599_v19 = vpop.xlane.xlu1 %1598  ;;  %v1596_v20 = vpop.xlane.xlu0 %1595 }
0x230e   : > { %v1606_v22 = vadd.f32 %v1599_v19, %v1596_v20 }
0x2311   : > { %v1602_v21 = vpop.xlane.xlu1 %1601 }
0x2312   : > { %v1607_v27 = vadd.f32 %v1606_v22, %v1602_v21 }
0x2315   : > { %v1605_v28 = vpop.xlane.xlu1 %1604 }
0x2316   : > { %v1608_v29 = vadd.f32 %v1607_v27, %v1605_v28  ;;  %v289_v27 = vld [vmem:[%s2804_s26 + $0x8] sm:$0xff] }
0x2317   : > { %v293_v28 = vld [vmem:[%s2810_s29 + $0x8] sm:$0xff] }
0x2318   : > { %v1609_v30 = vrot.slane %v1608_v29, 4 }
0x231a   : > { %v1610_v31 = vadd.f32 %v1609_v30, %v1608_v29 }
0x231c   : > { %v1611_v32 = vrot.slane %v1610_v31, 2 }
0x231e   : > { %v1612_v33 = vadd.f32 %v1611_v32, %v1610_v31 }
0x2320   : > { %v1613_v34 = vrot.slane %v1612_v33, 1 }
0x2322   : > { %v1614_v35 = vadd.f32 %v1613_v34, %v1612_v33  ;;  %v297_v33 = vsub.f32 %v289_v27, %v293_v28 }
0x2324   : > { %vm1615_vm11 = vcmp.ge.f32.partialorder %v1614_v35, %v2371_v58 }
0x2325   : > { %v1616_v36 = vsel %vm1615_vm11, %v1578_v62, %v1577_v61 }
0x2326   : > { %v1617_v37 = vor.u32 1, %v1616_v36 }
0x2328   : > { %1619 = vperm.xlu1 %2149, %v1617_v37  }
0x23a7   : > { %v1620_v38 = vpop.permute.xlu1 %1619 }
0x23a8   : > { %vm1622_vm12 = vcmp.ge.s32.totalorder %v2343_v24, %v1620_v38  ;;  %vm1621_vm14 = vcmp.ge.s32.totalorder %v2318_v12, %v1620_v38  ;;  %vm1623_vm15 = vcmp.ge.s32.totalorder %v2313_v11, %v1620_v38  ;;  %vm1624_vm0 = vcmp.ge.s32.totalorder %v2338_v23, %v1620_v38 }
0x23a9   : > { %v2117_v41 = vsel %vm1622_vm12, 1.0, %v2179_v3  ;;  %v2116_v42 = vsel %vm1621_vm14, 1.0, %v2179_v3  ;;  %v2118_v47 = vsel %vm1623_vm15, 1.0, %v2179_v3  ;;  %v2119_v49 = vsel %vm1624_vm0, 1.0, %v2179_v3 }
0x23aa   : > { %v1636_v45 = vsel %vm344_vm10, %v2117_v41, 0.0  ;;  %v1633_v46 = vsel %vm344_vm10, %v2116_v42, 0.0  ;;  %v1639_v48 = vsel %vm344_vm10, %v2118_v47, 0.0  ;;  %v1642_v50 = vsel %vm344_vm10, %v2119_v49, 0.0 }
0x23ab   : > { %1637 = vadd.xlane.f32.xlu1 %v1636_v45  ;;  %1634 = vadd.xlane.f32.xlu0 %v1633_v46  ;;  %v301_v41 = vand.u32 2147483647, %v297_v33  ;;  %v309_v42 = vmul.f32 0.5, %v297_v33 }
0x23ad   : > { %v313_v49 = vmul.f32 %v309_v42, %v297_v33  ;;  %vm305_vm0 = vcmp.lt.f32.partialorder %v301_v41, 1.0 }
0x23af   : > { %1640 = vadd.xlane.f32.xlu0 %v1639_v48 }
0x23b3   : > { %1643 = vadd.xlane.f32.xlu0 %v1642_v50 }
0x23b7   : > { %1756 = vadd.xlane.f32.xlu0 %v1755_v52 }
0x23bc   : > { %325 = vperm.xlu1 %2149, %v262_v53  }
0x23c0   : > { %328 = vperm.xlu1 %2149, %v263_v54  }
0x23e4   : > { %1762 = vadd.xlane.f32.xlu1 %v1761_v56 }
0x2438   : > { %v1635_v13 = vpop.xlane.xlu0 %1634  ;;  %v1638_v59 = vpop.xlane.xlu1 %1637 }
0x2439   : > { %v1645_v61 = vadd.f32 %v1638_v59, %v1635_v13  ;;  %v1764_v13 = vsel %vm344_vm10, %v2353_v26, 0.0  ;;  %v265_v26 = vsel %vm261_vm13, 1, %v2178_v0  ;;  %v2166_v0 = vld [vmem:[%s2257_s23] sm:$0xff] }
0x243c   : > { %v1641_v60 = vpop.xlane.xlu0 %1640 }
0x243d   : > { %v1646_v16 = vadd.f32 %v1645_v61, %v1641_v60 }
0x2440   : > { %v1644_v62 = vpop.xlane.xlu0 %1643 }
0x2441   : > { %v1647_v63 = vadd.f32 %v1646_v16, %v1644_v62  ;;  %v294_v62 = vld [vmem:[%s2810_s29 + $0x10] sm:$0xff] }
0x2443   : > { %v1648_v4 = vrot.slane %v1647_v63, 4 }
0x2444   : > { %v2780_v15 = vpop.xlane.xlu0 %1756 }
0x2445   : > { %v1649_v2 = vadd.f32 %v1648_v4, %v1647_v63 }
0x2447   : > { %v1650_v5 = vrot.slane %v1649_v2, 2 }
0x2449   : > { %v1651_v8 = vadd.f32 %v1650_v5, %v1649_v2 }
0x244b   : > { %v1652_v9 = vrot.slane %v1651_v8, 1 }
0x244d   : > { %v1653_v10 = vadd.f32 %v1652_v9, %v1651_v8 }
0x244f   : > { %vm1654_vm2 = vcmp.ge.f32.partialorder %v1653_v10, %v2371_v58 }
0x2450   : > { %v1655_v7 = vsel %vm1654_vm2, %v1617_v37, %v1616_v36  ;;  %v2826_v36 = vpop.permute.xlu1 %325 }
0x2451   : > { %1657 = vperm.xlu0 %2148, %v1655_v7  }
0x2470   : > { %1759 = vadd.xlane.f32.xlu0 %v1758_v17 }
0x2486   : > { %331 = vperm.xlu0 %2148, %v264_v14   ;;  %v1780_v14 = vsel %vm344_vm10, %v2166_v0, -inf }
0x24d0   : > { %v1658_v18 = vpop.permute.xlu0 %1657 }
0x24d1   : > { %vm1660_vm3 = vcmp.gt.s32.totalorder %v2343_v24, %v1658_v18  ;;  %vm1659_vm8 = vcmp.gt.s32.totalorder %v2318_v12, %v1658_v18  ;;  %vm1661_vm9 = vcmp.gt.s32.totalorder %v2313_v11, %v1658_v18  ;;  %vm1662_vm11 = vcmp.gt.s32.totalorder %v2338_v23, %v1658_v18 }
0x24d2   : > { %v2121_v25 = vsel %vm1660_vm3, 1.0, %v2179_v3  ;;  %v2120_v1 = vsel %vm1659_vm8, 1.0, %v2179_v3  ;;  %v2122_v21 = vsel %vm1661_vm9, 1.0, %v2179_v3  ;;  %v2123_v22 = vsel %vm1662_vm11, 1.0, %v2179_v3 }
0x24d3   : > { %v1674_v19 = vsel %vm344_vm10, %v2121_v25, 0.0  ;;  %v1671_v20 = vsel %vm344_vm10, %v2120_v1, 0.0  ;;  %v1677_v29 = vsel %vm344_vm10, %v2122_v21, 0.0  ;;  %v1680_v30 = vsel %vm344_vm10, %v2123_v22, 0.0  ;;  %v292_v25 = vld [vmem:[%s2810_s29] sm:$0xff] }
0x24d4   : > { %1675 = vadd.xlane.f32.xlu1 %v1674_v19  ;;  %1672 = vadd.xlane.f32.xlu0 %v1671_v20  ;;  %v1692_v31 = vsel %vm1659_vm8, %v2318_v12, 0.0  ;;  %v1693_v32 = vsel %vm1660_vm3, %v2343_v24, 0.0  ;;  %vm1720_vm1 = vcmp.le.s32.totalorder %v2343_v24, %v1658_v18  ;;  %vm1719_vm12 = vcmp.le.s32.totalorder %v2318_v12, %v1658_v18 }
0x24d5   : > { %v1696_v34 = vsel %vm344_vm10, %v1692_v31, 0.0  ;;  %v1699_v35 = vsel %vm344_vm10, %v1693_v32, 0.0  ;;  %v1724_v37 = vsel %vm1720_vm1, %v2343_v24, -inf  ;;  %v1723_v38 = vsel %vm1719_vm12, %v2318_v12, -inf  ;;  %v329_v12 = vpop.permute.xlu1 %328 }
0x24d6   : > { %vm1721_vm14 = vcmp.le.s32.totalorder %v2313_v11, %v1658_v18  ;;  %v1730_v45 = vsel %vm344_vm10, %v1724_v37, -inf  ;;  %v1727_v46 = vsel %vm344_vm10, %v1723_v38, -inf  ;;  %v1695_v48 = vsel %vm1662_vm11, %v2338_v23, 0.0 }
0x24d7   : > { %v1725_v47 = vsel %vm1721_vm14, %v2313_v11, -inf  ;;  %v1989_v24 = vadd.f32 -0.5, %v301_v41  ;;  %vm1722_vm15 = vcmp.le.s32.totalorder %v2338_v23, %v1658_v18  ;;  %v1705_v52 = vsel %vm344_vm10, %v1695_v48, 0.0  ;;  %v288_v18 = vld [vmem:[%s2804_s26] sm:$0xff] }
0x24d8   : > { %1678 = vadd.xlane.f32.xlu1 %v1677_v29  ;;  %1681 = vadd.xlane.f32.xlu0 %v1680_v30  ;;  %v1733_v50 = vsel %vm344_vm10, %v1725_v47, -inf  ;;  %v1726_v53 = vsel %vm1722_vm15, %v2338_v23, -inf  ;;  %vm337_vm2 = vcmp.eq.s32.totalorder %v329_v12, 1  ;;  %v1694_v60 = vsel %vm1661_vm9, %v2313_v11, 0.0  ;;  %v290_v23 = vld [vmem:[%s2804_s26 + $0x10] sm:$0xff]  ;;  %v291_v12 = vld [vmem:[%s2804_s26 + $0x18] sm:$0xff] }
0x24d9   : > { %v321_v54 = vsel %vm305_vm0, %v313_v49, %v1989_v24  ;;  %v1736_v56 = vsel %vm344_vm10, %v1726_v53, -inf  ;;  %v1702_v61 = vsel %vm344_vm10, %v1694_v60, 0.0  ;;  %v298_v63 = vsub.f32 %v290_v23, %v294_v62 }
0x24da   : > { %v341_v59 = vsel %vm337_vm2, %v321_v54, 0.0  ;;  %v296_v1 = vsub.f32 %v288_v18, %v292_v25  ;;  %v1792_v20 = vsel %vm385_vm5, %v2166_v0, -inf  ;;  %vm336_vm9 = vcmp.eq.s32.totalorder %v2826_v36, 1 }
0x24db   : > { %v348_v16 = vsel %vm344_vm10, %v341_v59, 0.0  ;;  %v302_v4 = vand.u32 2147483647, %v298_v63  ;;  %v310_v2 = vmul.f32 0.5, %v298_v63  ;;  %v1796_v27 = vsel %vm344_vm10, %v1792_v20, -inf  ;;  %v2169_v20 = vld [vmem:[%s2257_s23 + $0x10] sm:$0xff] }
0x24dc   : > { %1697 = vadd.xlane.f32.xlu1 %v1696_v34  ;;  %1700 = vadd.xlane.f32.xlu0 %v1699_v35  ;;  %v300_v21 = vand.u32 2147483647, %v296_v1  ;;  %v308_v22 = vmul.f32 0.5, %v296_v1  ;;  %v2875_v34 = vld [vmem:[%s2257_s23 + $0x18] sm:$0xff]  ;;  %v1763_v35 = vpop.xlane.xlu1 %1762 }
0x24dd   : > { %v314_v8 = vmul.f32 %v310_v2, %v298_v63  ;;  %v1990_v9 = vadd.f32 -0.5, %v302_v4  ;;  %vm306_vm3 = vcmp.lt.f32.partialorder %v302_v4, 1.0  ;;  %v1789_v57 = vsel %vm344_vm10, %v2875_v34, -inf }
0x24de   : > { %v312_v29 = vmul.f32 %v308_v22, %v296_v1  ;;  %v1988_v30 = vadd.f32 -0.5, %v300_v21  ;;  %vm304_vm13 = vcmp.lt.f32.partialorder %v300_v21, 1.0  ;;  %v1786_v21 = vsel %vm344_vm10, %v2169_v20, -inf }
0x24df   : > { %v322_v10 = vsel %vm306_vm3, %v314_v8, %v1990_v9 }
0x24e0   : > { %1731 = vmax.xlane.f32.xlu1 %v1730_v45  ;;  %1728 = vmax.xlane.f32.xlu0 %v1727_v46  ;;  %v320_v32 = vsel %vm304_vm13, %v312_v29, %v1988_v30  ;;  %v1794_v29 = vsel %vm387_vm4, %v2169_v20, -inf }
0x24e1   : > { %v340_v44 = vsel %vm336_vm9, %v320_v32, 0.0  ;;  %v1802_v32 = vsel %vm344_vm10, %v1794_v29, -inf  ;;  %vm1854_vm9 = vcmp.eq.s32.totalorder %v2269_v39, 0 }
0x24e2   : > { %v345_v33 = vsel %vm344_vm10, %v340_v44, 0.0 }
0x24e4   : > { %1734 = vmax.xlane.f32.xlu1 %v1733_v50  ;;  %1706 = vadd.xlane.f32.xlu0 %v1705_v52  ;;  %v295_v50 = vld [vmem:[%s2810_s29 + $0x18] sm:$0xff] }
0x24e8   : > { %1737 = vmax.xlane.f32.xlu1 %v1736_v56  ;;  %1765 = vadd.xlane.f32.xlu0 %v1764_v13  ;;  %v299_v56 = vsub.f32 %v291_v12, %v295_v50 }
0x24ea   : > { %v311_v23 = vmul.f32 0.5, %v299_v56 }
0x24ec   : > { %1703 = vadd.xlane.f32.xlu1 %v1702_v61  ;;  %349 = vadd.xlane.f32.xlu0 %v348_v16  ;;  %v303_v16 = vand.u32 2147483647, %v299_v56  ;;  %v315_v2 = vmul.f32 %v311_v23, %v299_v56 }
0x24ee   : > { %vm307_vm5 = vcmp.lt.f32.partialorder %v303_v16, 1.0 }
0x24fd   : > { %334 = vperm.xlu1 %2149, %v265_v26   ;;  %v1760_v11 = vpop.xlane.xlu0 %1759 }
0x24fe   : > { %v2855_v5 = vadd.f32 %v1760_v11, %v2780_v15  ;;  %v2167_v15 = vld [vmem:[%s2257_s23 + $0x8] sm:$0xff]  ;;  %v1991_v11 = vadd.f32 -0.5, %v303_v16 }
0x24ff   : > { %v1783_v19 = vsel %vm344_vm10, %v2167_v15, -inf  ;;  %v1793_v28 = vsel %vm386_vm7, %v2167_v15, -inf }
0x2500   : > { %v1799_v31 = vsel %vm344_vm10, %v1793_v28, -inf  ;;  %v1768_v15 = vadd.f32 %v2855_v5, %v1763_v35  ;;  %v1795_v5 = vsel %vm388_vm6, %v2875_v34, -inf }
0x2501   : > { %v1805_v35 = vsel %vm344_vm10, %v1795_v5, -inf }
0x2505   : > { %v332_v7 = vpop.permute.xlu0 %331 }
0x2506   : > { %vm338_vm8 = vcmp.eq.s32.totalorder %v332_v7, 1 }
0x2507   : > { %v342_v17 = vsel %vm338_vm8, %v322_v10, 0.0 }
0x2508   : > { %v351_v6 = vsel %vm344_vm10, %v342_v17, 0.0 }
0x2509   : > { %352 = vadd.xlane.f32.xlu0 %v351_v6  ;;  %v323_v6 = vsel %vm307_vm5, %v315_v2, %v1991_v11  ;;  %vm1856_vm5 = vcmp.eq.s32.totalorder %v2269_v39, 1 }
0x250d   : > { %1781 = vmax.xlane.f32.xlu0 %v1780_v14 }
0x2511   : > { %1784 = vmax.xlane.f32.xlu0 %v1783_v19 }
0x2515   : > { %1797 = vmax.xlane.f32.xlu0 %v1796_v27 }
0x2519   : > { %1800 = vmax.xlane.f32.xlu0 %v1799_v31 }
0x2521   : > { %346 = vadd.xlane.f32.xlu1 %v345_v33 }
0x2525   : > { %1790 = vmax.xlane.f32.xlu1 %v1789_v57 }
0x2536   : > { %1859 = vperm.xlu1 %2149, %v2368_v51  }
0x2561   : > { %v1676_v37 = vpop.xlane.xlu1 %1675  ;;  %v1673_v38 = vpop.xlane.xlu0 %1672 }
0x2562   : > { %v1683_v41 = vadd.f32 %v1676_v37, %v1673_v38 }
0x2565   : > { %v1679_v42 = vpop.xlane.xlu1 %1678  ;;  %v1682_v45 = vpop.xlane.xlu0 %1681 }
0x2566   : > { %v1684_v36 = vadd.f32 %v1683_v41, %v1679_v42 }
0x2568   : > { %v1685_v46 = vadd.f32 %v1684_v36, %v1682_v45 }
0x2569   : > { %v1698_v47 = vpop.xlane.xlu1 %1697  ;;  %v1701_v53 = vpop.xlane.xlu0 %1700 }
0x256a   : > { %v1686_v48 = vrot.slane %v1685_v46, 4  ;;  %v1708_v7 = vadd.f32 %v1701_v53, %v1698_v47 }
0x256c   : > { %v1687_v49 = vadd.f32 %v1686_v48, %v1685_v46 }
0x256d   : > { %v1732_v24 = vpop.xlane.xlu1 %1731  ;;  %v1729_v61 = vpop.xlane.xlu0 %1728 }
0x256e   : > { %v1688_v52 = vrot.slane %v1687_v49, 2  ;;  %v1739_v18 = vmax.f32 %v1729_v61, %v1732_v24 }
0x2570   : > { %v1689_v54 = vadd.f32 %v1688_v52, %v1687_v49 }
0x2571   : > { %v1735_v13 = vpop.xlane.xlu1 %1734  ;;  %v1707_v9 = vpop.xlane.xlu0 %1706 }
0x2572   : > { %v1690_v59 = vrot.slane %v1689_v54, 1 }
0x2574   : > { %v1691_v60 = vadd.f32 %v1690_v59, %v1689_v54 }
0x2575   : > { %v1738_v62 = vpop.xlane.xlu1 %1737  ;;  %v1766_v1 = vpop.xlane.xlu0 %1765 }
0x2576   : > { %v1717_v63 = vsub.f32 %v2371_v58, %v1691_v60  ;;  %v1778_v4 = vadd.f32 %v1691_v60, %v2368_v51  ;;  %v1740_v17 = vmax.f32 %v1735_v13, %v1738_v62  ;;  %v1769_v22 = vadd.f32 %v1768_v15, %v1766_v1 }
0x2578   : > { %v1718_v26 = vmax.f32 %v1717_v63, 0.0  ;;  %v1741_v58 = vmax.f32 %v1739_v18, %v1740_v17  ;;  %v1770_v30 = vrot.slane %v1769_v22, 4 }
0x2579   : > { %v1704_v8 = vpop.xlane.xlu1 %1703  ;;  %v350_v34 = vpop.xlane.xlu0 %349 }
0x257a   : > { %v1779_v10 = vadd.f32 %v1778_v4, %v1718_v26  ;;  %v1709_v0 = vadd.f32 %v1708_v7, %v1704_v8  ;;  %v1742_v27 = vrot.slane %v1741_v58, 4  ;;  %v1771_v33 = vadd.f32 %v1770_v30, %v1769_v22 }
0x257b   : > { %vm1748_vm4 = vcmp.gt.f32.partialorder %v1718_v26, 0.5 }
0x257c   : > { %1875 = vperm.xlu1 %2149, %v1779_v10   ;;  %v1710_v19 = vadd.f32 %v1709_v0, %v1707_v9  ;;  %v1743_v31 = vmax.f32 %v1741_v58, %v1742_v27  ;;  %v1772_v38 = vrot.slane %v1771_v33, 2 }
0x257d   : > { %v335_v14 = vpop.permute.xlu1 %334 }
0x257e   : > { %vm339_vm7 = vcmp.eq.s32.totalorder %v335_v14, 1  ;;  %v1711_v28 = vrot.slane %v1710_v19, 4  ;;  %v1744_v57 = vrot.slane %v1743_v31, 2  ;;  %v1773_v42 = vadd.f32 %v1772_v38, %v1771_v33 }
0x257f   : > { %v343_v25 = vsel %vm339_vm7, %v323_v6, 0.0  ;;  %vm1864_vm7 = vcmp.eq.s32.totalorder %v2269_v39, 2 }
0x2580   : > { %v354_v51 = vsel %vm344_vm10, %v343_v25, 0.0  ;;  %v1712_v44 = vadd.f32 %v1711_v28, %v1710_v19  ;;  %v1745_v43 = vmax.f32 %v1743_v31, %v1744_v57  ;;  %v1774_v46 = vrot.slane %v1773_v42, 1 }
0x2581   : > { %355 = vadd.xlane.f32.xlu0 %v354_v51 }
0x2582   : > { %v1713_v37 = vrot.slane %v1712_v44, 2  ;;  %v1746_v36 = vrot.slane %v1745_v43, 1  ;;  %v1775_v49 = vadd.f32 %v1774_v46, %v1773_v42 }
0x2584   : > { %v1714_v41 = vadd.f32 %v1713_v37, %v1712_v44  ;;  %v1747_v47 = vmax.f32 %v1745_v43, %v1746_v36 }
0x2585   : > { %1787 = vmax.xlane.f32.xlu0 %v1786_v21 }
0x2586   : > { %v1715_v45 = vrot.slane %v1714_v41, 1  ;;  %v1749_v24 = vmul.f32 %v1747_v47, %v1718_v26 }
0x2588   : > { %v1716_v48 = vadd.f32 %v1715_v45, %v1714_v41  ;;  %v1750_v40 = vsel %vm1748_vm4, %v1749_v24, 0.0  ;;  %vm1872_vm4 = vcmp.eq.s32.totalorder %v2269_v39, 3 }
0x2589   : > { %1803 = vmax.xlane.f32.xlu0 %v1802_v32 }
0x258a   : > { %v1776_v12 = vadd.f32 %v1775_v49, %v1716_v48 }
0x258c   : > { %v1777_v55 = vadd.f32 %v1776_v12, %v1750_v40 }
0x258d   : > { %1806 = vmax.xlane.f32.xlu0 %v1805_v35 }
0x2596   : > { %v353_v50 = vpop.xlane.xlu0 %352 }
0x259a   : > { %v1782_v52 = vpop.xlane.xlu0 %1781 }
0x259b   : > { %vm1808_vm6 = vcmp.gt.f32.partialorder %v1782_v52, 0.0 }
0x259c   : > { %v2128_v23 = vsel %vm1808_vm6, 1.0, %v2179_v3 }
0x259e   : > { %v1785_v53 = vpop.xlane.xlu0 %1784 }
0x259f   : > { %vm1809_vm10 = vcmp.gt.f32.partialorder %v1785_v53, 0.0 }
0x25a0   : > { %v2129_v62 = vsel %vm1809_vm10, 1.0, %v2179_v3 }
0x25a1   : > { %v1845_v2 = vadd.f32 %v2129_v62, %v2128_v23 }
0x25a2   : > { %v1798_v54 = vpop.xlane.xlu0 %1797 }
0x25a3   : > { %1867 = vperm.xlu0 %2148, %v1777_v55   ;;  %vm1812_vm12 = vcmp.ge.f32.partialorder %v1798_v54, %v1782_v52 }
0x25a4   : > { %vm1816_vm0 = vmand %vm1808_vm6, %vm1812_vm12  ;;  %vm1880_vm6 = vcmp.eq.s32.totalorder %v2269_v39, 4 }
0x25a5   : > { %v2124_v18 = vsel %vm1816_vm0, 1.0, %v2179_v3 }
0x25a6   : > { %v1801_v59 = vpop.xlane.xlu0 %1800 }
0x25a7   : > { %vm1813_vm11 = vcmp.ge.f32.partialorder %v1801_v59, %v1785_v53 }
0x25a8   : > { %vm1817_vm15 = vmand %vm1809_vm10, %vm1813_vm11  ;;  %vm1883_vm10 = vcmp.eq.s32.totalorder %v2269_v39, 5  ;;  %vm1886_vm11 = vcmask 57344  }
0x25a9   : > { %v2125_v6 = vsel %vm1817_vm15, 1.0, %v2179_v3 }
0x25aa   : > { %v1828_v1 = vadd.f32 %v2125_v6, %v2124_v18 }
0x25ae   : > { %v347_v56 = vpop.xlane.xlu1 %346 }
0x25af   : > { %v357_v13 = vadd.f32 %v350_v34, %v347_v56 }
0x25b1   : > { %v358_v60 = vadd.f32 %v357_v13, %v353_v50 }
0x25b2   : > { %v1791_v63 = vpop.xlane.xlu1 %1790 }
0x25b3   : > { %vm1811_vm1 = vcmp.gt.f32.partialorder %v1791_v63, 0.0 }
0x25b4   : > { %v2131_v8 = vsel %vm1811_vm1, 1.0, %v2179_v3 }
0x25b6   : > { %v1860_v30 = vpop.permute.xlu1 %1859 }
0x25b7   : > { %v1862_v33 = vsel %vm1856_vm5, %v1860_v30, 0.0 }
0x25fb   : > { %v1876_v43 = vpop.permute.xlu1 %1875 }
0x25fc   : > { %v1878_v36 = vsel %vm1872_vm4, %v1876_v43, 0.0 }
0x260e   : > { %v356_v61 = vpop.xlane.xlu0 %355 }
0x260f   : > { %v359_v16 = vadd.f32 %v358_v60, %v356_v61 }
0x2611   : > { %v360_v26 = vrot.slane %v359_v16, 4 }
0x2612   : > { %v1788_v4 = vpop.xlane.xlu0 %1787 }
0x2613   : > { %v361_v11 = vadd.f32 %v360_v26, %v359_v16  ;;  %vm1810_vm14 = vcmp.gt.f32.partialorder %v1788_v4, 0.0 }
0x2614   : > { %v2130_v9 = vsel %vm1810_vm14, 1.0, %v2179_v3 }
0x2615   : > { %v362_v10 = vrot.slane %v361_v11, 2  ;;  %v1846_v7 = vadd.f32 %v2130_v9, %v1845_v2 }
0x2616   : > { %v1804_v17 = vpop.xlane.xlu0 %1803 }
0x2617   : > { %v363_v0 = vadd.f32 %v362_v10, %v361_v11  ;;  %v1847_v14 = vadd.f32 %v2131_v8, %v1846_v7  ;;  %vm1814_vm2 = vcmp.ge.f32.partialorder %v1804_v17, %v1788_v4 }
0x2618   : > { %vm1818_vm3 = vmand %vm1810_vm14, %vm1814_vm2 }
0x2619   : > { %v1848_v25 = vrot.slane %v1847_v14, 4  ;;  %v2126_v58 = vsel %vm1818_vm3, 1.0, %v2179_v3  ;;  %v364_v51 = vrot.slane %v363_v0, 1 }
0x261a   : > { %v1807_v15 = vpop.xlane.xlu0 %1806  ;;  %v1829_v20 = vadd.f32 %v2126_v58, %v1828_v1 }
0x261b   : > { %v1849_v19 = vadd.f32 %v1848_v25, %v1847_v14  ;;  %vm1815_vm8 = vcmp.ge.f32.partialorder %v1807_v15, %v1791_v63  ;;  %v365_v28 = vadd.f32 %v364_v51, %v363_v0 }
0x261c   : > { %vm1819_vm13 = vmand %vm1811_vm1, %vm1815_vm8 }
0x261d   : > { %v2127_v21 = vsel %vm1819_vm13, 1.0, %v2179_v3  ;;  %v1850_v22 = vrot.slane %v1849_v19, 2  ;;  %v1855_v5 = vsel %vm1854_vm9, %v365_v28, 0.0 }
0x261e   : > { %v1830_v27 = vadd.f32 %v2127_v21, %v1829_v20  ;;  %v1863_v3 = vadd.f32 %v1862_v33, %v1855_v5 }
0x261f   : > { %v1851_v31 = vadd.f32 %v1850_v22, %v1849_v19 }
0x2620   : > { %v1831_v29 = vrot.slane %v1830_v27, 4 }
0x2621   : > { %v1852_v37 = vrot.slane %v1851_v31, 1 }
0x2622   : > { %v1832_v32 = vadd.f32 %v1831_v29, %v1830_v27  ;;  %v1868_v44 = vpop.permute.xlu0 %1867 }
0x2623   : > { %v1870_v35 = vsel %vm1864_vm7, %v1868_v44, 0.0  ;;  %v1853_v46 = vadd.f32 %v1852_v37, %v1851_v31 }
0x2624   : > { %v1833_v57 = vrot.slane %v1832_v32, 2  ;;  %v1871_v41 = vadd.f32 %v1870_v35, %v1863_v3 }
0x2625   : > { %v1884_v24 = vsel %vm1883_vm10, %v1853_v46, 0.0 }
0x2626   : > { %v1834_v38 = vadd.f32 %v1833_v57, %v1832_v32  ;;  %v1879_v47 = vadd.f32 %v1878_v36, %v1871_v41 }
0x2628   : > { %v1835_v42 = vrot.slane %v1834_v38, 1 }
0x262a   : > { %v1836_v45 = vadd.f32 %v1835_v42, %v1834_v38 }
0x262c   : > { %v1881_v48 = vsel %vm1880_vm6, %v1836_v45, 0.0 }
0x262d   : > { %v1882_v49 = vadd.f32 %v1881_v48, %v1879_v47 }
0x262f   : > { %v1885_v12 = vadd.f32 %v1884_v24, %v1882_v49 }
0x2631   : > { %1887 = vst.msk [vmem:[%s253_s6] sm:$0x1] %vm1886_vm11, %v1885_v12 }
0x2632 PF: > { %s14_s15 = sadd.s32 1, %s2176_s15  }
0x2633   : > { %p11_p4 = scmp.ge.s32.totalorder %s14_s15, 4  }
0x2635   :  { %13 = sbr.rel (!%p11_p4) target bundleno = 1 (0x1), region = 75 }

</bundles_post_ra>
